<compile_context>
chip_gen: v7x
topology: tpu7x:2x2x1
jax: 0.10.0
libtpu: 0.0.40
codegen_flags: <defaults>
</compile_context>

<pallas_src>
import functools

import jax
import jax.numpy as jnp
from jax import lax
from jax.experimental import pallas as pl
from jax.experimental.pallas import tpu as pltpu


# ----------------------------------------------------------------------------
# small helpers
# ----------------------------------------------------------------------------
def _round_up(x, m):
    return (x + m - 1) // m * m


def _pick_row_tile(m, cap=256):
    """Largest row tile <= cap that divides m (m is always a multiple of 8 here)."""
    t = min(m, cap)
    while m % t:
        t -= 8
    return t


def _pick_lane_tile(n, cap=512):
    """Lane tile for a 128-multiple dimension n."""
    if n <= cap:
        return n
    return 256 if n % 256 == 0 else 128


def _pick_time_chunk(t, cap=32):
    c = min(t, cap)
    while t % c:
        c -= 1
    return c


# ----------------------------------------------------------------------------
# Kernel 1: tiled matmul + bias   (M, K) @ (K, N) + (1, N) -> (M, N)
# Used for the batched layer-0 input projection and for the FC to vocab.
# ----------------------------------------------------------------------------
def _matmul_bias_kernel(x_ref, w_ref, b_ref, o_ref, acc_ref):
    @pl.when(pl.program_id(2) == 0)
    def _():
        acc_ref[...] = jnp.zeros_like(acc_ref)

    acc_ref[...] += jnp.dot(x_ref[...], w_ref[...],
                            preferred_element_type=jnp.float32)

    @pl.when(pl.program_id(2) == pl.num_programs(2) - 1)
    def _():
        o_ref[...] = (acc_ref[...] + b_ref[...]).astype(o_ref.dtype)


def matmul_bias(x, w_t, b_row, *, tm=None, tn=None, tk=None):
    M, K = x.shape
    K2, N = w_t.shape
    assert K == K2 and b_row.shape == (1, N)
    tm = tm or _pick_row_tile(M)
    tn = tn or _pick_lane_tile(N)
    tk = tk or _pick_lane_tile(K)
    grid = (M // tm, N // tn, K // tk)
    return pl.pallas_call(
        _matmul_bias_kernel,
        out_shape=jax.ShapeDtypeStruct((M, N), jnp.float32),
        grid_spec=pltpu.PrefetchScalarGridSpec(
            num_scalar_prefetch=0,
            grid=grid,
            in_specs=[
                pl.BlockSpec((tm, tk), lambda i, j, k: (i, k)),
                pl.BlockSpec((tk, tn), lambda i, j, k: (k, j)),
                pl.BlockSpec((1, tn), lambda i, j, k: (0, j)),
            ],
            out_specs=pl.BlockSpec((tm, tn), lambda i, j, k: (i, j)),
            scratch_shapes=[pltpu.VMEM((tm, tn), jnp.float32)],
        ),
        compiler_params=pltpu.CompilerParams(
            dimension_semantics=("parallel", "parallel", "arbitrary")),
    )(x, w_t, b_row)


# ----------------------------------------------------------------------------
# Kernel 2: layer-0 recurrence.  Input gi (T, Bp, 3Hp) is the precomputed input
# projection (with folded r/z biases and b_in); only h @ W_hh^T stays in the
# time loop.  bhn holds only b_hn (must stay inside r * (...)).
# Grid iterates over time chunks; hidden state lives in VMEM scratch.
# ----------------------------------------------------------------------------
def _make_gru_recurrent_kernel(bp, hp, time_chunk):
    def kernel(gi_ref, whh_ref, bhn_ref, seq_ref, hfin_ref, h_scratch):
        @pl.when(pl.program_id(0) == 0)
        def _():
            h_scratch[...] = jnp.zeros_like(h_scratch)

        # loop-invariant loads / broadcasts hoisted out of the time loop
        whh = whh_ref[...]                                    # (Hp, 3Hp)
        bhn = jnp.broadcast_to(bhn_ref[...], (bp, hp))        # (Bp, Hp)

        def step(i, carry):
            h = h_scratch[...]                                # (Bp, Hp)
            gi = gi_ref[i]                                    # (Bp, 3Hp)
            gh = jnp.dot(h, whh, preferred_element_type=jnp.float32)
            r = jax.nn.sigmoid(gi[:, :hp] + gh[:, :hp])
            z = jax.nn.sigmoid(gi[:, hp:2 * hp] + gh[:, hp:2 * hp])
            n = jnp.tanh(gi[:, 2 * hp:] + r * (gh[:, 2 * hp:] + bhn))
            h_new = (1.0 - z) * n + z * h
            h_scratch[...] = h_new
            seq_ref[i] = h_new
            return carry

        lax.fori_loop(0, time_chunk, step, 0, unroll=True)

        # Final hidden writeback only on the last grid step (resident output block).
        @pl.when(pl.program_id(0) == pl.num_programs(0) - 1)
        def _():
            hfin_ref[...] = h_scratch[...]

    return kernel


def gru_layer0_recurrence(gi_tb3h, whh_t, bhn_row, bp, hp, time_chunk):
    T = gi_tb3h.shape[0]
    return pl.pallas_call(
        _make_gru_recurrent_kernel(bp, hp, time_chunk),
        out_shape=(
            jax.ShapeDtypeStruct((T, bp, hp), jnp.float32),
            jax.ShapeDtypeStruct((bp, hp), jnp.float32),
        ),
        grid_spec=pltpu.PrefetchScalarGridSpec(
            num_scalar_prefetch=0,
            grid=(T // time_chunk,),
            in_specs=[
                pl.BlockSpec((time_chunk, bp, 3 * hp), lambda t: (t, 0, 0)),
                pl.BlockSpec((hp, 3 * hp), lambda t: (0, 0)),
                pl.BlockSpec((1, hp), lambda t: (0, 0)),
            ],
            out_specs=[
                pl.BlockSpec((time_chunk, bp, hp), lambda t: (t, 0, 0)),
                pl.BlockSpec((bp, hp), lambda t: (0, 0)),
            ],
            scratch_shapes=[pltpu.VMEM((bp, hp), jnp.float32)],
        ),
        compiler_params=pltpu.CompilerParams(
            dimension_semantics=("arbitrary",)),   # serial time recurrence
    )(gi_tb3h, whh_t, bhn_row)


# ----------------------------------------------------------------------------
# Kernel 3: layers >= 1.  Per the module's literal semantics h_prev == x (the
# lower layer's current output), so the whole layer is pointwise in time and
# the r/z gates collapse:
#   r = sigmoid(x (W_ir+W_hr)^T + b_ir+b_hr),  z likewise,
#   n = tanh(x W_in^T + b_in + r * (x W_hn^T + b_hn)),  h' = (1-z) n + z x.
# One fused (Hp, 4Hp) merged-weight matmul per row tile.
# ----------------------------------------------------------------------------
def _make_gru_pointwise_kernel(hp):
    def kernel(x_ref, w_ref, b_ref, o_ref):
        x = x_ref[...]                               # (TM, Hp)
        g = jnp.dot(x, w_ref[...],
                    preferred_element_type=jnp.float32) + b_ref[...]
        r = jax.nn.sigmoid(g[:, :hp])
        z = jax.nn.sigmoid(g[:, hp:2 * hp])
        n = jnp.tanh(g[:, 2 * hp:3 * hp] + r * g[:, 3 * hp:])
        o_ref[...] = (1.0 - z) * n + z * x

    return kernel


def gru_pointwise_layer(x_flat, w4, b4, hp, tm=None):
    M = x_flat.shape[0]
    tm = tm or _pick_row_tile(M)
    return pl.pallas_call(
        _make_gru_pointwise_kernel(hp),
        out_shape=jax.ShapeDtypeStruct((M, hp), jnp.float32),
        grid_spec=pltpu.PrefetchScalarGridSpec(
            num_scalar_prefetch=0,
            grid=(M // tm,),
            in_specs=[
                pl.BlockSpec((tm, hp), lambda i: (i, 0)),
                pl.BlockSpec((hp, 4 * hp), lambda i: (0, 0)),
                pl.BlockSpec((1, 4 * hp), lambda i: (0, 0)),
            ],
            out_specs=pl.BlockSpec((tm, hp), lambda i: (i, 0)),
        ),
        compiler_params=pltpu.CompilerParams(
            dimension_semantics=("parallel",)),
    )(x_flat, w4, b4)


# ----------------------------------------------------------------------------
# Host-side weight prep.
# ----------------------------------------------------------------------------
def _pack_gru_layer0(w_ih, w_hh, b_ih, b_hh, in_dim, in_p, h, hp):
    """Layer 0: pre-transposed, lane-padded; b_ir+b_hr and b_iz+b_hz (and b_in)
    folded into the batched input-projection bias; b_hn kept separately (it must
    stay inside r * (...))."""
    wih_t = jnp.zeros((in_p, 3 * hp), jnp.float32)
    whh_t = jnp.zeros((hp, 3 * hp), jnp.float32)
    bi = jnp.zeros((1, 3 * hp), jnp.float32)
    bhn = jnp.zeros((1, hp), jnp.float32)
    b_ih = b_ih.reshape(-1)
    b_hh = b_hh.reshape(-1)
    for g in range(3):                       # 0: r, 1: z, 2: n
        wih_t = wih_t.at[:in_dim, g * hp:g * hp + h].set(
            w_ih[g * h:(g + 1) * h, :].T)
        whh_t = whh_t.at[:h, g * hp:g * hp + h].set(
            w_hh[g * h:(g + 1) * h, :].T)
        if g < 2:
            bi = bi.at[0, g * hp:g * hp + h].set(
                b_ih[g * h:(g + 1) * h] + b_hh[g * h:(g + 1) * h])
        else:
            bi = bi.at[0, g * hp:g * hp + h].set(b_ih[g * h:(g + 1) * h])
            bhn = bhn.at[0, :h].set(b_hh[g * h:(g + 1) * h])
    return wih_t, whh_t, bi, bhn


def _pack_gru_pointwise(w_ih, w_hh, b_ih, b_hh, h, hp):
    """Layers >= 1 (h_prev == x): merged 4-slot weight [r_sum | z_sum | i_n | h_n]."""
    w4 = jnp.zeros((hp, 4 * hp), jnp.float32)
    b4 = jnp.zeros((1, 4 * hp), jnp.float32)
    b_ih = b_ih.reshape(-1)
    b_hh = b_hh.reshape(-1)
    w_ir, w_iz, w_in = w_ih[:h], w_ih[h:2 * h], w_ih[2 * h:3 * h]
    w_hr, w_hz, w_hn = w_hh[:h], w_hh[h:2 * h], w_hh[2 * h:3 * h]
    w4 = w4.at[:h, 0 * hp:0 * hp + h].set((w_ir + w_hr).T)
    w4 = w4.at[:h, 1 * hp:1 * hp + h].set((w_iz + w_hz).T)
    w4 = w4.at[:h, 2 * hp:2 * hp + h].set(w_in.T)
    w4 = w4.at[:h, 3 * hp:3 * hp + h].set(w_hn.T)
    b4 = b4.at[0, 0 * hp:0 * hp + h].set(b_ih[:h] + b_hh[:h])
    b4 = b4.at[0, 1 * hp:1 * hp + h].set(b_ih[h:2 * h] + b_hh[h:2 * h])
    b4 = b4.at[0, 2 * hp:2 * hp + h].set(b_ih[2 * h:3 * h])
    b4 = b4.at[0, 3 * hp:3 * hp + h].set(b_hh[2 * h:3 * h])
    return w4, b4


# ----------------------------------------------------------------------------
# Full model forward
# ----------------------------------------------------------------------------
def gru_language_model_forward(tokens_bt, params, num_layers, hidden_dim):
    emb_table = params["embedding"]                   # (V, E)
    gru_params = params["gru"]                        # [(w_ih, w_hh, b_ih, b_hh)]
    w_fc, b_fc = params["fc"]                         # (V, H), (V,)

    B, T = tokens_bt.shape
    V, E = emb_table.shape
    H = hidden_dim

    Hp = _round_up(H, 128)
    Ep = _round_up(E, 128)
    Bp = _round_up(B, 8)
    Vp = _round_up(V, 128)

    # ---- weight prep (pre-transposed, lane-padded, biases folded/merged) ----
    w_ih0, w_hh0, b_ih0, b_hh0 = gru_params[0]
    wih0_t, whh0_t, bi0, bhn0 = _pack_gru_layer0(
        w_ih0, w_hh0, b_ih0, b_hh0, E, Ep, H, Hp)

    packed_pw = []
    for l in range(1, num_layers):
        w_ih, w_hh, b_ih, b_hh = gru_params[l]
        packed_pw.append(_pack_gru_pointwise(w_ih, w_hh, b_ih, b_hh, H, Hp))

    wfc_t = jnp.zeros((Hp, Vp), jnp.float32).at[:H, :V].set(w_fc.T)
    bfc = jnp.zeros((1, Vp), jnp.float32).at[0, :V].set(b_fc)

    # ---- embedding lookup (gather is plain-JAX glue), time-major, padded ----
    emb_pad = jnp.pad(emb_table, ((0, 0), (0, Ep - E)))
    x_bte = jnp.take(emb_pad, tokens_bt, axis=0)             # (B, T, Ep)
    x_tbe = jnp.transpose(x_bte, (1, 0, 2))                   # (T, B, Ep)
    x_tbe = jnp.pad(x_tbe, ((0, 0), (0, Bp - B), (0, 0)))     # (T, Bp, Ep)
    x_flat = x_tbe.reshape(T * Bp, Ep)

    # ---- layer 0: batched input projection + serial recurrence ----
    gi0 = matmul_bias(x_flat, wih0_t, bi0)                    # (T*Bp, 3Hp)
    tc = _pick_time_chunk(T)
    seq0, h0_fin = gru_layer0_recurrence(
        gi0.reshape(T, Bp, 3 * Hp), whh0_t, bhn0, Bp, Hp, tc)

    hidden_final = [h0_fin[:B, :H]]
    cur = seq0.reshape(T * Bp, Hp)

    # ---- layers >= 1: pointwise in time (module semantics), fully batched ----
    for l in range(1, num_layers):
        w4, b4 = packed_pw[l - 1]
        cur = gru_pointwise_layer(cur, w4, b4, Hp)
        hidden_final.append(cur.reshape(T, Bp, Hp)[T - 1, :B, :H])

    # ---- FC to vocab (tiled matmul+bias), back to PyTorch (B, T, V) layout ----
    logits_flat = matmul_bias(cur, wfc_t, bfc)                # (T*Bp, Vp)
    logits = logits_flat.reshape(T, Bp, Vp)[:, :B, :V]
    logits = jnp.transpose(logits, (1, 0, 2))                 # (B, T, V)
    return logits, hidden_final


# ----------------------------------------------------------------------------
# Pure-JAX reference: literal translation of the PyTorch forward.
# ----------------------------------------------------------------------------
def reference_forward(tokens_bt, params, num_layers, hidden_dim):
    emb = jnp.take(params["embedding"], tokens_bt, axis=0)    # (B, T, E)
    B, T, _ = emb.shape
    H = hidden_dim

    def cell(x, h, layer_params):
        w_ih, w_hh, b_ih, b_hh = layer_params
        gi = x @ w_ih.T + b_ih.reshape(-1)
        gh = h @ w_hh.T + b_hh.reshape(-1)
        r = jax.nn.sigmoid(gi[:, :H] + gh[:, :H])
        z = jax.nn.sigmoid(gi[:, H:2 * H] + gh[:, H:2 * H])
        n = jnp.tanh(gi[:, 2 * H:] + r * gh[:, 2 * H:])
        return (1.0 - z) * n + z * h

    hidden = [jnp.zeros((B, H), jnp.float32) for _ in range(num_layers)]
    outs = []
    for t in range(T):
        input_t = emb[:, t, :]
        new_hidden = []
        for layer in range(num_layers):
            # literal module behaviour: layer > 0 uses the lower layer's CURRENT
            # output as its "previous hidden".
            h_prev = hidden[layer] if layer == 0 else new_hidden[-1]
            h_t = cell(input_t, h_prev, params["gru"][layer])
            input_t = h_t
            new_hidden.append(h_t)
        hidden = new_hidden
        outs.append(input_t[:, None, :])
    seq = jnp.concatenate(outs, axis=1)                       # (B, T, H)
    w_fc, b_fc = params["fc"]
    logits = seq @ w_fc.T + b_fc
    return logits, hidden


# ----------------------------------------------------------------------------
# Deterministic parameter init
# ----------------------------------------------------------------------------
def init_params(key, vocab_size, embedding_dim, hidden_dim, num_layers):
    keys = jax.random.split(key, 2 + 4 * num_layers)
    k = 1.0 / jnp.sqrt(hidden_dim)
    params = {}
    params["embedding"] = jax.random.normal(
        keys[0], (vocab_size, embedding_dim), jnp.float32)
    gru = []
    for l in range(num_layers):
        in_dim = embedding_dim if l == 0 else hidden_dim
        kk = keys[2 + 4 * l: 2 + 4 * (l + 1)]
        w_ih = jax.random.uniform(kk[0], (3 * hidden_dim, in_dim), jnp.float32, -k, k)
        w_hh = jax.random.uniform(kk[1], (3 * hidden_dim, hidden_dim), jnp.float32, -k, k)
        b_ih = jax.random.uniform(kk[2], (1, 3 * hidden_dim), jnp.float32, -k, k)
        b_hh = jax.random.uniform(kk[3], (1, 3 * hidden_dim), jnp.float32, -k, k)
        gru.append((w_ih, w_hh, b_ih, b_hh))
    params["gru"] = gru
    w_fc = jax.random.uniform(keys[1], (vocab_size, hidden_dim), jnp.float32, -k, k)
    b_fc = jnp.zeros((vocab_size,), jnp.float32)
    params["fc"] = (w_fc, b_fc)
    return params


if __name__ == "__main__":
    vocab_size, embedding_dim, hidden_dim, num_layers = 50, 16, 32, 2
    B, T = 2, 8

    key = jax.random.PRNGKey(0)
    pkey, tkey = jax.random.split(key)
    params = init_params(pkey, vocab_size, embedding_dim, hidden_dim, num_layers)
    tokens = jax.random.randint(tkey, (B, T), 0, vocab_size, dtype=jnp.int32)

    fwd = jax.jit(functools.partial(gru_language_model_forward,
                                    num_layers=num_layers, hidden_dim=hidden_dim))
    logits, hidden = fwd(tokens, params)
    logits = jax.block_until_ready(logits)
    hidden = [jax.block_until_ready(h) for h in hidden]

    ref_logits, ref_hidden = reference_forward(tokens, params, num_layers, hidden_dim)
    assert logits.shape == (B, T, vocab_size)
    assert all(h.shape == (B, hidden_dim) for h in hidden)
    assert jnp.allclose(logits, ref_logits, atol=1e-3, rtol=1e-3), (
        float(jnp.max(jnp.abs(logits - ref_logits))))
    for h, rh in zip(hidden, ref_hidden):
        assert jnp.allclose(h, rh, atol=1e-3, rtol=1e-3)

    print("KERNEL_OK")
</pallas_src>

<mosaic_0001>
module attributes {stable_mosaic.version = 11 : i64} {
  func.func @_matmul_bias_kernel(%arg0: i32, %arg1: i32, %arg2: i32, %arg3: memref<64x128xf32, #tpu.memory_space<vmem>>, %arg4: memref<128x384xf32, #tpu.memory_space<vmem>>, %arg5: memref<1x384xf32, #tpu.memory_space<vmem>>, %arg6: memref<64x384xf32, #tpu.memory_space<vmem>>, %arg7: memref<64x384xf32, #tpu.memory_space<vmem>>) attributes {dimension_semantics = [#tpu.dimension_semantics<parallel>, #tpu.dimension_semantics<parallel>, #tpu.dimension_semantics<arbitrary>], iteration_bounds = array<i64: 1, 1, 1>, scalar_prefetch = 0 : i64, scratch_operands = 1 : i64, tpu.core_type = #tpu.core_type<tc>, window_params = [{transform_indices = @transform_0, window_bounds = array<i64: 64, 128>}, {transform_indices = @transform_1, window_bounds = array<i64: 128, 384>}, {transform_indices = @transform_2, window_bounds = array<i64: 1, 384>}, {transform_indices = @transform_3, window_bounds = array<i64: 64, 384>}]} {
    %c0_i32 = arith.constant 0 : i32
    %0 = arith.cmpi eq, %arg2, %c0_i32 : i32
    %1 = arith.extui %0 : i1 to i32
    %c0_i32_0 = arith.constant 0 : i32
    %2 = arith.cmpi ne, %1, %c0_i32_0 : i32
    scf.if %2 {
      %cst_10 = arith.constant 0.000000e+00 : f32
      %12 = vector.broadcast %cst_10 : f32 to vector<64x384xf32>
      %c0_11 = arith.constant 0 : index
      %c0_12 = arith.constant 0 : index
      %13 = vector.load %arg7[%c0_11, %c0_12] : memref<64x384xf32, #tpu.memory_space<vmem>>, vector<64x384xf32>
      tpu.vector_store %arg7[%c0_11, %c0_12], %12 {strides = array<i32>} : memref<64x384xf32, #tpu.memory_space<vmem>>, vector<64x384xf32>,
    } else {
    }
    %c0 = arith.constant 0 : index
    %c0_1 = arith.constant 0 : index
    %3 = vector.load %arg7[%c0, %c0_1] : memref<64x384xf32, #tpu.memory_space<vmem>>, vector<64x384xf32>
    %c0_2 = arith.constant 0 : index
    %c0_3 = arith.constant 0 : index
    %4 = vector.load %arg3[%c0_2, %c0_3] : memref<64x128xf32, #tpu.memory_space<vmem>>, vector<64x128xf32>
    %c0_4 = arith.constant 0 : index
    %c0_5 = arith.constant 0 : index
    %5 = vector.load %arg4[%c0_4, %c0_5] : memref<128x384xf32, #tpu.memory_space<vmem>>, vector<128x384xf32>
    %cst = arith.constant dense<0.000000e+00> : vector<64x384xf32>
    %6 = tpu.matmul %4, %5, %cst {dimension_numbers = #tpu.dot_dimension_numbers<[1], [0], [0], [1], [0, 0, 1, 1], [], []>} : vector<64x128xf32>, vector<128x384xf32>, vector<64x384xf32> -> vector<64x384xf32>
    %7 = arith.addf %3, %6 : vector<64x384xf32>
    %c0_6 = arith.constant 0 : index
    %c0_7 = arith.constant 0 : index
    %8 = vector.load %arg7[%c0_6, %c0_7] : memref<64x384xf32, #tpu.memory_space<vmem>>, vector<64x384xf32>
    tpu.vector_store %arg7[%c0_6, %c0_7], %7 {strides = array<i32>} : memref<64x384xf32, #tpu.memory_space<vmem>>, vector<64x384xf32>,
    %c0_i32_8 = arith.constant 0 : i32
    %9 = arith.cmpi eq, %arg2, %c0_i32_8 : i32
    %10 = arith.extui %9 : i1 to i32
    %c0_i32_9 = arith.constant 0 : i32
    %11 = arith.cmpi ne, %10, %c0_i32_9 : i32
    scf.if %11 {
      %c0_10 = arith.constant 0 : index
      %c0_11 = arith.constant 0 : index
      %12 = vector.load %arg7[%c0_10, %c0_11] : memref<64x384xf32, #tpu.memory_space<vmem>>, vector<64x384xf32>
      %c0_12 = arith.constant 0 : index
      %c0_13 = arith.constant 0 : index
      %13 = vector.load %arg5[%c0_12, %c0_13] : memref<1x384xf32, #tpu.memory_space<vmem>>, vector<1x384xf32>
      %14 = vector.broadcast %13 : vector<1x384xf32> to vector<64x384xf32>
      %15 = arith.addf %12, %14 : vector<64x384xf32>
      %c0_14 = arith.constant 0 : index
      %c0_15 = arith.constant 0 : index
      %16 = vector.load %arg6[%c0_14, %c0_15] : memref<64x384xf32, #tpu.memory_space<vmem>>, vector<64x384xf32>
      tpu.vector_store %arg6[%c0_14, %c0_15], %15 {strides = array<i32>} : memref<64x384xf32, #tpu.memory_space<vmem>>, vector<64x384xf32>,
    } else {
    }
    return
  }
  func.func @transform_0(%arg0: i32, %arg1: i32, %arg2: i32) -> (i32, i32) {
    %c0_i32 = arith.constant 0 : i32
    return %arg0, %arg2 : i32, i32
  }
  func.func @transform_1(%arg0: i32, %arg1: i32, %arg2: i32) -> (i32, i32) {
    %c0_i32 = arith.constant 0 : i32
    return %arg2, %arg1 : i32, i32
  }
  func.func @transform_2(%arg0: i32, %arg1: i32, %arg2: i32) -> (i32, i32) {
    %c0_i32 = arith.constant 0 : i32
    %c0_i32_0 = arith.constant 0 : i32
    return %c0_i32, %arg1 : i32, i32
  }
  func.func @transform_3(%arg0: i32, %arg1: i32, %arg2: i32) -> (i32, i32) {
    %c0_i32 = arith.constant 0 : i32
    return %arg0, %arg1 : i32, i32
  }
}

module attributes {stable_mosaic.version = 11 : i64} {
  func.func @kernel(%arg0: i32, %arg1: memref<8x8x384xf32, #tpu.memory_space<vmem>>, %arg2: memref<128x384xf32, #tpu.memory_space<vmem>>, %arg3: memref<1x128xf32, #tpu.memory_space<vmem>>, %arg4: memref<8x8x128xf32, #tpu.memory_space<vmem>>, %arg5: memref<8x128xf32, #tpu.memory_space<vmem>>, %arg6: memref<8x128xf32, #tpu.memory_space<vmem>>) attributes {dimension_semantics = [#tpu.dimension_semantics<arbitrary>], iteration_bounds = array<i64: 1>, scalar_prefetch = 0 : i64, scratch_operands = 1 : i64, tpu.core_type = #tpu.core_type<tc>, window_params = [{transform_indices = @transform_0, window_bounds = array<i64: 8, 8, 384>}, {pipeline_mode = #tpu.pipeline_mode<synchronous>, transform_indices = @transform_1, window_bounds = array<i64: 128, 384>}, {pipeline_mode = #tpu.pipeline_mode<synchronous>, transform_indices = @transform_2, window_bounds = array<i64: 1, 128>}, {transform_indices = @transform_3, window_bounds = array<i64: 8, 8, 128>}, {pipeline_mode = #tpu.pipeline_mode<synchronous>, transform_indices = @transform_4, window_bounds = array<i64: 8, 128>}]} {
    %c0_i32 = arith.constant 0 : i32
    %0 = arith.cmpi eq, %arg0, %c0_i32 : i32
    %1 = arith.extui %0 : i1 to i32
    %c0_i32_0 = arith.constant 0 : i32
    %2 = arith.cmpi ne, %1, %c0_i32_0 : i32
    scf.if %2 {
      %cst_102 = arith.constant 0.000000e+00 : f32
      %306 = vector.broadcast %cst_102 : f32 to vector<8x128xf32>
      %c0_103 = arith.constant 0 : index
      %c0_104 = arith.constant 0 : index
      %307 = vector.load %arg6[%c0_103, %c0_104] : memref<8x128xf32, #tpu.memory_space<vmem>>, vector<8x128xf32>
      tpu.vector_store %arg6[%c0_103, %c0_104], %306 {strides = array<i32>} : memref<8x128xf32, #tpu.memory_space<vmem>>, vector<8x128xf32>,
    } else {
    }
    %c0 = arith.constant 0 : index
    %c0_1 = arith.constant 0 : index
    %3 = vector.load %arg2[%c0, %c0_1] : memref<128x384xf32, #tpu.memory_space<vmem>>, vector<128x384xf32>
    %c0_2 = arith.constant 0 : index
    %c0_3 = arith.constant 0 : index
    %4 = vector.load %arg3[%c0_2, %c0_3] : memref<1x128xf32, #tpu.memory_space<vmem>>, vector<1x128xf32>
    %5 = vector.shape_cast %4 : vector<1x128xf32> to vector<1x128xf32>
    %6 = vector.broadcast %5 : vector<1x128xf32> to vector<8x128xf32>
    %c0_i32_4 = arith.constant 0 : i32
    %c0_5 = arith.constant 0 : index
    %c0_6 = arith.constant 0 : index
    %7 = vector.load %arg6[%c0_5, %c0_6] : memref<8x128xf32, #tpu.memory_space<vmem>>, vector<8x128xf32>
    %8 = arith.index_cast %c0_i32_4 : i32 to index
    %c0_7 = arith.constant 0 : index
    %c0_8 = arith.constant 0 : index
    %9 = vector.load %arg1[%8, %c0_7, %c0_8] : memref<8x8x384xf32, #tpu.memory_space<vmem>>, vector<1x8x384xf32>
    %10 = vector.shape_cast %9 : vector<1x8x384xf32> to vector<8x384xf32>
    %cst = arith.constant dense<0.000000e+00> : vector<8x384xf32>
    %11 = tpu.matmul %7, %3, %cst {dimension_numbers = #tpu.dot_dimension_numbers<[1], [0], [0], [1], [0, 0, 1, 1], [], []>} : vector<8x128xf32>, vector<128x384xf32>, vector<8x384xf32> -> vector<8x384xf32>
    %12 = vector.extract_strided_slice %10 {offsets = [0, 0], sizes = [8, 128], strides = [1, 1]} : vector<8x384xf32> to vector<8x128xf32>
    %13 = vector.extract_strided_slice %11 {offsets = [0, 0], sizes = [8, 128], strides = [1, 1]} : vector<8x384xf32> to vector<8x128xf32>
    %14 = arith.addf %12, %13 : vector<8x128xf32>
    %15 = arith.negf %14 : vector<8x128xf32>
    %16 = math.exp %15 : vector<8x128xf32>
    %cst_9 = arith.constant 1.000000e+00 : f32
    %17 = vector.broadcast %cst_9 : f32 to vector<8x128xf32>
    %18 = arith.addf %17, %16 : vector<8x128xf32>
    %19 = arith.divf %17, %18 : vector<8x128xf32>
    %20 = vector.extract_strided_slice %10 {offsets = [0, 128], sizes = [8, 128], strides = [1, 1]} : vector<8x384xf32> to vector<8x128xf32>
    %21 = vector.extract_strided_slice %11 {offsets = [0, 128], sizes = [8, 128], strides = [1, 1]} : vector<8x384xf32> to vector<8x128xf32>
    %22 = arith.addf %20, %21 : vector<8x128xf32>
    %23 = arith.negf %22 : vector<8x128xf32>
    %24 = math.exp %23 : vector<8x128xf32>
    %cst_10 = arith.constant 1.000000e+00 : f32
    %25 = vector.broadcast %cst_10 : f32 to vector<8x128xf32>
    %26 = arith.addf %25, %24 : vector<8x128xf32>
    %27 = arith.divf %25, %26 : vector<8x128xf32>
    %28 = vector.extract_strided_slice %10 {offsets = [0, 256], sizes = [8, 128], strides = [1, 1]} : vector<8x384xf32> to vector<8x128xf32>
    %29 = vector.extract_strided_slice %11 {offsets = [0, 256], sizes = [8, 128], strides = [1, 1]} : vector<8x384xf32> to vector<8x128xf32>
    %30 = arith.addf %29, %6 : vector<8x128xf32>
    %31 = arith.mulf %19, %30 : vector<8x128xf32>
    %32 = arith.addf %28, %31 : vector<8x128xf32>
    %33 = math.tanh %32 : vector<8x128xf32>
    %cst_11 = arith.constant 1.000000e+00 : f32
    %34 = vector.broadcast %cst_11 : f32 to vector<8x128xf32>
    %35 = arith.subf %34, %27 : vector<8x128xf32>
    %36 = arith.mulf %35, %33 : vector<8x128xf32>
    %37 = arith.mulf %27, %7 : vector<8x128xf32>
    %38 = arith.addf %36, %37 : vector<8x128xf32>
    %c0_12 = arith.constant 0 : index
    %c0_13 = arith.constant 0 : index
    %39 = vector.load %arg6[%c0_12, %c0_13] : memref<8x128xf32, #tpu.memory_space<vmem>>, vector<8x128xf32>
    tpu.vector_store %arg6[%c0_12, %c0_13], %38 {strides = array<i32>} : memref<8x128xf32, #tpu.memory_space<vmem>>, vector<8x128xf32>,
    %40 = arith.index_cast %c0_i32_4 : i32 to index
    %c0_14 = arith.constant 0 : index
    %c0_15 = arith.constant 0 : index
    %41 = vector.load %arg4[%40, %c0_14, %c0_15] : memref<8x8x128xf32, #tpu.memory_space<vmem>>, vector<1x8x128xf32>
    %42 = vector.shape_cast %41 : vector<1x8x128xf32> to vector<8x128xf32>
    %43 = vector.shape_cast %38 : vector<8x128xf32> to vector<1x8x128xf32>
    tpu.vector_store %arg4[%40, %c0_14, %c0_15], %43 {strides = array<i32>} : memref<8x8x128xf32, #tpu.memory_space<vmem>>, vector<1x8x128xf32>,
    %c1_i32 = arith.constant 1 : i32
    %c0_16 = arith.constant 0 : index
    %c0_17 = arith.constant 0 : index
    %44 = vector.load %arg6[%c0_16, %c0_17] : memref<8x128xf32, #tpu.memory_space<vmem>>, vector<8x128xf32>
    %45 = arith.index_cast %c1_i32 : i32 to index
    %c0_18 = arith.constant 0 : index
    %c0_19 = arith.constant 0 : index
    %46 = vector.load %arg1[%45, %c0_18, %c0_19] : memref<8x8x384xf32, #tpu.memory_space<vmem>>, vector<1x8x384xf32>
    %47 = vector.shape_cast %46 : vector<1x8x384xf32> to vector<8x384xf32>
    %cst_20 = arith.constant dense<0.000000e+00> : vector<8x384xf32>
    %48 = tpu.matmul %44, %3, %cst_20 {dimension_numbers = #tpu.dot_dimension_numbers<[1], [0], [0], [1], [0, 0, 1, 1], [], []>} : vector<8x128xf32>, vector<128x384xf32>, vector<8x384xf32> -> vector<8x384xf32>
    %49 = vector.extract_strided_slice %47 {offsets = [0, 0], sizes = [8, 128], strides = [1, 1]} : vector<8x384xf32> to vector<8x128xf32>
    %50 = vector.extract_strided_slice %48 {offsets = [0, 0], sizes = [8, 128], strides = [1, 1]} : vector<8x384xf32> to vector<8x128xf32>
    %51 = arith.addf %49, %50 : vector<8x128xf32>
    %52 = arith.negf %51 : vector<8x128xf32>
    %53 = math.exp %52 : vector<8x128xf32>
    %cst_21 = arith.constant 1.000000e+00 : f32
    %54 = vector.broadcast %cst_21 : f32 to vector<8x128xf32>
    %55 = arith.addf %54, %53 : vector<8x128xf32>
    %56 = arith.divf %54, %55 : vector<8x128xf32>
    %57 = vector.extract_strided_slice %47 {offsets = [0, 128], sizes = [8, 128], strides = [1, 1]} : vector<8x384xf32> to vector<8x128xf32>
    %58 = vector.extract_strided_slice %48 {offsets = [0, 128], sizes = [8, 128], strides = [1, 1]} : vector<8x384xf32> to vector<8x128xf32>
    %59 = arith.addf %57, %58 : vector<8x128xf32>
    %60 = arith.negf %59 : vector<8x128xf32>
    %61 = math.exp %60 : vector<8x128xf32>
    %cst_22 = arith.constant 1.000000e+00 : f32
    %62 = vector.broadcast %cst_22 : f32 to vector<8x128xf32>
    %63 = arith.addf %62, %61 : vector<8x128xf32>
    %64 = arith.divf %62, %63 : vector<8x128xf32>
    %65 = vector.extract_strided_slice %47 {offsets = [0, 256], sizes = [8, 128], strides = [1, 1]} : vector<8x384xf32> to vector<8x128xf32>
    %66 = vector.extract_strided_slice %48 {offsets = [0, 256], sizes = [8, 128], strides = [1, 1]} : vector<8x384xf32> to vector<8x128xf32>
    %67 = arith.addf %66, %6 : vector<8x128xf32>
    %68 = arith.mulf %56, %67 : vector<8x128xf32>
    %69 = arith.addf %65, %68 : vector<8x128xf32>
    %70 = math.tanh %69 : vector<8x128xf32>
    %cst_23 = arith.constant 1.000000e+00 : f32
    %71 = vector.broadcast %cst_23 : f32 to vector<8x128xf32>
    %72 = arith.subf %71, %64 : vector<8x128xf32>
    %73 = arith.mulf %72, %70 : vector<8x128xf32>
    %74 = arith.mulf %64, %44 : vector<8x128xf32>
    %75 = arith.addf %73, %74 : vector<8x128xf32>
    %c0_24 = arith.constant 0 : index
    %c0_25 = arith.constant 0 : index
    %76 = vector.load %arg6[%c0_24, %c0_25] : memref<8x128xf32, #tpu.memory_space<vmem>>, vector<8x128xf32>
    tpu.vector_store %arg6[%c0_24, %c0_25], %75 {strides = array<i32>} : memref<8x128xf32, #tpu.memory_space<vmem>>, vector<8x128xf32>,
    %77 = arith.index_cast %c1_i32 : i32 to index
    %c0_26 = arith.constant 0 : index
    %c0_27 = arith.constant 0 : index
    %78 = vector.load %arg4[%77, %c0_26, %c0_27] : memref<8x8x128xf32, #tpu.memory_space<vmem>>, vector<1x8x128xf32>
    %79 = vector.shape_cast %78 : vector<1x8x128xf32> to vector<8x128xf32>
    %80 = vector.shape_cast %75 : vector<8x128xf32> to vector<1x8x128xf32>
    tpu.vector_store %arg4[%77, %c0_26, %c0_27], %80 {strides = array<i32>} : memref<8x8x128xf32, #tpu.memory_space<vmem>>, vector<1x8x128xf32>,
    %c2_i32 = arith.constant 2 : i32
    %c0_28 = arith.constant 0 : index
    %c0_29 = arith.constant 0 : index
    %81 = vector.load %arg6[%c0_28, %c0_29] : memref<8x128xf32, #tpu.memory_space<vmem>>, vector<8x128xf32>
    %82 = arith.index_cast %c2_i32 : i32 to index
    %c0_30 = arith.constant 0 : index
    %c0_31 = arith.constant 0 : index
    %83 = vector.load %arg1[%82, %c0_30, %c0_31] : memref<8x8x384xf32, #tpu.memory_space<vmem>>, vector<1x8x384xf32>
    %84 = vector.shape_cast %83 : vector<1x8x384xf32> to vector<8x384xf32>
    %cst_32 = arith.constant dense<0.000000e+00> : vector<8x384xf32>
    %85 = tpu.matmul %81, %3, %cst_32 {dimension_numbers = #tpu.dot_dimension_numbers<[1], [0], [0], [1], [0, 0, 1, 1], [], []>} : vector<8x128xf32>, vector<128x384xf32>, vector<8x384xf32> -> vector<8x384xf32>
    %86 = vector.extract_strided_slice %84 {offsets = [0, 0], sizes = [8, 128], strides = [1, 1]} : vector<8x384xf32> to vector<8x128xf32>
    %87 = vector.extract_strided_slice %85 {offsets = [0, 0], sizes = [8, 128], strides = [1, 1]} : vector<8x384xf32> to vector<8x128xf32>
    %88 = arith.addf %86, %87 : vector<8x128xf32>
    %89 = arith.negf %88 : vector<8x128xf32>
    %90 = math.exp %89 : vector<8x128xf32>
    %cst_33 = arith.constant 1.000000e+00 : f32
    %91 = vector.broadcast %cst_33 : f32 to vector<8x128xf32>
    %92 = arith.addf %91, %90 : vector<8x128xf32>
    %93 = arith.divf %91, %92 : vector<8x128xf32>
    %94 = vector.extract_strided_slice %84 {offsets = [0, 128], sizes = [8, 128], strides = [1, 1]} : vector<8x384xf32> to vector<8x128xf32>
    %95 = vector.extract_strided_slice %85 {offsets = [0, 128], sizes = [8, 128], strides = [1, 1]} : vector<8x384xf32> to vector<8x128xf32>
    %96 = arith.addf %94, %95 : vector<8x128xf32>
    %97 = arith.negf %96 : vector<8x128xf32>
    %98 = math.exp %97 : vector<8x128xf32>
    %cst_34 = arith.constant 1.000000e+00 : f32
    %99 = vector.broadcast %cst_34 : f32 to vector<8x128xf32>
    %100 = arith.addf %99, %98 : vector<8x128xf32>
    %101 = arith.divf %99, %100 : vector<8x128xf32>
    %102 = vector.extract_strided_slice %84 {offsets = [0, 256], sizes = [8, 128], strides = [1, 1]} : vector<8x384xf32> to vector<8x128xf32>
    %103 = vector.extract_strided_slice %85 {offsets = [0, 256], sizes = [8, 128], strides = [1, 1]} : vector<8x384xf32> to vector<8x128xf32>
    %104 = arith.addf %103, %6 : vector<8x128xf32>
    %105 = arith.mulf %93, %104 : vector<8x128xf32>
    %106 = arith.addf %102, %105 : vector<8x128xf32>
    %107 = math.tanh %106 : vector<8x128xf32>
    %cst_35 = arith.constant 1.000000e+00 : f32
    %108 = vector.broadcast %cst_35 : f32 to vector<8x128xf32>
    %109 = arith.subf %108, %101 : vector<8x128xf32>
    %110 = arith.mulf %109, %107 : vector<8x128xf32>
    %111 = arith.mulf %101, %81 : vector<8x128xf32>
    %112 = arith.addf %110, %111 : vector<8x128xf32>
    %c0_36 = arith.constant 0 : index
    %c0_37 = arith.constant 0 : index
    %113 = vector.load %arg6[%c0_36, %c0_37] : memref<8x128xf32, #tpu.memory_space<vmem>>, vector<8x128xf32>
    tpu.vector_store %arg6[%c0_36, %c0_37], %112 {strides = array<i32>} : memref<8x128xf32, #tpu.memory_space<vmem>>, vector<8x128xf32>,
    %114 = arith.index_cast %c2_i32 : i32 to index
    %c0_38 = arith.constant 0 : index
    %c0_39 = arith.constant 0 : index
    %115 = vector.load %arg4[%114, %c0_38, %c0_39] : memref<8x8x128xf32, #tpu.memory_space<vmem>>, vector<1x8x128xf32>
    %116 = vector.shape_cast %115 : vector<1x8x128xf32> to vector<8x128xf32>
    %117 = vector.shape_cast %112 : vector<8x128xf32> to vector<1x8x128xf32>
    tpu.vector_store %arg4[%114, %c0_38, %c0_39], %117 {strides = array<i32>} : memref<8x8x128xf32, #tpu.memory_space<vmem>>, vector<1x8x128xf32>,
    %c3_i32 = arith.constant 3 : i32
    %c0_40 = arith.constant 0 : index
    %c0_41 = arith.constant 0 : index
    %118 = vector.load %arg6[%c0_40, %c0_41] : memref<8x128xf32, #tpu.memory_space<vmem>>, vector<8x128xf32>
    %119 = arith.index_cast %c3_i32 : i32 to index
    %c0_42 = arith.constant 0 : index
    %c0_43 = arith.constant 0 : index
    %120 = vector.load %arg1[%119, %c0_42, %c0_43] : memref<8x8x384xf32, #tpu.memory_space<vmem>>, vector<1x8x384xf32>
    %121 = vector.shape_cast %120 : vector<1x8x384xf32> to vector<8x384xf32>
    %cst_44 = arith.constant dense<0.000000e+00> : vector<8x384xf32>
    %122 = tpu.matmul %118, %3, %cst_44 {dimension_numbers = #tpu.dot_dimension_numbers<[1], [0], [0], [1], [0, 0, 1, 1], [], []>} : vector<8x128xf32>, vector<128x384xf32>, vector<8x384xf32> -> vector<8x384xf32>
    %123 = vector.extract_strided_slice %121 {offsets = [0, 0], sizes = [8, 128], strides = [1, 1]} : vector<8x384xf32> to vector<8x128xf32>
    %124 = vector.extract_strided_slice %122 {offsets = [0, 0], sizes = [8, 128], strides = [1, 1]} : vector<8x384xf32> to vector<8x128xf32>
    %125 = arith.addf %123, %124 : vector<8x128xf32>
    %126 = arith.negf %125 : vector<8x128xf32>
    %127 = math.exp %126 : vector<8x128xf32>
    %cst_45 = arith.constant 1.000000e+00 : f32
    %128 = vector.broadcast %cst_45 : f32 to vector<8x128xf32>
    %129 = arith.addf %128, %127 : vector<8x128xf32>
    %130 = arith.divf %128, %129 : vector<8x128xf32>
    %131 = vector.extract_strided_slice %121 {offsets = [0, 128], sizes = [8, 128], strides = [1, 1]} : vector<8x384xf32> to vector<8x128xf32>
    %132 = vector.extract_strided_slice %122 {offsets = [0, 128], sizes = [8, 128], strides = [1, 1]} : vector<8x384xf32> to vector<8x128xf32>
    %133 = arith.addf %131, %132 : vector<8x128xf32>
    %134 = arith.negf %133 : vector<8x128xf32>
    %135 = math.exp %134 : vector<8x128xf32>
    %cst_46 = arith.constant 1.000000e+00 : f32
    %136 = vector.broadcast %cst_46 : f32 to vector<8x128xf32>
    %137 = arith.addf %136, %135 : vector<8x128xf32>
    %138 = arith.divf %136, %137 : vector<8x128xf32>
    %139 = vector.extract_strided_slice %121 {offsets = [0, 256], sizes = [8, 128], strides = [1, 1]} : vector<8x384xf32> to vector<8x128xf32>
    %140 = vector.extract_strided_slice %122 {offsets = [0, 256], sizes = [8, 128], strides = [1, 1]} : vector<8x384xf32> to vector<8x128xf32>
    %141 = arith.addf %140, %6 : vector<8x128xf32>
    %142 = arith.mulf %130, %141 : vector<8x128xf32>
    %143 = arith.addf %139, %142 : vector<8x128xf32>
    %144 = math.tanh %143 : vector<8x128xf32>
    %cst_47 = arith.constant 1.000000e+00 : f32
    %145 = vector.broadcast %cst_47 : f32 to vector<8x128xf32>
    %146 = arith.subf %145, %138 : vector<8x128xf32>
    %147 = arith.mulf %146, %144 : vector<8x128xf32>
    %148 = arith.mulf %138, %118 : vector<8x128xf32>
    %149 = arith.addf %147, %148 : vector<8x128xf32>
    %c0_48 = arith.constant 0 : index
    %c0_49 = arith.constant 0 : index
    %150 = vector.load %arg6[%c0_48, %c0_49] : memref<8x128xf32, #tpu.memory_space<vmem>>, vector<8x128xf32>
    tpu.vector_store %arg6[%c0_48, %c0_49], %149 {strides = array<i32>} : memref<8x128xf32, #tpu.memory_space<vmem>>, vector<8x128xf32>,
    %151 = arith.index_cast %c3_i32 : i32 to index
    %c0_50 = arith.constant 0 : index
    %c0_51 = arith.constant 0 : index
    %152 = vector.load %arg4[%151, %c0_50, %c0_51] : memref<8x8x128xf32, #tpu.memory_space<vmem>>, vector<1x8x128xf32>
    %153 = vector.shape_cast %152 : vector<1x8x128xf32> to vector<8x128xf32>
    %154 = vector.shape_cast %149 : vector<8x128xf32> to vector<1x8x128xf32>
    tpu.vector_store %arg4[%151, %c0_50, %c0_51], %154 {strides = array<i32>} : memref<8x8x128xf32, #tpu.memory_space<vmem>>, vector<1x8x128xf32>,
    %c4_i32 = arith.constant 4 : i32
    %c0_52 = arith.constant 0 : index
    %c0_53 = arith.constant 0 : index
    %155 = vector.load %arg6[%c0_52, %c0_53] : memref<8x128xf32, #tpu.memory_space<vmem>>, vector<8x128xf32>
    %156 = arith.index_cast %c4_i32 : i32 to index
    %c0_54 = arith.constant 0 : index
    %c0_55 = arith.constant 0 : index
    %157 = vector.load %arg1[%156, %c0_54, %c0_55] : memref<8x8x384xf32, #tpu.memory_space<vmem>>, vector<1x8x384xf32>
    %158 = vector.shape_cast %157 : vector<1x8x384xf32> to vector<8x384xf32>
    %cst_56 = arith.constant dense<0.000000e+00> : vector<8x384xf32>
    %159 = tpu.matmul %155, %3, %cst_56 {dimension_numbers = #tpu.dot_dimension_numbers<[1], [0], [0], [1], [0, 0, 1, 1], [], []>} : vector<8x128xf32>, vector<128x384xf32>, vector<8x384xf32> -> vector<8x384xf32>
    %160 = vector.extract_strided_slice %158 {offsets = [0, 0], sizes = [8, 128], strides = [1, 1]} : vector<8x384xf32> to vector<8x128xf32>
    %161 = vector.extract_strided_slice %159 {offsets = [0, 0], sizes = [8, 128], strides = [1, 1]} : vector<8x384xf32> to vector<8x128xf32>
    %162 = arith.addf %160, %161 : vector<8x128xf32>
    %163 = arith.negf %162 : vector<8x128xf32>
    %164 = math.exp %163 : vector<8x128xf32>
    %cst_57 = arith.constant 1.000000e+00 : f32
    %165 = vector.broadcast %cst_57 : f32 to vector<8x128xf32>
    %166 = arith.addf %165, %164 : vector<8x128xf32>
    %167 = arith.divf %165, %166 : vector<8x128xf32>
    %168 = vector.extract_strided_slice %158 {offsets = [0, 128], sizes = [8, 128], strides = [1, 1]} : vector<8x384xf32> to vector<8x128xf32>
    %169 = vector.extract_strided_slice %159 {offsets = [0, 128], sizes = [8, 128], strides = [1, 1]} : vector<8x384xf32> to vector<8x128xf32>
    %170 = arith.addf %168, %169 : vector<8x128xf32>
    %171 = arith.negf %170 : vector<8x128xf32>
    %172 = math.exp %171 : vector<8x128xf32>
    %cst_58 = arith.constant 1.000000e+00 : f32
    %173 = vector.broadcast %cst_58 : f32 to vector<8x128xf32>
    %174 = arith.addf %173, %172 : vector<8x128xf32>
    %175 = arith.divf %173, %174 : vector<8x128xf32>
    %176 = vector.extract_strided_slice %158 {offsets = [0, 256], sizes = [8, 128], strides = [1, 1]} : vector<8x384xf32> to vector<8x128xf32>
    %177 = vector.extract_strided_slice %159 {offsets = [0, 256], sizes = [8, 128], strides = [1, 1]} : vector<8x384xf32> to vector<8x128xf32>
    %178 = arith.addf %177, %6 : vector<8x128xf32>
    %179 = arith.mulf %167, %178 : vector<8x128xf32>
    %180 = arith.addf %176, %179 : vector<8x128xf32>
    %181 = math.tanh %180 : vector<8x128xf32>
    %cst_59 = arith.constant 1.000000e+00 : f32
    %182 = vector.broadcast %cst_59 : f32 to vector<8x128xf32>
    %183 = arith.subf %182, %175 : vector<8x128xf32>
    %184 = arith.mulf %183, %181 : vector<8x128xf32>
    %185 = arith.mulf %175, %155 : vector<8x128xf32>
    %186 = arith.addf %184, %185 : vector<8x128xf32>
    %c0_60 = arith.constant 0 : index
    %c0_61 = arith.constant 0 : index
    %187 = vector.load %arg6[%c0_60, %c0_61] : memref<8x128xf32, #tpu.memory_space<vmem>>, vector<8x128xf32>
    tpu.vector_store %arg6[%c0_60, %c0_61], %186 {strides = array<i32>} : memref<8x128xf32, #tpu.memory_space<vmem>>, vector<8x128xf32>,
    %188 = arith.index_cast %c4_i32 : i32 to index
    %c0_62 = arith.constant 0 : index
    %c0_63 = arith.constant 0 : index
    %189 = vector.load %arg4[%188, %c0_62, %c0_63] : memref<8x8x128xf32, #tpu.memory_space<vmem>>, vector<1x8x128xf32>
    %190 = vector.shape_cast %189 : vector<1x8x128xf32> to vector<8x128xf32>
    %191 = vector.shape_cast %186 : vector<8x128xf32> to vector<1x8x128xf32>
    tpu.vector_store %arg4[%188, %c0_62, %c0_63], %191 {strides = array<i32>} : memref<8x8x128xf32, #tpu.memory_space<vmem>>, vector<1x8x128xf32>,
    %c5_i32 = arith.constant 5 : i32
    %c0_64 = arith.constant 0 : index
    %c0_65 = arith.constant 0 : index
    %192 = vector.load %arg6[%c0_64, %c0_65] : memref<8x128xf32, #tpu.memory_space<vmem>>, vector<8x128xf32>
    %193 = arith.index_cast %c5_i32 : i32 to index
    %c0_66 = arith.constant 0 : index
    %c0_67 = arith.constant 0 : index
    %194 = vector.load %arg1[%193, %c0_66, %c0_67] : memref<8x8x384xf32, #tpu.memory_space<vmem>>, vector<1x8x384xf32>
    %195 = vector.shape_cast %194 : vector<1x8x384xf32> to vector<8x384xf32>
    %cst_68 = arith.constant dense<0.000000e+00> : vector<8x384xf32>
    %196 = tpu.matmul %192, %3, %cst_68 {dimension_numbers = #tpu.dot_dimension_numbers<[1], [0], [0], [1], [0, 0, 1, 1], [], []>} : vector<8x128xf32>, vector<128x384xf32>, vector<8x384xf32> -> vector<8x384xf32>
    %197 = vector.extract_strided_slice %195 {offsets = [0, 0], sizes = [8, 128], strides = [1, 1]} : vector<8x384xf32> to vector<8x128xf32>
    %198 = vector.extract_strided_slice %196 {offsets = [0, 0], sizes = [8, 128], strides = [1, 1]} : vector<8x384xf32> to vector<8x128xf32>
    %199 = arith.addf %197, %198 : vector<8x128xf32>
    %200 = arith.negf %199 : vector<8x128xf32>
    %201 = math.exp %200 : vector<8x128xf32>
    %cst_69 = arith.constant 1.000000e+00 : f32
    %202 = vector.broadcast %cst_69 : f32 to vector<8x128xf32>
    %203 = arith.addf %202, %201 : vector<8x128xf32>
    %204 = arith.divf %202, %203 : vector<8x128xf32>
    %205 = vector.extract_strided_slice %195 {offsets = [0, 128], sizes = [8, 128], strides = [1, 1]} : vector<8x384xf32> to vector<8x128xf32>
    %206 = vector.extract_strided_slice %196 {offsets = [0, 128], sizes = [8, 128], strides = [1, 1]} : vector<8x384xf32> to vector<8x128xf32>
    %207 = arith.addf %205, %206 : vector<8x128xf32>
    %208 = arith.negf %207 : vector<8x128xf32>
    %209 = math.exp %208 : vector<8x128xf32>
    %cst_70 = arith.constant 1.000000e+00 : f32
    %210 = vector.broadcast %cst_70 : f32 to vector<8x128xf32>
    %211 = arith.addf %210, %209 : vector<8x128xf32>
    %212 = arith.divf %210, %211 : vector<8x128xf32>
    %213 = vector.extract_strided_slice %195 {offsets = [0, 256], sizes = [8, 128], strides = [1, 1]} : vector<8x384xf32> to vector<8x128xf32>
    %214 = vector.extract_strided_slice %196 {offsets = [0, 256], sizes = [8, 128], strides = [1, 1]} : vector<8x384xf32> to vector<8x128xf32>
    %215 = arith.addf %214, %6 : vector<8x128xf32>
    %216 = arith.mulf %204, %215 : vector<8x128xf32>
    %217 = arith.addf %213, %216 : vector<8x128xf32>
    %218 = math.tanh %217 : vector<8x128xf32>
    %cst_71 = arith.constant 1.000000e+00 : f32
    %219 = vector.broadcast %cst_71 : f32 to vector<8x128xf32>
    %220 = arith.subf %219, %212 : vector<8x128xf32>
    %221 = arith.mulf %220, %218 : vector<8x128xf32>
    %222 = arith.mulf %212, %192 : vector<8x128xf32>
    %223 = arith.addf %221, %222 : vector<8x128xf32>
    %c0_72 = arith.constant 0 : index
    %c0_73 = arith.constant 0 : index
    %224 = vector.load %arg6[%c0_72, %c0_73] : memref<8x128xf32, #tpu.memory_space<vmem>>, vector<8x128xf32>
    tpu.vector_store %arg6[%c0_72, %c0_73], %223 {strides = array<i32>} : memref<8x128xf32, #tpu.memory_space<vmem>>, vector<8x128xf32>,
    %225 = arith.index_cast %c5_i32 : i32 to index
    %c0_74 = arith.constant 0 : index
    %c0_75 = arith.constant 0 : index
    %226 = vector.load %arg4[%225, %c0_74, %c0_75] : memref<8x8x128xf32, #tpu.memory_space<vmem>>, vector<1x8x128xf32>
    %227 = vector.shape_cast %226 : vector<1x8x128xf32> to vector<8x128xf32>
    %228 = vector.shape_cast %223 : vector<8x128xf32> to vector<1x8x128xf32>
    tpu.vector_store %arg4[%225, %c0_74, %c0_75], %228 {strides = array<i32>} : memref<8x8x128xf32, #tpu.memory_space<vmem>>, vector<1x8x128xf32>,
    %c6_i32 = arith.constant 6 : i32
    %c0_76 = arith.constant 0 : index
    %c0_77 = arith.constant 0 : index
    %229 = vector.load %arg6[%c0_76, %c0_77] : memref<8x128xf32, #tpu.memory_space<vmem>>, vector<8x128xf32>
    %230 = arith.index_cast %c6_i32 : i32 to index
    %c0_78 = arith.constant 0 : index
    %c0_79 = arith.constant 0 : index
    %231 = vector.load %arg1[%230, %c0_78, %c0_79] : memref<8x8x384xf32, #tpu.memory_space<vmem>>, vector<1x8x384xf32>
    %232 = vector.shape_cast %231 : vector<1x8x384xf32> to vector<8x384xf32>
    %cst_80 = arith.constant dense<0.000000e+00> : vector<8x384xf32>
    %233 = tpu.matmul %229, %3, %cst_80 {dimension_numbers = #tpu.dot_dimension_numbers<[1], [0], [0], [1], [0, 0, 1, 1], [], []>} : vector<8x128xf32>, vector<128x384xf32>, vector<8x384xf32> -> vector<8x384xf32>
    %234 = vector.extract_strided_slice %232 {offsets = [0, 0], sizes = [8, 128], strides = [1, 1]} : vector<8x384xf32> to vector<8x128xf32>
    %235 = vector.extract_strided_slice %233 {offsets = [0, 0], sizes = [8, 128], strides = [1, 1]} : vector<8x384xf32> to vector<8x128xf32>
    %236 = arith.addf %234, %235 : vector<8x128xf32>
    %237 = arith.negf %236 : vector<8x128xf32>
    %238 = math.exp %237 : vector<8x128xf32>
    %cst_81 = arith.constant 1.000000e+00 : f32
    %239 = vector.broadcast %cst_81 : f32 to vector<8x128xf32>
    %240 = arith.addf %239, %238 : vector<8x128xf32>
    %241 = arith.divf %239, %240 : vector<8x128xf32>
    %242 = vector.extract_strided_slice %232 {offsets = [0, 128], sizes = [8, 128], strides = [1, 1]} : vector<8x384xf32> to vector<8x128xf32>
    %243 = vector.extract_strided_slice %233 {offsets = [0, 128], sizes = [8, 128], strides = [1, 1]} : vector<8x384xf32> to vector<8x128xf32>
    %244 = arith.addf %242, %243 : vector<8x128xf32>
    %245 = arith.negf %244 : vector<8x128xf32>
    %246 = math.exp %245 : vector<8x128xf32>
    %cst_82 = arith.constant 1.000000e+00 : f32
    %247 = vector.broadcast %cst_82 : f32 to vector<8x128xf32>
    %248 = arith.addf %247, %246 : vector<8x128xf32>
    %249 = arith.divf %247, %248 : vector<8x128xf32>
    %250 = vector.extract_strided_slice %232 {offsets = [0, 256], sizes = [8, 128], strides = [1, 1]} : vector<8x384xf32> to vector<8x128xf32>
    %251 = vector.extract_strided_slice %233 {offsets = [0, 256], sizes = [8, 128], strides = [1, 1]} : vector<8x384xf32> to vector<8x128xf32>
    %252 = arith.addf %251, %6 : vector<8x128xf32>
    %253 = arith.mulf %241, %252 : vector<8x128xf32>
    %254 = arith.addf %250, %253 : vector<8x128xf32>
    %255 = math.tanh %254 : vector<8x128xf32>
    %cst_83 = arith.constant 1.000000e+00 : f32
    %256 = vector.broadcast %cst_83 : f32 to vector<8x128xf32>
    %257 = arith.subf %256, %249 : vector<8x128xf32>
    %258 = arith.mulf %257, %255 : vector<8x128xf32>
    %259 = arith.mulf %249, %229 : vector<8x128xf32>
    %260 = arith.addf %258, %259 : vector<8x128xf32>
    %c0_84 = arith.constant 0 : index
    %c0_85 = arith.constant 0 : index
    %261 = vector.load %arg6[%c0_84, %c0_85] : memref<8x128xf32, #tpu.memory_space<vmem>>, vector<8x128xf32>
    tpu.vector_store %arg6[%c0_84, %c0_85], %260 {strides = array<i32>} : memref<8x128xf32, #tpu.memory_space<vmem>>, vector<8x128xf32>,
    %262 = arith.index_cast %c6_i32 : i32 to index
    %c0_86 = arith.constant 0 : index
    %c0_87 = arith.constant 0 : index
    %263 = vector.load %arg4[%262, %c0_86, %c0_87] : memref<8x8x128xf32, #tpu.memory_space<vmem>>, vector<1x8x128xf32>
    %264 = vector.shape_cast %263 : vector<1x8x128xf32> to vector<8x128xf32>
    %265 = vector.shape_cast %260 : vector<8x128xf32> to vector<1x8x128xf32>
    tpu.vector_store %arg4[%262, %c0_86, %c0_87], %265 {strides = array<i32>} : memref<8x8x128xf32, #tpu.memory_space<vmem>>, vector<1x8x128xf32>,
    %c7_i32 = arith.constant 7 : i32
    %c0_88 = arith.constant 0 : index
    %c0_89 = arith.constant 0 : index
    %266 = vector.load %arg6[%c0_88, %c0_89] : memref<8x128xf32, #tpu.memory_space<vmem>>, vector<8x128xf32>
    %267 = arith.index_cast %c7_i32 : i32 to index
    %c0_90 = arith.constant 0 : index
    %c0_91 = arith.constant 0 : index
    %268 = vector.load %arg1[%267, %c0_90, %c0_91] : memref<8x8x384xf32, #tpu.memory_space<vmem>>, vector<1x8x384xf32>
    %269 = vector.shape_cast %268 : vector<1x8x384xf32> to vector<8x384xf32>
    %cst_92 = arith.constant dense<0.000000e+00> : vector<8x384xf32>
    %270 = tpu.matmul %266, %3, %cst_92 {dimension_numbers = #tpu.dot_dimension_numbers<[1], [0], [0], [1], [0, 0, 1, 1], [], []>} : vector<8x128xf32>, vector<128x384xf32>, vector<8x384xf32> -> vector<8x384xf32>
    %271 = vector.extract_strided_slice %269 {offsets = [0, 0], sizes = [8, 128], strides = [1, 1]} : vector<8x384xf32> to vector<8x128xf32>
    %272 = vector.extract_strided_slice %270 {offsets = [0, 0], sizes = [8, 128], strides = [1, 1]} : vector<8x384xf32> to vector<8x128xf32>
    %273 = arith.addf %271, %272 : vector<8x128xf32>
    %274 = arith.negf %273 : vector<8x128xf32>
    %275 = math.exp %274 : vector<8x128xf32>
    %cst_93 = arith.constant 1.000000e+00 : f32
    %276 = vector.broadcast %cst_93 : f32 to vector<8x128xf32>
    %277 = arith.addf %276, %275 : vector<8x128xf32>
    %278 = arith.divf %276, %277 : vector<8x128xf32>
    %279 = vector.extract_strided_slice %269 {offsets = [0, 128], sizes = [8, 128], strides = [1, 1]} : vector<8x384xf32> to vector<8x128xf32>
    %280 = vector.extract_strided_slice %270 {offsets = [0, 128], sizes = [8, 128], strides = [1, 1]} : vector<8x384xf32> to vector<8x128xf32>
    %281 = arith.addf %279, %280 : vector<8x128xf32>
    %282 = arith.negf %281 : vector<8x128xf32>
    %283 = math.exp %282 : vector<8x128xf32>
    %cst_94 = arith.constant 1.000000e+00 : f32
    %284 = vector.broadcast %cst_94 : f32 to vector<8x128xf32>
    %285 = arith.addf %284, %283 : vector<8x128xf32>
    %286 = arith.divf %284, %285 : vector<8x128xf32>
    %287 = vector.extract_strided_slice %269 {offsets = [0, 256], sizes = [8, 128], strides = [1, 1]} : vector<8x384xf32> to vector<8x128xf32>
    %288 = vector.extract_strided_slice %270 {offsets = [0, 256], sizes = [8, 128], strides = [1, 1]} : vector<8x384xf32> to vector<8x128xf32>
    %289 = arith.addf %288, %6 : vector<8x128xf32>
    %290 = arith.mulf %278, %289 : vector<8x128xf32>
    %291 = arith.addf %287, %290 : vector<8x128xf32>
    %292 = math.tanh %291 : vector<8x128xf32>
    %cst_95 = arith.constant 1.000000e+00 : f32
    %293 = vector.broadcast %cst_95 : f32 to vector<8x128xf32>
    %294 = arith.subf %293, %286 : vector<8x128xf32>
    %295 = arith.mulf %294, %292 : vector<8x128xf32>
    %296 = arith.mulf %286, %266 : vector<8x128xf32>
    %297 = arith.addf %295, %296 : vector<8x128xf32>
    %c0_96 = arith.constant 0 : index
    %c0_97 = arith.constant 0 : index
    %298 = vector.load %arg6[%c0_96, %c0_97] : memref<8x128xf32, #tpu.memory_space<vmem>>, vector<8x128xf32>
    tpu.vector_store %arg6[%c0_96, %c0_97], %297 {strides = array<i32>} : memref<8x128xf32, #tpu.memory_space<vmem>>, vector<8x128xf32>,
    %299 = arith.index_cast %c7_i32 : i32 to index
    %c0_98 = arith.constant 0 : index
    %c0_99 = arith.constant 0 : index
    %300 = vector.load %arg4[%299, %c0_98, %c0_99] : memref<8x8x128xf32, #tpu.memory_space<vmem>>, vector<1x8x128xf32>
    %301 = vector.shape_cast %300 : vector<1x8x128xf32> to vector<8x128xf32>
    %302 = vector.shape_cast %297 : vector<8x128xf32> to vector<1x8x128xf32>
    tpu.vector_store %arg4[%299, %c0_98, %c0_99], %302 {strides = array<i32>} : memref<8x8x128xf32, #tpu.memory_space<vmem>>, vector<1x8x128xf32>,
    %c8_i32 = arith.constant 8 : i32
    %c0_i32_100 = arith.constant 0 : i32
    %303 = arith.cmpi eq, %arg0, %c0_i32_100 : i32
    %304 = arith.extui %303 : i1 to i32
    %c0_i32_101 = arith.constant 0 : i32
    %305 = arith.cmpi ne, %304, %c0_i32_101 : i32
    scf.if %305 {
      %c0_102 = arith.constant 0 : index
      %c0_103 = arith.constant 0 : index
      %306 = vector.load %arg6[%c0_102, %c0_103] : memref<8x128xf32, #tpu.memory_space<vmem>>, vector<8x128xf32>
      %c0_104 = arith.constant 0 : index
      %c0_105 = arith.constant 0 : index
      %307 = vector.load %arg5[%c0_104, %c0_105] : memref<8x128xf32, #tpu.memory_space<vmem>>, vector<8x128xf32>
      tpu.vector_store %arg5[%c0_104, %c0_105], %306 {strides = array<i32>} : memref<8x128xf32, #tpu.memory_space<vmem>>, vector<8x128xf32>,
    } else {
    }
    return
  }
  func.func @transform_0(%arg0: i32) -> (i32, i32, i32) {
    %c0_i32 = arith.constant 0 : i32
    %c0_i32_0 = arith.constant 0 : i32
    %c0_i32_1 = arith.constant 0 : i32
    return %arg0, %c0_i32, %c0_i32_0 : i32, i32, i32
  }
  func.func @transform_1(%arg0: i32) -> (i32, i32) {
    %c0_i32 = arith.constant 0 : i32
    %c0_i32_0 = arith.constant 0 : i32
    %c0_i32_1 = arith.constant 0 : i32
    return %c0_i32, %c0_i32_0 : i32, i32
  }
  func.func @transform_2(%arg0: i32) -> (i32, i32) {
    %c0_i32 = arith.constant 0 : i32
    %c0_i32_0 = arith.constant 0 : i32
    %c0_i32_1 = arith.constant 0 : i32
    return %c0_i32, %c0_i32_0 : i32, i32
  }
  func.func @transform_3(%arg0: i32) -> (i32, i32, i32) {
    %c0_i32 = arith.constant 0 : i32
    %c0_i32_0 = arith.constant 0 : i32
    %c0_i32_1 = arith.constant 0 : i32
    return %arg0, %c0_i32, %c0_i32_0 : i32, i32, i32
  }
  func.func @transform_4(%arg0: i32) -> (i32, i32) {
    %c0_i32 = arith.constant 0 : i32
    %c0_i32_0 = arith.constant 0 : i32
    %c0_i32_1 = arith.constant 0 : i32
    return %c0_i32, %c0_i32_0 : i32, i32
  }
}

module attributes {stable_mosaic.version = 11 : i64} {
  func.func @kernel(%arg0: i32, %arg1: memref<64x128xf32, #tpu.memory_space<vmem>>, %arg2: memref<128x512xf32, #tpu.memory_space<vmem>>, %arg3: memref<1x512xf32, #tpu.memory_space<vmem>>, %arg4: memref<64x128xf32, #tpu.memory_space<vmem>>) attributes {dimension_semantics = [#tpu.dimension_semantics<parallel>], iteration_bounds = array<i64: 1>, scalar_prefetch = 0 : i64, scratch_operands = 0 : i64, tpu.core_type = #tpu.core_type<tc>, window_params = [{transform_indices = @transform_0, window_bounds = array<i64: 64, 128>}, {pipeline_mode = #tpu.pipeline_mode<synchronous>, transform_indices = @transform_1, window_bounds = array<i64: 128, 512>}, {pipeline_mode = #tpu.pipeline_mode<synchronous>, transform_indices = @transform_2, window_bounds = array<i64: 1, 512>}, {transform_indices = @transform_3, window_bounds = array<i64: 64, 128>}]} {
    %c0 = arith.constant 0 : index
    %c0_0 = arith.constant 0 : index
    %0 = vector.load %arg1[%c0, %c0_0] : memref<64x128xf32, #tpu.memory_space<vmem>>, vector<64x128xf32>
    %c0_1 = arith.constant 0 : index
    %c0_2 = arith.constant 0 : index
    %1 = vector.load %arg2[%c0_1, %c0_2] : memref<128x512xf32, #tpu.memory_space<vmem>>, vector<128x512xf32>
    %cst = arith.constant dense<0.000000e+00> : vector<64x512xf32>
    %2 = tpu.matmul %0, %1, %cst {dimension_numbers = #tpu.dot_dimension_numbers<[1], [0], [0], [1], [0, 0, 1, 1], [], []>} : vector<64x128xf32>, vector<128x512xf32>, vector<64x512xf32> -> vector<64x512xf32>
    %c0_3 = arith.constant 0 : index
    %c0_4 = arith.constant 0 : index
    %3 = vector.load %arg3[%c0_3, %c0_4] : memref<1x512xf32, #tpu.memory_space<vmem>>, vector<1x512xf32>
    %4 = vector.broadcast %3 : vector<1x512xf32> to vector<64x512xf32>
    %5 = arith.addf %2, %4 : vector<64x512xf32>
    %6 = vector.extract_strided_slice %5 {offsets = [0, 0], sizes = [64, 128], strides = [1, 1]} : vector<64x512xf32> to vector<64x128xf32>
    %7 = arith.negf %6 : vector<64x128xf32>
    %8 = math.exp %7 : vector<64x128xf32>
    %cst_5 = arith.constant 1.000000e+00 : f32
    %9 = vector.broadcast %cst_5 : f32 to vector<64x128xf32>
    %10 = arith.addf %9, %8 : vector<64x128xf32>
    %11 = arith.divf %9, %10 : vector<64x128xf32>
    %12 = vector.extract_strided_slice %5 {offsets = [0, 128], sizes = [64, 128], strides = [1, 1]} : vector<64x512xf32> to vector<64x128xf32>
    %13 = arith.negf %12 : vector<64x128xf32>
    %14 = math.exp %13 : vector<64x128xf32>
    %cst_6 = arith.constant 1.000000e+00 : f32
    %15 = vector.broadcast %cst_6 : f32 to vector<64x128xf32>
    %16 = arith.addf %15, %14 : vector<64x128xf32>
    %17 = arith.divf %15, %16 : vector<64x128xf32>
    %18 = vector.extract_strided_slice %5 {offsets = [0, 256], sizes = [64, 128], strides = [1, 1]} : vector<64x512xf32> to vector<64x128xf32>
    %19 = vector.extract_strided_slice %5 {offsets = [0, 384], sizes = [64, 128], strides = [1, 1]} : vector<64x512xf32> to vector<64x128xf32>
    %20 = arith.mulf %11, %19 : vector<64x128xf32>
    %21 = arith.addf %18, %20 : vector<64x128xf32>
    %22 = math.tanh %21 : vector<64x128xf32>
    %cst_7 = arith.constant 1.000000e+00 : f32
    %23 = vector.broadcast %cst_7 : f32 to vector<64x128xf32>
    %24 = arith.subf %23, %17 : vector<64x128xf32>
    %25 = arith.mulf %24, %22 : vector<64x128xf32>
    %26 = arith.mulf %17, %0 : vector<64x128xf32>
    %27 = arith.addf %25, %26 : vector<64x128xf32>
    %c0_8 = arith.constant 0 : index
    %c0_9 = arith.constant 0 : index
    %28 = vector.load %arg4[%c0_8, %c0_9] : memref<64x128xf32, #tpu.memory_space<vmem>>, vector<64x128xf32>
    tpu.vector_store %arg4[%c0_8, %c0_9], %27 {strides = array<i32>} : memref<64x128xf32, #tpu.memory_space<vmem>>, vector<64x128xf32>,
    return
  }
  func.func @transform_0(%arg0: i32) -> (i32, i32) {
    %c0_i32 = arith.constant 0 : i32
    %c0_i32_0 = arith.constant 0 : i32
    return %arg0, %c0_i32 : i32, i32
  }
  func.func @transform_1(%arg0: i32) -> (i32, i32) {
    %c0_i32 = arith.constant 0 : i32
    %c0_i32_0 = arith.constant 0 : i32
    %c0_i32_1 = arith.constant 0 : i32
    return %c0_i32, %c0_i32_0 : i32, i32
  }
  func.func @transform_2(%arg0: i32) -> (i32, i32) {
    %c0_i32 = arith.constant 0 : i32
    %c0_i32_0 = arith.constant 0 : i32
    %c0_i32_1 = arith.constant 0 : i32
    return %c0_i32, %c0_i32_0 : i32, i32
  }
  func.func @transform_3(%arg0: i32) -> (i32, i32) {
    %c0_i32 = arith.constant 0 : i32
    %c0_i32_0 = arith.constant 0 : i32
    return %arg0, %c0_i32 : i32, i32
  }
}

module attributes {stable_mosaic.version = 11 : i64} {
  func.func @_matmul_bias_kernel(%arg0: i32, %arg1: i32, %arg2: i32, %arg3: memref<64x128xf32, #tpu.memory_space<vmem>>, %arg4: memref<128x128xf32, #tpu.memory_space<vmem>>, %arg5: memref<1x128xf32, #tpu.memory_space<vmem>>, %arg6: memref<64x128xf32, #tpu.memory_space<vmem>>, %arg7: memref<64x128xf32, #tpu.memory_space<vmem>>) attributes {dimension_semantics = [#tpu.dimension_semantics<parallel>, #tpu.dimension_semantics<parallel>, #tpu.dimension_semantics<arbitrary>], iteration_bounds = array<i64: 1, 1, 1>, scalar_prefetch = 0 : i64, scratch_operands = 1 : i64, tpu.core_type = #tpu.core_type<tc>, window_params = [{transform_indices = @transform_0, window_bounds = array<i64: 64, 128>}, {transform_indices = @transform_1, window_bounds = array<i64: 128, 128>}, {transform_indices = @transform_2, window_bounds = array<i64: 1, 128>}, {transform_indices = @transform_3, window_bounds = array<i64: 64, 128>}]} {
    %c0_i32 = arith.constant 0 : i32
    %0 = arith.cmpi eq, %arg2, %c0_i32 : i32
    %1 = arith.extui %0 : i1 to i32
    %c0_i32_0 = arith.constant 0 : i32
    %2 = arith.cmpi ne, %1, %c0_i32_0 : i32
    scf.if %2 {
      %cst_10 = arith.constant 0.000000e+00 : f32
      %12 = vector.broadcast %cst_10 : f32 to vector<64x128xf32>
      %c0_11 = arith.constant 0 : index
      %c0_12 = arith.constant 0 : index
      %13 = vector.load %arg7[%c0_11, %c0_12] : memref<64x128xf32, #tpu.memory_space<vmem>>, vector<64x128xf32>
      tpu.vector_store %arg7[%c0_11, %c0_12], %12 {strides = array<i32>} : memref<64x128xf32, #tpu.memory_space<vmem>>, vector<64x128xf32>,
    } else {
    }
    %c0 = arith.constant 0 : index
    %c0_1 = arith.constant 0 : index
    %3 = vector.load %arg7[%c0, %c0_1] : memref<64x128xf32, #tpu.memory_space<vmem>>, vector<64x128xf32>
    %c0_2 = arith.constant 0 : index
    %c0_3 = arith.constant 0 : index
    %4 = vector.load %arg3[%c0_2, %c0_3] : memref<64x128xf32, #tpu.memory_space<vmem>>, vector<64x128xf32>
    %c0_4 = arith.constant 0 : index
    %c0_5 = arith.constant 0 : index
    %5 = vector.load %arg4[%c0_4, %c0_5] : memref<128x128xf32, #tpu.memory_space<vmem>>, vector<128x128xf32>
    %cst = arith.constant dense<0.000000e+00> : vector<64x128xf32>
    %6 = tpu.matmul %4, %5, %cst {dimension_numbers = #tpu.dot_dimension_numbers<[1], [0], [0], [1], [0, 0, 1, 1], [], []>} : vector<64x128xf32>, vector<128x128xf32>, vector<64x128xf32> -> vector<64x128xf32>
    %7 = arith.addf %3, %6 : vector<64x128xf32>
    %c0_6 = arith.constant 0 : index
    %c0_7 = arith.constant 0 : index
    %8 = vector.load %arg7[%c0_6, %c0_7] : memref<64x128xf32, #tpu.memory_space<vmem>>, vector<64x128xf32>
    tpu.vector_store %arg7[%c0_6, %c0_7], %7 {strides = array<i32>} : memref<64x128xf32, #tpu.memory_space<vmem>>, vector<64x128xf32>,
    %c0_i32_8 = arith.constant 0 : i32
    %9 = arith.cmpi eq, %arg2, %c0_i32_8 : i32
    %10 = arith.extui %9 : i1 to i32
    %c0_i32_9 = arith.constant 0 : i32
    %11 = arith.cmpi ne, %10, %c0_i32_9 : i32
    scf.if %11 {
      %c0_10 = arith.constant 0 : index
      %c0_11 = arith.constant 0 : index
      %12 = vector.load %arg7[%c0_10, %c0_11] : memref<64x128xf32, #tpu.memory_space<vmem>>, vector<64x128xf32>
      %c0_12 = arith.constant 0 : index
      %c0_13 = arith.constant 0 : index
      %13 = vector.load %arg5[%c0_12, %c0_13] : memref<1x128xf32, #tpu.memory_space<vmem>>, vector<1x128xf32>
      %14 = vector.broadcast %13 : vector<1x128xf32> to vector<64x128xf32>
      %15 = arith.addf %12, %14 : vector<64x128xf32>
      %c0_14 = arith.constant 0 : index
      %c0_15 = arith.constant 0 : index
      %16 = vector.load %arg6[%c0_14, %c0_15] : memref<64x128xf32, #tpu.memory_space<vmem>>, vector<64x128xf32>
      tpu.vector_store %arg6[%c0_14, %c0_15], %15 {strides = array<i32>} : memref<64x128xf32, #tpu.memory_space<vmem>>, vector<64x128xf32>,
    } else {
    }
    return
  }
  func.func @transform_0(%arg0: i32, %arg1: i32, %arg2: i32) -> (i32, i32) {
    %c0_i32 = arith.constant 0 : i32
    return %arg0, %arg2 : i32, i32
  }
  func.func @transform_1(%arg0: i32, %arg1: i32, %arg2: i32) -> (i32, i32) {
    %c0_i32 = arith.constant 0 : i32
    return %arg2, %arg1 : i32, i32
  }
  func.func @transform_2(%arg0: i32, %arg1: i32, %arg2: i32) -> (i32, i32) {
    %c0_i32 = arith.constant 0 : i32
    %c0_i32_0 = arith.constant 0 : i32
    return %c0_i32, %arg1 : i32, i32
  }
  func.func @transform_3(%arg0: i32, %arg1: i32, %arg2: i32) -> (i32, i32) {
    %c0_i32 = arith.constant 0 : i32
    return %arg0, %arg1 : i32, i32
  }
}

</mosaic_0001>

<bundles_post_ra>
// kernel: gru_language_model_forward.4
= control target key start
LH: loop header
LB: loop body
LE: loop exit
PB: predicated region body
PF: predicated region fallthrough
CT: control target
= control target key end

     0   :  { %v617_v3 = vmov 0.0   ;;  %s909_s1 = inlined_call_operand.vmem [shape: f32[128,384], index: 1, kind: input, shape index: {}]   ;;  %s910_s0 = inlined_call_operand.vmem [shape: f32[64,128], index: 0, kind: input, shape index: {}]   ;;  %s911_s2 = inlined_call_operand.vmem [shape: f32[1,384], index: 2, kind: input, shape index: {}]   ;;  %s912_s3 = inlined_call_operand.vmem [shape: f32[64,384], index: 3, kind: output, shape index: {}]  }
   0x1   :  { %v75_v0 = vld [vmem:[%s909_s1 + $0x8] sm:$0xff]  ;;  %v78_v1 = vld [vmem:[%s909_s1 + $0x20] sm:$0xff]  ;;  %186 = vmatprep.mubr.f32.mxu0 %v617_v3  ;;  %v77_v5 = vld [vmem:[%s909_s1 + $0x18] sm:$0xff] }
   0x2   :  { %v74_v2 = vld [vmem:[%s909_s1] sm:$0xff]  ;;  %v552_v4 = vpack.c.bf16 %v78_v1, %v75_v0  ;;  %v81_v6 = vld [vmem:[%s909_s1 + $0x38] sm:$0xff]  ;;  %v84_v7 = vld [vmem:[%s909_s1 + $0x50] sm:$0xff] }
   0x3   :  { %v554_v8 = vpack.c.bf16 %v77_v5, %v74_v2  ;;  %v556_v9 = vpack.c.bf16 %v84_v7, %v81_v6  ;;  %v80_v10 = vld [vmem:[%s909_s1 + $0x30] sm:$0xff]  ;;  %v83_v11 = vld [vmem:[%s909_s1 + $0x48] sm:$0xff]  ;;  %v90_v13 = vld [vmem:[%s909_s1 + $0x80] sm:$0xff] }
   0x4   :  { %v87_v12 = vld [vmem:[%s909_s1 + $0x68] sm:$0xff]  ;;  %553 = vmatprep.subr.bf16.mxu0 %v552_v4  ;;  %v558_v14 = vpack.c.bf16 %v83_v11, %v80_v10  ;;  %v86_v15 = vld [vmem:[%s909_s1 + $0x60] sm:$0xff]  ;;  %v89_v17 = vld [vmem:[%s909_s1 + $0x78] sm:$0xff] }
   0x5   :  { %555 = vmatpush1.bf16.msra.mxu0 %v554_v8  ;;  %v560_v16 = vpack.c.bf16 %v90_v13, %v87_v12  ;;  %v76_v18 = vld [vmem:[%s909_s1 + $0x10] sm:$0xff]  ;;  %v79_v19 = vld [vmem:[%s909_s1 + $0x28] sm:$0xff]  ;;  %v93_v20 = vld [vmem:[%s909_s1 + $0x98] sm:$0xff]  ;;  %v562_v25 = vpack.c.bf16 %v89_v17, %v86_v15 }
   0x6   :  { %557 = vmatprep.subr.bf16.mxu0 %v556_v9  ;;  %v96_v21 = vld [vmem:[%s909_s1 + $0xb0] sm:$0xff]  ;;  %v584_v22 = vpack.c.bf16 %v79_v19, %v76_v18  ;;  %v82_v23 = vld [vmem:[%s909_s1 + $0x40] sm:$0xff]  ;;  %v85_v24 = vld [vmem:[%s909_s1 + $0x58] sm:$0xff]  ;;  %v417_v18 = vlaneseq }
   0x7   :  { %v92_v26 = vld [vmem:[%s909_s1 + $0x90] sm:$0xff]  ;;  %v588_v27 = vpack.c.bf16 %v85_v24, %v82_v23  ;;  %v564_v28 = vpack.c.bf16 %v96_v21, %v93_v20  ;;  %v95_v29 = vld [vmem:[%s909_s1 + $0xa8] sm:$0xff]  ;;  %v102_v33 = vld [vmem:[%s909_s1 + $0xe0] sm:$0xff] }
   0x8   :  { %585 = vmatprep.subr.bf16.mxu1 %v584_v22  ;;  %v88_v30 = vld [vmem:[%s909_s1 + $0x70] sm:$0xff]  ;;  %v91_v31 = vld [vmem:[%s909_s1 + $0x88] sm:$0xff]  ;;  %v94_v35 = vld [vmem:[%s909_s1 + $0xa0] sm:$0xff]  ;;  %v566_v37 = vpack.c.bf16 %v95_v29, %v92_v26  ;;  %v418_v19 = vshrl.u32 %v417_v18, 7 }
   0x9   :  { %559 = vmatpush1.bf16.msra.mxu0 %v558_v14  ;;  %587 = vmatpush3.bf16.msra.mxu1 %v584_v22  ;;  %v99_v32 = vld [vmem:[%s909_s1 + $0xc8] sm:$0xff]  ;;  %v592_v34 = vpack.c.bf16 %v91_v31, %v88_v30  ;;  %v97_v36 = vld [vmem:[%s909_s1 + $0xb8] sm:$0xff]  ;;  %v98_v39 = vld [vmem:[%s909_s1 + $0xc0] sm:$0xff] }
   0xa   :  { %561 = vmatprep.subr.bf16.mxu0 %v560_v16  ;;  %589 = vmatprep.subr.bf16.mxu1 %v588_v27  ;;  %v568_v38 = vpack.c.bf16 %v102_v33, %v99_v32  ;;  %v101_v40 = vld [vmem:[%s909_s1 + $0xd8] sm:$0xff]  ;;  %v108_v42 = vld [vmem:[%s909_s1 + $0x110] sm:$0xff]  ;;  %v596_v43 = vpack.c.bf16 %v97_v36, %v94_v35  ;;  %v66_v44 = vld [vmem:[%s910_s0] sm:$0xff]  ;;  %v419_v20 = vsub.s32 0, %v418_v19  ;;  %v423_v22 = vsub.s32 1, %v418_v19 }
   0xb   :  { %v105_v41 = vld [vmem:[%s909_s1 + $0xf8] sm:$0xff]  ;;  %v100_v45 = vld [vmem:[%s909_s1 + $0xd0] sm:$0xff]  ;;  %v103_v46 = vld [vmem:[%s909_s1 + $0xe8] sm:$0xff]  ;;  %540 = vmatprep.mubr.f32.mxu1 %v66_v44  ;;  %v570_v47 = vpack.c.bf16 %v101_v40, %v98_v39 }
   0xc   :  { %v572_v48 = vpack.c.bf16 %v108_v42, %v105_v41  ;;  %v104_v49 = vld [vmem:[%s909_s1 + $0xf0] sm:$0xff]  ;;  %v107_v50 = vld [vmem:[%s909_s1 + $0x108] sm:$0xff]  ;;  %v114_v52 = vld [vmem:[%s909_s1 + $0x140] sm:$0xff]  ;;  %v600_v53 = vpack.c.bf16 %v103_v46, %v100_v45 }
   0xd   :  { %563 = vmatpush1.bf16.msra.mxu0 %v562_v25  ;;  %591 = vmatpush3.bf16.msra.mxu1 %v588_v27  ;;  %v111_v51 = vld [vmem:[%s909_s1 + $0x128] sm:$0xff]  ;;  %v106_v54 = vld [vmem:[%s909_s1 + $0x100] sm:$0xff]  ;;  %v109_v55 = vld [vmem:[%s909_s1 + $0x118] sm:$0xff]  ;;  %v574_v56 = vpack.c.bf16 %v107_v50, %v104_v49  ;;  %v427_v25 = vsub.s32 2, %v418_v19 }
   0xe   :  { %565 = vmatprep.subr.bf16.mxu0 %v564_v28  ;;  %593 = vmatprep.subr.bf16.mxu1 %v592_v34  ;;  %v576_v57 = vpack.c.bf16 %v114_v52, %v111_v51  ;;  %v110_v58 = vld [vmem:[%s909_s1 + $0x120] sm:$0xff]  ;;  %v113_v59 = vld [vmem:[%s909_s1 + $0x138] sm:$0xff]  ;;  %v120_v61 = vld [vmem:[%s909_s1 + $0x170] sm:$0xff]  ;;  %v604_v62 = vpack.c.bf16 %v109_v55, %v106_v54 }
   0xf   :  { %v117_v60 = vld [vmem:[%s909_s1 + $0x158] sm:$0xff]  ;;  %v112_v63 = vld [vmem:[%s909_s1 + $0x130] sm:$0xff]  ;;  %v115_v0 = vld [vmem:[%s909_s1 + $0x148] sm:$0xff]  ;;  %v578_v1 = vpack.c.bf16 %v113_v59, %v110_v58 }
  0x10   :  { %v580_v2 = vpack.c.bf16 %v120_v61, %v117_v60  ;;  %v116_v4 = vld [vmem:[%s909_s1 + $0x150] sm:$0xff]  ;;  %v119_v5 = vld [vmem:[%s909_s1 + $0x168] sm:$0xff]  ;;  %v608_v6 = vpack.c.bf16 %v115_v0, %v112_v63  ;;  %v118_v7 = vld [vmem:[%s909_s1 + $0x160] sm:$0xff] }
  0x11   :  { %567 = vmatpush1.bf16.msra.mxu0 %v566_v37  ;;  %595 = vmatpush3.bf16.msra.mxu1 %v592_v34  ;;  %v121_v8 = vld [vmem:[%s909_s1 + $0x178] sm:$0xff]  ;;  %v582_v9 = vpack.c.bf16 %v119_v5, %v116_v4  ;;  %v67_v11 = vld [vmem:[%s910_s0 + $0x8] sm:$0xff]  ;;  %v68_v12 = vld [vmem:[%s910_s0 + $0x10] sm:$0xff] }
  0x12   :  { %569 = vmatprep.subr.bf16.mxu0 %v568_v38  ;;  %597 = vmatprep.subr.bf16.mxu1 %v596_v43  ;;  %v612_v10 = vpack.c.bf16 %v121_v8, %v118_v7  ;;  %v69_v13 = vld [vmem:[%s910_s0 + $0x18] sm:$0xff]  ;;  %v70_v14 = vld [vmem:[%s910_s0 + $0x20] sm:$0xff]  ;;  %v71_v15 = vld [vmem:[%s910_s0 + $0x28] sm:$0xff] }
  0x13   :  { %v72_v16 = vld [vmem:[%s910_s0 + $0x30] sm:$0xff]  ;;  %v73_v17 = vld [vmem:[%s910_s0 + $0x38] sm:$0xff]  ;;  %v415_v21 = vld [vmem:[%s911_s2] sm:$0x7] }
  0x14   :  { %v817_v23 = vrot.slane %v415_v21, %v419_v20  ;;  %v819_v24 = vrot.slane %v415_v21, %v423_v22  ;;  %v428_v29 = vrot.slane %v415_v21, %v427_v25 }
  0x15   :  { %571 = vmatpush1.bf16.msra.mxu0 %v570_v47  ;;  %599 = vmatpush3.bf16.msra.mxu1 %v596_v43 }
  0x16   :  { %573 = vmatprep.subr.bf16.mxu0 %v572_v48  ;;  %601 = vmatprep.subr.bf16.mxu1 %v600_v53 }
  0x19   :  { %575 = vmatpush1.bf16.msra.mxu0 %v574_v56  ;;  %603 = vmatpush3.bf16.msra.mxu1 %v600_v53 }
  0x1a   :  { %577 = vmatprep.subr.bf16.mxu0 %v576_v57  ;;  %605 = vmatprep.subr.bf16.mxu1 %v604_v62 }
  0x1d   :  { %579 = vmatpush1.bf16.msra.mxu0 %v578_v1  ;;  %607 = vmatpush3.bf16.msra.mxu1 %v604_v62 }
  0x1e   :  { %581 = vmatprep.subr.bf16.mxu0 %v580_v2  ;;  %609 = vmatprep.subr.bf16.mxu1 %v608_v6 }
  0x21   :  { %583 = vmatpush1.bf16.msra.mxu0 %v582_v9  ;;  %611 = vmatpush3.bf16.msra.mxu1 %v608_v6 }
  0x22   :  { %613 = vmatprep.subr.bf16.mxu1 %v612_v10 }
  0x24   :  { %187 = vmatmul.mubr.f32.vlgmr.msra.gmra.mrb[0].mxu0 %v66_v44 }
  0x25   :  { %192 = vmatprep.mubr.f32.mxu0 %v617_v3  ;;  %615 = vmatpush3.bf16.msra.mxu1 %v612_v10 }
  0x28   :  { %193 = vmatmul.mubr.f32.gmra.mrb[2].mxu0 %v67_v11  ;;  %541 = vmatmul.mubr.f32.vlgmr.msra.gmra.mrb[0].mxu1 %v67_v11 }
  0x29   :  { %198 = vmatprep.mubr.f32.mxu0 %v617_v3  ;;  %543 = vmatprep.mubr.f32.mxu1 %v68_v12 }
  0x2c   :  { %199 = vmatmul.mubr.f32.gmra.mrb[4].mxu0 %v68_v12  ;;  %544 = vmatmul.mubr.f32.gmra.mrb[2].mxu1 %v69_v13 }
  0x2d   :  { %204 = vmatprep.mubr.f32.mxu0 %v617_v3  ;;  %546 = vmatprep.mubr.f32.mxu1 %v70_v14 }
  0x30   :  { %205 = vmatmul.mubr.f32.gmra.mrb[6].mxu0 %v69_v13  ;;  %547 = vmatmul.mubr.f32.gmra.mrb[4].mxu1 %v71_v15 }
  0x31   :  { %210 = vmatprep.mubr.f32.mxu0 %v617_v3  ;;  %549 = vmatprep.mubr.f32.mxu1 %v72_v16 }
  0x34   :  { %211 = vmatmul.mubr.f32.gmra.mrb[8].mxu0 %v70_v14  ;;  %550 = vmatmul.mubr.f32.gmra.mrb[6].mxu1 %v73_v17 }
  0x35   :  { %216 = vmatprep.mubr.f32.mxu0 %v617_v3 }
  0x38   :  { %217 = vmatmul.mubr.f32.gmra.mrb[10].mxu0 %v71_v15 }
  0x39   :  { %222 = vmatprep.mubr.f32.mxu0 %v617_v3 }
  0x3c   :  { %223 = vmatmul.mubr.f32.gmra.mrb[12].mxu0 %v72_v16 }
  0x3d   :  { %228 = vmatprep.mubr.f32.mxu0 %v617_v3 }
  0x40   :  { %229 = vmatmul.mubr.f32.gmra.mrb[14].mxu0 %v73_v17 }
  0xf7   :  { %v188_v26 = vpop.f32.mrb[0].mxu0 }
  0xf8   :  { %v432_v27 = vadd.f32 %v817_v23, %v188_v26  ;;  %v190_v28 = vpop.f32.mrb[1].mxu0 }
  0xf9   :  { %v433_v3 = vadd.f32 %v819_v24, %v190_v28 }
  0xfa   :  { %456 = vst [vmem:[%s912_s3] sm:$0xff] %v432_v27 }
  0xfb   :  { %457 = vst [vmem:[%s912_s3 + $0x8] sm:$0xff] %v433_v3  ;;  %v194_v30 = vpop.f32.mrb[2].mxu0  ;;  %v542_v33 = vpop.f32.mrb[0].mxu1 }
  0xfc   :  { %v435_v31 = vadd.f32 %v817_v23, %v194_v30  ;;  %v196_v32 = vpop.f32.mrb[3].mxu0  ;;  %v437_v35 = vadd.f32 %v542_v33, %v428_v29  ;;  %v301_v36 = vpop.f32.mrb[1].mxu1 }
  0xfd   :  { %v436_v34 = vadd.f32 %v819_v24, %v196_v32  ;;  %v434_v37 = vadd.f32 %v428_v29, %v301_v36 }
  0xfe   :  { %459 = vst [vmem:[%s912_s3 + $0x18] sm:$0xff] %v435_v31  ;;  %461 = vst [vmem:[%s912_s3 + $0x28] sm:$0xff] %v437_v35 }
  0xff   :  { %460 = vst [vmem:[%s912_s3 + $0x20] sm:$0xff] %v436_v34  ;;  %v200_v38 = vpop.f32.mrb[4].mxu0  ;;  %458 = vst [vmem:[%s912_s3 + $0x10] sm:$0xff] %v434_v37  ;;  %v545_v41 = vpop.f32.mrb[2].mxu1 }
 0x100   :  { %v438_v39 = vadd.f32 %v817_v23, %v200_v38  ;;  %v202_v40 = vpop.f32.mrb[5].mxu0  ;;  %v443_v43 = vadd.f32 %v545_v41, %v428_v29  ;;  %v311_v44 = vpop.f32.mrb[3].mxu1 }
 0x101   :  { %v439_v42 = vadd.f32 %v819_v24, %v202_v40  ;;  %v440_v45 = vadd.f32 %v428_v29, %v311_v44 }
 0x102   :  { %462 = vst [vmem:[%s912_s3 + $0x30] sm:$0xff] %v438_v39  ;;  %467 = vst [vmem:[%s912_s3 + $0x58] sm:$0xff] %v443_v43 }
 0x103   :  { %463 = vst [vmem:[%s912_s3 + $0x38] sm:$0xff] %v439_v42  ;;  %v206_v46 = vpop.f32.mrb[6].mxu0  ;;  %464 = vst [vmem:[%s912_s3 + $0x40] sm:$0xff] %v440_v45  ;;  %v548_v49 = vpop.f32.mrb[4].mxu1 }
 0x104   :  { %v441_v47 = vadd.f32 %v817_v23, %v206_v46  ;;  %v208_v48 = vpop.f32.mrb[7].mxu0  ;;  %v449_v51 = vadd.f32 %v548_v49, %v428_v29  ;;  %v321_v52 = vpop.f32.mrb[5].mxu1 }
 0x105   :  { %v442_v50 = vadd.f32 %v819_v24, %v208_v48  ;;  %v446_v53 = vadd.f32 %v428_v29, %v321_v52 }
 0x106   :  { %465 = vst [vmem:[%s912_s3 + $0x48] sm:$0xff] %v441_v47  ;;  %473 = vst [vmem:[%s912_s3 + $0x88] sm:$0xff] %v449_v51 }
 0x107   :  { %466 = vst [vmem:[%s912_s3 + $0x50] sm:$0xff] %v442_v50  ;;  %v212_v54 = vpop.f32.mrb[8].mxu0  ;;  %470 = vst [vmem:[%s912_s3 + $0x70] sm:$0xff] %v446_v53  ;;  %v551_v57 = vpop.f32.mrb[6].mxu1 }
 0x108   :  { %v444_v55 = vadd.f32 %v817_v23, %v212_v54  ;;  %v214_v56 = vpop.f32.mrb[9].mxu0  ;;  %v455_v59 = vadd.f32 %v551_v57, %v428_v29  ;;  %v331_v60 = vpop.f32.mrb[7].mxu1 }
 0x109   :  { %v445_v58 = vadd.f32 %v819_v24, %v214_v56  ;;  %v452_v61 = vadd.f32 %v428_v29, %v331_v60 }
 0x10a   :  { %468 = vst [vmem:[%s912_s3 + $0x60] sm:$0xff] %v444_v55  ;;  %479 = vst [vmem:[%s912_s3 + $0xb8] sm:$0xff] %v455_v59 }
 0x10b   :  { %469 = vst [vmem:[%s912_s3 + $0x68] sm:$0xff] %v445_v58  ;;  %v218_v62 = vpop.f32.mrb[10].mxu0  ;;  %476 = vst [vmem:[%s912_s3 + $0xa0] sm:$0xff] %v452_v61 }
 0x10c   :  { %v447_v63 = vadd.f32 %v817_v23, %v218_v62  ;;  %v220_v0 = vpop.f32.mrb[11].mxu0 }
 0x10d   :  { %v448_v1 = vadd.f32 %v819_v24, %v220_v0 }
 0x10e   :  { %471 = vst [vmem:[%s912_s3 + $0x78] sm:$0xff] %v447_v63 }
 0x10f   :  { %472 = vst [vmem:[%s912_s3 + $0x80] sm:$0xff] %v448_v1  ;;  %v224_v2 = vpop.f32.mrb[12].mxu0 }
 0x110   :  { %v450_v4 = vadd.f32 %v817_v23, %v224_v2  ;;  %v226_v5 = vpop.f32.mrb[13].mxu0 }
 0x111   :  { %v451_v6 = vadd.f32 %v819_v24, %v226_v5 }
 0x112   :  { %474 = vst [vmem:[%s912_s3 + $0x90] sm:$0xff] %v450_v4 }
 0x113   :  { %475 = vst [vmem:[%s912_s3 + $0x98] sm:$0xff] %v451_v6  ;;  %v230_v7 = vpop.f32.mrb[14].mxu0 }
 0x114   :  { %v453_v8 = vadd.f32 %v817_v23, %v230_v7  ;;  %v232_v9 = vpop.f32.mrb[15].mxu0 }
 0x115   :  { %v454_v10 = vadd.f32 %v819_v24, %v232_v9 }
 0x116   :  { %477 = vst [vmem:[%s912_s3 + $0xa8] sm:$0xff] %v453_v8 }
 0x117   :  { %478 = vst [vmem:[%s912_s3 + $0xb0] sm:$0xff] %v454_v10 }

// kernel: gru_language_model_forward.5
= control target key start
LH: loop header
LB: loop body
LE: loop exit
PB: predicated region body
PF: predicated region fallthrough
CT: control target
= control target key end

     0   :  { %v2447_v3 = vmov 0.0|0.0   ;;  %v2448_v4 = vmov 0.0   ;;  %vm2449_vm0 = vmmov 0   ;;  %s3097_s1 = inlined_call_operand.vmem [shape: f32[128,384], index: 1, kind: input, shape index: {}]   ;;  %s3098_s0 = inlined_call_operand.vmem [shape: f32[8,8,384], index: 0, kind: input, shape index: {}]   ;;  %s3099_s2 = inlined_call_operand.vmem [shape: f32[1,128], index: 2, kind: input, shape index: {}]   ;;  %s3100_s3 = inlined_call_operand.vmem [shape: f32[8,8,128], index: 3, kind: output, shape index: {0}]   ;;  %s3101_s4 = inlined_call_operand.vmem [shape: f32[8,128], index: 4, kind: output, shape index: {1}]  }
   0x1   :  { %v22_v0 = vld [vmem:[%s3097_s1 + $0x8] sm:$0xff]  ;;  %v25_v1 = vld [vmem:[%s3097_s1 + $0x20] sm:$0xff]  ;;  %1948 = vmatprep.subr.bf16.mxu1 %v2447_v3  ;;  %144 = vmatprep.mubr.f32.mxu0 %v2448_v4  ;;  %v24_v6 = vld [vmem:[%s3097_s1 + $0x18] sm:$0xff] }
   0x2   :  { %v21_v2 = vld [vmem:[%s3097_s1] sm:$0xff]  ;;  %v2486_v5 = vpack.c.bf16 %v25_v1, %v22_v0  ;;  %v28_v7 = vld [vmem:[%s3097_s1 + $0x38] sm:$0xff]  ;;  %v31_v8 = vld [vmem:[%s3097_s1 + $0x50] sm:$0xff]  ;;  %1668 = vmatprep.mubr.msk.f32.mxu1 %vm2449_vm0, %v2448_v4 }
   0x3   :  { %v2499_v9 = vpack.c.bf16 %v24_v6, %v21_v2  ;;  %v2501_v10 = vpack.c.bf16 %v31_v8, %v28_v7  ;;  %v27_v11 = vld [vmem:[%s3097_s1 + $0x30] sm:$0xff]  ;;  %v30_v12 = vld [vmem:[%s3097_s1 + $0x48] sm:$0xff]  ;;  %v37_v14 = vld [vmem:[%s3097_s1 + $0x80] sm:$0xff] }
   0x4   :  { %v34_v13 = vld [vmem:[%s3097_s1 + $0x68] sm:$0xff]  ;;  %1917 = vmatprep.subr.bf16.mxu0 %v2486_v5  ;;  %v2517_v15 = vpack.c.bf16 %v30_v12, %v27_v11  ;;  %v33_v17 = vld [vmem:[%s3097_s1 + $0x60] sm:$0xff]  ;;  %v36_v18 = vld [vmem:[%s3097_s1 + $0x78] sm:$0xff] }
   0x5   :  { %1919 = vmatpush1.bf16.msra.mxu0 %v2499_v9  ;;  %v2520_v16 = vpack.c.bf16 %v37_v14, %v34_v13  ;;  %v40_v19 = vld [vmem:[%s3097_s1 + $0x98] sm:$0xff]  ;;  %v43_v20 = vld [vmem:[%s3097_s1 + $0xb0] sm:$0xff]  ;;  %v2535_v21 = vpack.c.bf16 %v36_v18, %v33_v17  ;;  %v42_v24 = vld [vmem:[%s3097_s1 + $0xa8] sm:$0xff] }
   0x6   :  { %1921 = vmatprep.subr.bf16.mxu0 %v2501_v10  ;;  %v39_v22 = vld [vmem:[%s3097_s1 + $0x90] sm:$0xff]  ;;  %v2541_v23 = vpack.c.bf16 %v43_v20, %v40_v19  ;;  %v26_v26 = vld [vmem:[%s3097_s1 + $0x28] sm:$0xff]  ;;  %v49_v28 = vld [vmem:[%s3097_s1 + $0xe0] sm:$0xff] }
   0x7   :  { %v23_v25 = vld [vmem:[%s3097_s1 + $0x10] sm:$0xff]  ;;  %v46_v27 = vld [vmem:[%s3097_s1 + $0xc8] sm:$0xff]  ;;  %v29_v30 = vld [vmem:[%s3097_s1 + $0x40] sm:$0xff]  ;;  %v2567_v32 = vpack.c.bf16 %v42_v24, %v39_v22 }
   0x8   :  { %v2558_v29 = vpack.c.bf16 %v26_v26, %v23_v25  ;;  %v32_v31 = vld [vmem:[%s3097_s1 + $0x58] sm:$0xff]  ;;  %v45_v33 = vld [vmem:[%s3097_s1 + $0xc0] sm:$0xff]  ;;  %v2576_v35 = vpack.c.bf16 %v49_v28, %v46_v27  ;;  %v35_v37 = vld [vmem:[%s3097_s1 + $0x70] sm:$0xff] }
   0x9   :  { %1923 = vmatpush1.bf16.msra.mxu0 %v2517_v15  ;;  %v2573_v34 = vpack.c.bf16 %v32_v31, %v29_v30  ;;  %v48_v36 = vld [vmem:[%s3097_s1 + $0xd8] sm:$0xff]  ;;  %v38_v38 = vld [vmem:[%s3097_s1 + $0x88] sm:$0xff]  ;;  %v55_v40 = vld [vmem:[%s3097_s1 + $0x110] sm:$0xff] }
   0xa   :  { %1925 = vmatprep.subr.bf16.mxu0 %v2520_v16  ;;  %1950 = vmatpush3.bf16.msra.mxu1 %v2558_v29  ;;  %v52_v39 = vld [vmem:[%s3097_s1 + $0xf8] sm:$0xff]  ;;  %v2595_v41 = vpack.c.bf16 %v48_v36, %v45_v33  ;;  %v51_v42 = vld [vmem:[%s3097_s1 + $0xf0] sm:$0xff]  ;;  %v2601_v43 = vpack.c.bf16 %v38_v38, %v35_v37  ;;  %v54_v45 = vld [vmem:[%s3097_s1 + $0x108] sm:$0xff] }
   0xb   :  { %1951 = vmatprep.subr.bf16.mxu1 %v2447_v3  ;;  %v2604_v44 = vpack.c.bf16 %v55_v40, %v52_v39  ;;  %v41_v46 = vld [vmem:[%s3097_s1 + $0xa0] sm:$0xff]  ;;  %v44_v47 = vld [vmem:[%s3097_s1 + $0xb8] sm:$0xff]  ;;  %v58_v48 = vld [vmem:[%s3097_s1 + $0x128] sm:$0xff]  ;;  %v2623_v50 = vpack.c.bf16 %v54_v45, %v51_v42 }
   0xc   :  { %v61_v49 = vld [vmem:[%s3097_s1 + $0x140] sm:$0xff]  ;;  %v2629_v52 = vpack.c.bf16 %v44_v47, %v41_v46  ;;  %v60_v54 = vld [vmem:[%s3097_s1 + $0x138] sm:$0xff]  ;;  %v47_v55 = vld [vmem:[%s3097_s1 + $0xd0] sm:$0xff] }
   0xd   :  { %1927 = vmatpush1.bf16.msra.mxu0 %v2535_v21  ;;  %v57_v51 = vld [vmem:[%s3097_s1 + $0x120] sm:$0xff]  ;;  %v2632_v53 = vpack.c.bf16 %v61_v49, %v58_v48  ;;  %v50_v56 = vld [vmem:[%s3097_s1 + $0xe8] sm:$0xff]  ;;  %v64_v57 = vld [vmem:[%s3097_s1 + $0x158] sm:$0xff] }
   0xe   :  { %1929 = vmatprep.subr.bf16.mxu0 %v2541_v23  ;;  %1953 = vmatpush3.bf16.msra.mxu1 %v2573_v34  ;;  %v67_v58 = vld [vmem:[%s3097_s1 + $0x170] sm:$0xff]  ;;  %v2651_v59 = vpack.c.bf16 %v60_v54, %v57_v51  ;;  %v2657_v61 = vpack.c.bf16 %v50_v56, %v47_v55  ;;  %v66_v63 = vld [vmem:[%s3097_s1 + $0x168] sm:$0xff]  ;;  %v53_v0 = vld [vmem:[%s3097_s1 + $0x100] sm:$0xff] }
   0xf   :  { %1954 = vmatprep.subr.bf16.mxu1 %v2447_v3  ;;  %v63_v60 = vld [vmem:[%s3097_s1 + $0x150] sm:$0xff]  ;;  %v2660_v62 = vpack.c.bf16 %v67_v58, %v64_v57  ;;  %v56_v1 = vld [vmem:[%s3097_s1 + $0x118] sm:$0xff]  ;;  %v62_v8 = vld [vmem:[%s3097_s1 + $0x148] sm:$0xff] }
  0x10   :  { %v2673_v2 = vpack.c.bf16 %v66_v63, %v63_v60  ;;  %v2676_v6 = vpack.c.bf16 %v56_v1, %v53_v0  ;;  %v59_v7 = vld [vmem:[%s3097_s1 + $0x130] sm:$0xff]  ;;  %v65_v12 = vld [vmem:[%s3097_s1 + $0x160] sm:$0xff]  ;;  %v68_v13 = vld [vmem:[%s3097_s1 + $0x178] sm:$0xff] }
  0x11   :  { %1931 = vmatpush1.bf16.msra.mxu0 %v2567_v32  ;;  %v2688_v11 = vpack.c.bf16 %v62_v8, %v59_v7  ;;  %v2700_v14 = vpack.c.bf16 %v68_v13, %v65_v12  ;;  %v77_v17 = vld [vmem:[%s3098_s0] sm:$0xff]  ;;  %v78_v20 = vld [vmem:[%s3098_s0 + $0x8] sm:$0xff]  ;;  %v79_v40 = vld [vmem:[%s3098_s0 + $0x10] sm:$0xff] }
  0x12   :  { %1933 = vmatprep.subr.bf16.mxu0 %v2576_v35  ;;  %1956 = vmatpush3.bf16.msra.mxu1 %v2601_v43  ;;  %v2750_v36 = vld [vmem:[%s3099_s2] ss:$0 sm:$0xff]  ;;  %v1458_v55 = vld [vmem:[%s3098_s0 + $0x18] sm:$0xff] }
  0x13   :  { %1957 = vmatprep.subr.bf16.mxu1 %v2447_v3  ;;  %v1459_v60 = vld [vmem:[%s3098_s0 + $0x20] sm:$0xff] }
  0x15   :  { %1935 = vmatpush1.bf16.msra.mxu0 %v2595_v41 }
  0x16   :  { %1937 = vmatprep.subr.bf16.mxu0 %v2604_v44  ;;  %1959 = vmatpush3.bf16.msra.mxu1 %v2629_v52 }
  0x17   :  { %1960 = vmatprep.subr.bf16.mxu1 %v2447_v3 }
  0x19   :  { %1939 = vmatpush1.bf16.msra.mxu0 %v2623_v50 }
  0x1a   :  { %1941 = vmatprep.subr.bf16.mxu0 %v2632_v53  ;;  %1962 = vmatpush3.bf16.msra.mxu1 %v2657_v61 }
  0x1b   :  { %1963 = vmatprep.subr.bf16.mxu1 %v2447_v3 }
  0x1d   :  { %1943 = vmatpush1.bf16.msra.mxu0 %v2651_v59 }
  0x1e   :  { %1945 = vmatprep.subr.bf16.mxu0 %v2660_v62  ;;  %1965 = vmatpush3.bf16.msra.mxu1 %v2676_v6 }
  0x1f   :  { %1966 = vmatprep.subr.bf16.mxu1 %v2447_v3 }
  0x21   :  { %1947 = vmatpush1.bf16.msra.mxu0 %v2673_v2 }
  0x22   :  { %1973 = vmatprep.subr.bf16.mxu0 %v2486_v5  ;;  %1968 = vmatpush3.bf16.msra.mxu1 %v2688_v11 }
  0x23   :  { %1969 = vmatprep.subr.bf16.mxu1 %v2447_v3 }
  0x24   :  { %145 = vmatmul.mubr.f32.vlgmr.msra.gmra.mrb[0].mxu0 %v2448_v4 }
  0x25   :  { %1975 = vmatpush1.bf16.msra.mxu0 %v2499_v9  ;;  %314 = vmatprep.mubr.f32.mxu0 %v2448_v4 }
  0x26   :  { %1977 = vmatprep.subr.bf16.mxu0 %v2501_v10  ;;  %1971 = vmatpush3.bf16.msra.mxu1 %v2700_v14 }
  0x27   :  { %2004 = vmatprep.subr.bf16.mxu1 %v2447_v3 }
  0x29   :  { %1979 = vmatpush1.bf16.msra.mxu0 %v2517_v15  ;;  %1669 = vmatmul.mubr.f32.vlgmr.msra.gmra.mrb[0].mxu1 %v2448_v4 }
  0x2a   :  { %1981 = vmatprep.subr.bf16.mxu0 %v2520_v16  ;;  %2006 = vmatpush3.bf16.msra.mxu1 %v2558_v29 }
  0x2b   :  { %2007 = vmatprep.subr.bf16.mxu1 %v2447_v3  ;;  %1703 = vmatprep.mubr.msk.f32.mxu1 %vm2449_vm0, %v2448_v4 }
  0x2d   :  { %1983 = vmatpush1.bf16.msra.mxu0 %v2535_v21 }
  0x2e   :  { %1985 = vmatprep.subr.bf16.mxu0 %v2541_v23  ;;  %2009 = vmatpush3.bf16.msra.mxu1 %v2573_v34 }
  0x2f   :  { %2010 = vmatprep.subr.bf16.mxu1 %v2447_v3 }
  0x31   :  { %1987 = vmatpush1.bf16.msra.mxu0 %v2567_v32 }
  0x32   :  { %1989 = vmatprep.subr.bf16.mxu0 %v2576_v35  ;;  %2012 = vmatpush3.bf16.msra.mxu1 %v2601_v43 }
  0x33   :  { %2013 = vmatprep.subr.bf16.mxu1 %v2447_v3 }
  0x35   :  { %1991 = vmatpush1.bf16.msra.mxu0 %v2595_v41 }
  0x36   :  { %1993 = vmatprep.subr.bf16.mxu0 %v2604_v44  ;;  %2015 = vmatpush3.bf16.msra.mxu1 %v2629_v52 }
  0x37   :  { %2016 = vmatprep.subr.bf16.mxu1 %v2447_v3 }
  0x39   :  { %1995 = vmatpush1.bf16.msra.mxu0 %v2623_v50 }
  0x3a   :  { %1997 = vmatprep.subr.bf16.mxu0 %v2632_v53  ;;  %2018 = vmatpush3.bf16.msra.mxu1 %v2657_v61 }
  0x3b   :  { %2019 = vmatprep.subr.bf16.mxu1 %v2447_v3 }
  0x3d   :  { %1999 = vmatpush1.bf16.msra.mxu0 %v2651_v59 }
  0x3e   :  { %2001 = vmatprep.subr.bf16.mxu0 %v2660_v62  ;;  %2021 = vmatpush3.bf16.msra.mxu1 %v2676_v6 }
  0x3f   :  { %2022 = vmatprep.subr.bf16.mxu1 %v2447_v3 }
  0x41   :  { %2003 = vmatpush1.bf16.msra.mxu0 %v2673_v2 }
  0x42   :  { %2029 = vmatprep.subr.bf16.mxu0 %v2486_v5  ;;  %2024 = vmatpush3.bf16.msra.mxu1 %v2688_v11 }
  0x43   :  { %2025 = vmatprep.subr.bf16.mxu1 %v2447_v3 }
  0x46   :  { %2027 = vmatpush3.bf16.msra.mxu1 %v2700_v14 }
  0x47   :  { %2060 = vmatprep.subr.bf16.mxu1 %v2447_v3 }
  0xf7   :  { %v146_v18 = vpop.f32.mrb[0].mxu0 }
  0xf8   :  { %v221_v19 = vadd.f32 %v146_v18, %v77_v17  ;;  %v148_v22 = vpop.f32.mrb[1].mxu0 }
  0xf9   :  { %v228_v25 = vadd.f32 %v148_v22, %v78_v20  ;;  %v1460_v22 = vld [vmem:[%s3098_s0 + $0x28] sm:$0xff] }
  0xfa   :  { %v1456_v24 = vmul.f32 -1.442695, %v221_v19 }
  0xfb   :  { %v1457_v26 = vmul.f32 -1.442695, %v228_v25 }
  0xfc   :  { %2367 = vpow2.f32 %v1456_v24  ;;  %v217_v27 = vpop.f32.mrb[0].mxu1 }
  0xfd   :  { %v1670_v28 = vpop.f32.mrb[1].mxu1  ;;  %2369 = vpow2.f32 %v1457_v26  ;;  %v235_v38 = vadd.f32 %v2750_v36, %v217_v27 }
 0x106   :  { %v2368_v30 = vpop.eup %2367 }
 0x107   :  { %v225_v31 = vadd.f32 1.0, %v2368_v30  ;;  %v2370_v33 = vpop.eup %2369 }
 0x108   :  { %v232_v37 = vadd.f32 1.0, %v2370_v33 }
 0x109   :  { %2371 = vrcp.f32 %v225_v31 }
 0x10a   :  { %2373 = vrcp.f32 %v232_v37  ;;  %v1464_v37 = vld [vmem:[%s3098_s0 + $0x30] sm:$0xff] }
 0x113   :  { %v2372_v39 = vpop.eup %2371 }
 0x114   :  { %v236_v42 = vmul.f32 %v2372_v39, %v235_v38  ;;  %v2374_v46 = vpop.eup %2373 }
 0x115   :  { %v239_v47 = vsub.f32 1.0, %v2374_v46  ;;  %v241_v51 = vmul.f32 0.0, %v2374_v46 }
 0x116   :  { %v237_v45 = vadd.f32 %v236_v42, %v79_v40  ;;  %v1465_v42 = vld [vmem:[%s3098_s0 + $0x38] sm:$0xff] }
 0x118   :  { %2375 = vtanh.f32 %v237_v45 }
 0x122   :  { %v2376_v48 = vpop.eup %2375 }
 0x123   :  { %v240_v49 = vmul.f32 %v2376_v48, %v239_v47 }
 0x125   :  { %v2756_v54 = vadd.f32 %v241_v51, %v240_v49 }
 0x127   :  { %244 = vst [vmem:[%s3100_s3] sm:$0xff] %v2756_v54  ;;  %315 = vmatmul.mubr.f32.vlgmr.msra.gmra.mrb[2].mxu0 %v2756_v54  ;;  %1704 = vmatmul.mubr.f32.vlgmr.msra.gmra.mrb[2].mxu1 %v2756_v54 }
 0x128   :  { %2031 = vmatpush1.bf16.msra.mxu0 %v2499_v9  ;;  %2062 = vmatpush3.bf16.msra.mxu1 %v2558_v29 }
 0x129   :  { %2033 = vmatprep.subr.bf16.mxu0 %v2501_v10  ;;  %2063 = vmatprep.subr.bf16.mxu1 %v2447_v3 }
 0x12a   :  { %485 = vmatprep.mubr.f32.mxu0 %v2448_v4  ;;  %1738 = vmatprep.mubr.msk.f32.mxu1 %vm2449_vm0, %v2448_v4 }
 0x12c   :  { %2035 = vmatpush1.bf16.msra.mxu0 %v2517_v15  ;;  %2065 = vmatpush3.bf16.msra.mxu1 %v2573_v34 }
 0x12d   :  { %2037 = vmatprep.subr.bf16.mxu0 %v2520_v16  ;;  %2066 = vmatprep.subr.bf16.mxu1 %v2447_v3 }
 0x130   :  { %2039 = vmatpush1.bf16.msra.mxu0 %v2535_v21  ;;  %2068 = vmatpush3.bf16.msra.mxu1 %v2601_v43 }
 0x131   :  { %2041 = vmatprep.subr.bf16.mxu0 %v2541_v23  ;;  %2069 = vmatprep.subr.bf16.mxu1 %v2447_v3 }
 0x134   :  { %2043 = vmatpush1.bf16.msra.mxu0 %v2567_v32  ;;  %2071 = vmatpush3.bf16.msra.mxu1 %v2629_v52 }
 0x135   :  { %2045 = vmatprep.subr.bf16.mxu0 %v2576_v35  ;;  %2072 = vmatprep.subr.bf16.mxu1 %v2447_v3 }
 0x138   :  { %2047 = vmatpush1.bf16.msra.mxu0 %v2595_v41  ;;  %2074 = vmatpush3.bf16.msra.mxu1 %v2657_v61 }
 0x139   :  { %2049 = vmatprep.subr.bf16.mxu0 %v2604_v44  ;;  %2075 = vmatprep.subr.bf16.mxu1 %v2447_v3 }
 0x13c   :  { %2051 = vmatpush1.bf16.msra.mxu0 %v2623_v50  ;;  %2077 = vmatpush3.bf16.msra.mxu1 %v2676_v6 }
 0x13d   :  { %2053 = vmatprep.subr.bf16.mxu0 %v2632_v53  ;;  %2078 = vmatprep.subr.bf16.mxu1 %v2447_v3 }
 0x140   :  { %2055 = vmatpush1.bf16.msra.mxu0 %v2651_v59  ;;  %2080 = vmatpush3.bf16.msra.mxu1 %v2688_v11 }
 0x141   :  { %2057 = vmatprep.subr.bf16.mxu0 %v2660_v62  ;;  %2081 = vmatprep.subr.bf16.mxu1 %v2447_v3 }
 0x144   :  { %2059 = vmatpush1.bf16.msra.mxu0 %v2673_v2  ;;  %2083 = vmatpush3.bf16.msra.mxu1 %v2700_v14 }
 0x145   :  { %2085 = vmatprep.subr.bf16.mxu0 %v2486_v5  ;;  %2116 = vmatprep.subr.bf16.mxu1 %v2447_v3 }
 0x1fa   :  { %v316_v56 = vpop.f32.mrb[2].mxu0  ;;  %v387_v57 = vpop.f32.mrb[2].mxu1 }
 0x1fb   :  { %v391_v58 = vadd.f32 %v1458_v55, %v316_v56  ;;  %v318_v63 = vpop.f32.mrb[3].mxu0  ;;  %v1705_v0 = vpop.f32.mrb[3].mxu1  ;;  %v405_v19 = vadd.f32 %v2750_v36, %v387_v57 }
 0x1fc   :  { %v398_v7 = vadd.f32 %v1459_v60, %v318_v63  ;;  %v1466_v60 = vld [vmem:[%s3098_s0 + $0x40] sm:$0xff] }
 0x1fd   :  { %v1461_v1 = vmul.f32 -1.442695, %v391_v58 }
 0x1fe   :  { %v1462_v8 = vmul.f32 -1.442695, %v398_v7 }
 0x1ff   :  { %2377 = vpow2.f32 %v1461_v1 }
 0x200   :  { %2379 = vpow2.f32 %v1462_v8 }
 0x209   :  { %v2378_v12 = vpop.eup %2377 }
 0x20a   :  { %v395_v13 = vadd.f32 1.0, %v2378_v12  ;;  %v2380_v17 = vpop.eup %2379 }
 0x20b   :  { %v402_v18 = vadd.f32 1.0, %v2380_v17 }
 0x20c   :  { %2381 = vrcp.f32 %v395_v13 }
 0x20d   :  { %2383 = vrcp.f32 %v402_v18  ;;  %v1470_v18 = vld [vmem:[%s3098_s0 + $0x48] sm:$0xff] }
 0x216   :  { %v2382_v20 = vpop.eup %2381 }
 0x217   :  { %v406_v24 = vmul.f32 %v2382_v20, %v405_v19  ;;  %v2384_v26 = vpop.eup %2383 }
 0x218   :  { %v409_v27 = vsub.f32 1.0, %v2384_v26  ;;  %v411_v31 = vmul.f32 %v2384_v26, %v2756_v54 }
 0x219   :  { %v407_v25 = vadd.f32 %v1460_v22, %v406_v24  ;;  %v1471_v24 = vld [vmem:[%s3098_s0 + $0x50] sm:$0xff] }
 0x21b   :  { %2385 = vtanh.f32 %v407_v25 }
 0x225   :  { %v2386_v28 = vpop.eup %2385 }
 0x226   :  { %v410_v30 = vmul.f32 %v2386_v28, %v409_v27 }
 0x228   :  { %v2810_v33 = vadd.f32 %v411_v31, %v410_v30 }
 0x22a   :  { %1463 = vst [vmem:[%s3100_s3 + $0x8] sm:$0xff] %v2810_v33  ;;  %486 = vmatmul.mubr.f32.vlgmr.msra.gmra.mrb[4].mxu0 %v2810_v33  ;;  %1739 = vmatmul.mubr.f32.vlgmr.msra.gmra.mrb[4].mxu1 %v2810_v33 }
 0x22b   :  { %2087 = vmatpush1.bf16.msra.mxu0 %v2499_v9  ;;  %2118 = vmatpush3.bf16.msra.mxu1 %v2558_v29 }
 0x22c   :  { %2089 = vmatprep.subr.bf16.mxu0 %v2501_v10  ;;  %2119 = vmatprep.subr.bf16.mxu1 %v2447_v3 }
 0x22d   :  { %656 = vmatprep.mubr.f32.mxu0 %v2448_v4  ;;  %1773 = vmatprep.mubr.msk.f32.mxu1 %vm2449_vm0, %v2448_v4 }
 0x22f   :  { %2091 = vmatpush1.bf16.msra.mxu0 %v2517_v15  ;;  %2121 = vmatpush3.bf16.msra.mxu1 %v2573_v34 }
 0x230   :  { %2093 = vmatprep.subr.bf16.mxu0 %v2520_v16  ;;  %2122 = vmatprep.subr.bf16.mxu1 %v2447_v3 }
 0x233   :  { %2095 = vmatpush1.bf16.msra.mxu0 %v2535_v21  ;;  %2124 = vmatpush3.bf16.msra.mxu1 %v2601_v43 }
 0x234   :  { %2097 = vmatprep.subr.bf16.mxu0 %v2541_v23  ;;  %2125 = vmatprep.subr.bf16.mxu1 %v2447_v3 }
 0x237   :  { %2099 = vmatpush1.bf16.msra.mxu0 %v2567_v32  ;;  %2127 = vmatpush3.bf16.msra.mxu1 %v2629_v52 }
 0x238   :  { %2101 = vmatprep.subr.bf16.mxu0 %v2576_v35  ;;  %2128 = vmatprep.subr.bf16.mxu1 %v2447_v3 }
 0x23b   :  { %2103 = vmatpush1.bf16.msra.mxu0 %v2595_v41  ;;  %2130 = vmatpush3.bf16.msra.mxu1 %v2657_v61 }
 0x23c   :  { %2105 = vmatprep.subr.bf16.mxu0 %v2604_v44  ;;  %2131 = vmatprep.subr.bf16.mxu1 %v2447_v3 }
 0x23f   :  { %2107 = vmatpush1.bf16.msra.mxu0 %v2623_v50  ;;  %2133 = vmatpush3.bf16.msra.mxu1 %v2676_v6 }
 0x240   :  { %2109 = vmatprep.subr.bf16.mxu0 %v2632_v53  ;;  %2134 = vmatprep.subr.bf16.mxu1 %v2447_v3 }
 0x243   :  { %2111 = vmatpush1.bf16.msra.mxu0 %v2651_v59  ;;  %2136 = vmatpush3.bf16.msra.mxu1 %v2688_v11 }
 0x244   :  { %2113 = vmatprep.subr.bf16.mxu0 %v2660_v62  ;;  %2137 = vmatprep.subr.bf16.mxu1 %v2447_v3 }
 0x247   :  { %2115 = vmatpush1.bf16.msra.mxu0 %v2673_v2  ;;  %2139 = vmatpush3.bf16.msra.mxu1 %v2700_v14 }
 0x248   :  { %2141 = vmatprep.subr.bf16.mxu0 %v2486_v5  ;;  %2172 = vmatprep.subr.bf16.mxu1 %v2447_v3 }
 0x2fd   :  { %v487_v38 = vpop.f32.mrb[4].mxu0  ;;  %v558_v39 = vpop.f32.mrb[4].mxu1 }
 0x2fe   :  { %v562_v40 = vadd.f32 %v1464_v37, %v487_v38  ;;  %v489_v45 = vpop.f32.mrb[5].mxu0  ;;  %v1740_v46 = vpop.f32.mrb[5].mxu1  ;;  %v576_v57 = vadd.f32 %v2750_v36, %v558_v39 }
 0x2ff   :  { %v569_v48 = vadd.f32 %v1465_v42, %v489_v45  ;;  %v1472_v42 = vld [vmem:[%s3098_s0 + $0x58] sm:$0xff] }
 0x300   :  { %v1467_v47 = vmul.f32 -1.442695, %v562_v40 }
 0x301   :  { %v1468_v49 = vmul.f32 -1.442695, %v569_v48 }
 0x302   :  { %2387 = vpow2.f32 %v1467_v47 }
 0x303   :  { %2389 = vpow2.f32 %v1468_v49 }
 0x30c   :  { %v2388_v51 = vpop.eup %2387 }
 0x30d   :  { %v566_v54 = vadd.f32 1.0, %v2388_v51  ;;  %v2390_v55 = vpop.eup %2389 }
 0x30e   :  { %v573_v56 = vadd.f32 1.0, %v2390_v55 }
 0x30f   :  { %2391 = vrcp.f32 %v566_v54 }
 0x310   :  { %2393 = vrcp.f32 %v573_v56  ;;  %v1476_v56 = vld [vmem:[%s3098_s0 + $0x60] sm:$0xff] }
 0x319   :  { %v2392_v58 = vpop.eup %2391 }
 0x31a   :  { %v577_v63 = vmul.f32 %v2392_v58, %v576_v57  ;;  %v2394_v1 = vpop.eup %2393 }
 0x31b   :  { %v580_v7 = vsub.f32 1.0, %v2394_v1  ;;  %v582_v13 = vmul.f32 %v2394_v1, %v2810_v33 }
 0x31c   :  { %v578_v0 = vadd.f32 %v1466_v60, %v577_v63  ;;  %v1477_v63 = vld [vmem:[%s3098_s0 + $0x68] sm:$0xff] }
 0x31e   :  { %2395 = vtanh.f32 %v578_v0 }
 0x328   :  { %v2396_v8 = vpop.eup %2395 }
 0x329   :  { %v581_v12 = vmul.f32 %v2396_v8, %v580_v7 }
 0x32b   :  { %v2864_v17 = vadd.f32 %v582_v13, %v581_v12 }
 0x32d   :  { %1469 = vst [vmem:[%s3100_s3 + $0x10] sm:$0xff] %v2864_v17  ;;  %657 = vmatmul.mubr.f32.vlgmr.msra.gmra.mrb[6].mxu0 %v2864_v17  ;;  %1774 = vmatmul.mubr.f32.vlgmr.msra.gmra.mrb[6].mxu1 %v2864_v17 }
 0x32e   :  { %2143 = vmatpush1.bf16.msra.mxu0 %v2499_v9  ;;  %2174 = vmatpush3.bf16.msra.mxu1 %v2558_v29 }
 0x32f   :  { %2145 = vmatprep.subr.bf16.mxu0 %v2501_v10  ;;  %2175 = vmatprep.subr.bf16.mxu1 %v2447_v3 }
 0x330   :  { %827 = vmatprep.mubr.f32.mxu0 %v2448_v4  ;;  %1808 = vmatprep.mubr.msk.f32.mxu1 %vm2449_vm0, %v2448_v4 }
 0x332   :  { %2147 = vmatpush1.bf16.msra.mxu0 %v2517_v15  ;;  %2177 = vmatpush3.bf16.msra.mxu1 %v2573_v34 }
 0x333   :  { %2149 = vmatprep.subr.bf16.mxu0 %v2520_v16  ;;  %2178 = vmatprep.subr.bf16.mxu1 %v2447_v3 }
 0x336   :  { %2151 = vmatpush1.bf16.msra.mxu0 %v2535_v21  ;;  %2180 = vmatpush3.bf16.msra.mxu1 %v2601_v43 }
 0x337   :  { %2153 = vmatprep.subr.bf16.mxu0 %v2541_v23  ;;  %2181 = vmatprep.subr.bf16.mxu1 %v2447_v3 }
 0x33a   :  { %2155 = vmatpush1.bf16.msra.mxu0 %v2567_v32  ;;  %2183 = vmatpush3.bf16.msra.mxu1 %v2629_v52 }
 0x33b   :  { %2157 = vmatprep.subr.bf16.mxu0 %v2576_v35  ;;  %2184 = vmatprep.subr.bf16.mxu1 %v2447_v3 }
 0x33e   :  { %2159 = vmatpush1.bf16.msra.mxu0 %v2595_v41  ;;  %2186 = vmatpush3.bf16.msra.mxu1 %v2657_v61 }
 0x33f   :  { %2161 = vmatprep.subr.bf16.mxu0 %v2604_v44  ;;  %2187 = vmatprep.subr.bf16.mxu1 %v2447_v3 }
 0x342   :  { %2163 = vmatpush1.bf16.msra.mxu0 %v2623_v50  ;;  %2189 = vmatpush3.bf16.msra.mxu1 %v2676_v6 }
 0x343   :  { %2165 = vmatprep.subr.bf16.mxu0 %v2632_v53  ;;  %2190 = vmatprep.subr.bf16.mxu1 %v2447_v3 }
 0x346   :  { %2167 = vmatpush1.bf16.msra.mxu0 %v2651_v59  ;;  %2192 = vmatpush3.bf16.msra.mxu1 %v2688_v11 }
 0x347   :  { %2169 = vmatprep.subr.bf16.mxu0 %v2660_v62  ;;  %2193 = vmatprep.subr.bf16.mxu1 %v2447_v3 }
 0x34a   :  { %2171 = vmatpush1.bf16.msra.mxu0 %v2673_v2  ;;  %2195 = vmatpush3.bf16.msra.mxu1 %v2700_v14 }
 0x34b   :  { %2197 = vmatprep.subr.bf16.mxu0 %v2486_v5  ;;  %2228 = vmatprep.subr.bf16.mxu1 %v2447_v3 }
 0x400   :  { %v658_v19 = vpop.f32.mrb[6].mxu0  ;;  %v729_v20 = vpop.f32.mrb[6].mxu1 }
 0x401   :  { %v733_v22 = vadd.f32 %v1470_v18, %v658_v19  ;;  %v660_v25 = vpop.f32.mrb[7].mxu0  ;;  %v1775_v26 = vpop.f32.mrb[7].mxu1  ;;  %v747_v39 = vadd.f32 %v2750_v36, %v729_v20 }
 0x402   :  { %v740_v28 = vadd.f32 %v1471_v24, %v660_v25  ;;  %v1478_v24 = vld [vmem:[%s3098_s0 + $0x70] sm:$0xff] }
 0x403   :  { %v1473_v27 = vmul.f32 -1.442695, %v733_v22 }
 0x404   :  { %v1474_v30 = vmul.f32 -1.442695, %v740_v28 }
 0x405   :  { %2397 = vpow2.f32 %v1473_v27 }
 0x406   :  { %2399 = vpow2.f32 %v1474_v30 }
 0x40f   :  { %v2398_v31 = vpop.eup %2397 }
 0x410   :  { %v737_v33 = vadd.f32 1.0, %v2398_v31  ;;  %v2400_v37 = vpop.eup %2399 }
 0x411   :  { %v744_v38 = vadd.f32 1.0, %v2400_v37 }
 0x412   :  { %2401 = vrcp.f32 %v737_v33 }
 0x413   :  { %2403 = vrcp.f32 %v744_v38  ;;  %v1482_v38 = vld [vmem:[%s3098_s0 + $0x78] sm:$0xff] }
 0x41c   :  { %v2402_v40 = vpop.eup %2401 }
 0x41d   :  { %v748_v45 = vmul.f32 %v2402_v40, %v747_v39  ;;  %v2404_v47 = vpop.eup %2403 }
 0x41e   :  { %v751_v48 = vsub.f32 1.0, %v2404_v47  ;;  %v753_v54 = vmul.f32 %v2404_v47, %v2864_v17 }
 0x41f   :  { %v749_v46 = vadd.f32 %v1472_v42, %v748_v45  ;;  %v1483_v45 = vld [vmem:[%s3098_s0 + $0x80] sm:$0xff] }
 0x421   :  { %2405 = vtanh.f32 %v749_v46 }
 0x42b   :  { %v2406_v49 = vpop.eup %2405 }
 0x42c   :  { %v752_v51 = vmul.f32 %v2406_v49, %v751_v48 }
 0x42e   :  { %v2918_v55 = vadd.f32 %v753_v54, %v752_v51 }
 0x430   :  { %1475 = vst [vmem:[%s3100_s3 + $0x18] sm:$0xff] %v2918_v55  ;;  %828 = vmatmul.mubr.f32.vlgmr.msra.gmra.mrb[8].mxu0 %v2918_v55  ;;  %1809 = vmatmul.mubr.f32.vlgmr.msra.gmra.mrb[8].mxu1 %v2918_v55 }
 0x431   :  { %2199 = vmatpush1.bf16.msra.mxu0 %v2499_v9  ;;  %2230 = vmatpush3.bf16.msra.mxu1 %v2558_v29 }
 0x432   :  { %2201 = vmatprep.subr.bf16.mxu0 %v2501_v10  ;;  %2231 = vmatprep.subr.bf16.mxu1 %v2447_v3 }
 0x433   :  { %998 = vmatprep.mubr.f32.mxu0 %v2448_v4  ;;  %1843 = vmatprep.mubr.msk.f32.mxu1 %vm2449_vm0, %v2448_v4 }
 0x435   :  { %2203 = vmatpush1.bf16.msra.mxu0 %v2517_v15  ;;  %2233 = vmatpush3.bf16.msra.mxu1 %v2573_v34 }
 0x436   :  { %2205 = vmatprep.subr.bf16.mxu0 %v2520_v16  ;;  %2234 = vmatprep.subr.bf16.mxu1 %v2447_v3 }
 0x439   :  { %2207 = vmatpush1.bf16.msra.mxu0 %v2535_v21  ;;  %2236 = vmatpush3.bf16.msra.mxu1 %v2601_v43 }
 0x43a   :  { %2209 = vmatprep.subr.bf16.mxu0 %v2541_v23  ;;  %2237 = vmatprep.subr.bf16.mxu1 %v2447_v3 }
 0x43d   :  { %2211 = vmatpush1.bf16.msra.mxu0 %v2567_v32  ;;  %2239 = vmatpush3.bf16.msra.mxu1 %v2629_v52 }
 0x43e   :  { %2213 = vmatprep.subr.bf16.mxu0 %v2576_v35  ;;  %2240 = vmatprep.subr.bf16.mxu1 %v2447_v3 }
 0x441   :  { %2215 = vmatpush1.bf16.msra.mxu0 %v2595_v41  ;;  %2242 = vmatpush3.bf16.msra.mxu1 %v2657_v61 }
 0x442   :  { %2217 = vmatprep.subr.bf16.mxu0 %v2604_v44  ;;  %2243 = vmatprep.subr.bf16.mxu1 %v2447_v3 }
 0x445   :  { %2219 = vmatpush1.bf16.msra.mxu0 %v2623_v50  ;;  %2245 = vmatpush3.bf16.msra.mxu1 %v2676_v6 }
 0x446   :  { %2221 = vmatprep.subr.bf16.mxu0 %v2632_v53  ;;  %2246 = vmatprep.subr.bf16.mxu1 %v2447_v3 }
 0x449   :  { %2223 = vmatpush1.bf16.msra.mxu0 %v2651_v59  ;;  %2248 = vmatpush3.bf16.msra.mxu1 %v2688_v11 }
 0x44a   :  { %2225 = vmatprep.subr.bf16.mxu0 %v2660_v62  ;;  %2249 = vmatprep.subr.bf16.mxu1 %v2447_v3 }
 0x44d   :  { %2227 = vmatpush1.bf16.msra.mxu0 %v2673_v2  ;;  %2251 = vmatpush3.bf16.msra.mxu1 %v2700_v14 }
 0x44e   :  { %2253 = vmatprep.subr.bf16.mxu0 %v2486_v5  ;;  %2284 = vmatprep.subr.bf16.mxu1 %v2447_v3 }
 0x503   :  { %v829_v57 = vpop.f32.mrb[8].mxu0  ;;  %v900_v58 = vpop.f32.mrb[8].mxu1 }
 0x504   :  { %v904_v60 = vadd.f32 %v1476_v56, %v829_v57  ;;  %v831_v0 = vpop.f32.mrb[9].mxu0  ;;  %v1810_v1 = vpop.f32.mrb[9].mxu1  ;;  %v918_v20 = vadd.f32 %v2750_v36, %v900_v58 }
 0x505   :  { %v911_v8 = vadd.f32 %v1477_v63, %v831_v0 }
 0x506   :  { %v1479_v7 = vmul.f32 -1.442695, %v904_v60  ;;  %v1484_v60 = vld [vmem:[%s3098_s0 + $0x88] sm:$0xff] }
 0x507   :  { %v1480_v12 = vmul.f32 -1.442695, %v911_v8 }
 0x508   :  { %2407 = vpow2.f32 %v1479_v7 }
 0x509   :  { %2409 = vpow2.f32 %v1480_v12 }
 0x512   :  { %v2408_v13 = vpop.eup %2407 }
 0x513   :  { %v908_v17 = vadd.f32 1.0, %v2408_v13  ;;  %v2410_v18 = vpop.eup %2409 }
 0x514   :  { %v915_v19 = vadd.f32 1.0, %v2410_v18  ;;  %v1494_v18 = vld [vmem:[%s3098_s0 + $0xa8] sm:$0xff] }
 0x515   :  { %2411 = vrcp.f32 %v908_v17 }
 0x516   :  { %2413 = vrcp.f32 %v915_v19 }
 0x51f   :  { %v2412_v22 = vpop.eup %2411 }
 0x520   :  { %v919_v25 = vmul.f32 %v2412_v22, %v918_v20  ;;  %v2414_v27 = vpop.eup %2413 }
 0x521   :  { %v922_v28 = vsub.f32 1.0, %v2414_v27  ;;  %v924_v33 = vmul.f32 %v2414_v27, %v2918_v55 }
 0x522   :  { %v920_v26 = vadd.f32 %v1478_v24, %v919_v25  ;;  %v1495_v24 = vld [vmem:[%s3098_s0 + $0xb0] sm:$0xff] }
 0x524   :  { %2415 = vtanh.f32 %v920_v26 }
 0x52e   :  { %v2416_v30 = vpop.eup %2415 }
 0x52f   :  { %v923_v31 = vmul.f32 %v2416_v30, %v922_v28 }
 0x531   :  { %v2972_v37 = vadd.f32 %v924_v33, %v923_v31 }
 0x533   :  { %1481 = vst [vmem:[%s3100_s3 + $0x20] sm:$0xff] %v2972_v37  ;;  %999 = vmatmul.mubr.f32.vlgmr.msra.gmra.mrb[10].mxu0 %v2972_v37  ;;  %1844 = vmatmul.mubr.f32.vlgmr.msra.gmra.mrb[10].mxu1 %v2972_v37 }
 0x534   :  { %2255 = vmatpush1.bf16.msra.mxu0 %v2499_v9  ;;  %2286 = vmatpush3.bf16.msra.mxu1 %v2558_v29 }
 0x535   :  { %2257 = vmatprep.subr.bf16.mxu0 %v2501_v10  ;;  %2287 = vmatprep.subr.bf16.mxu1 %v2447_v3 }
 0x536   :  { %1169 = vmatprep.mubr.f32.mxu0 %v2448_v4  ;;  %1878 = vmatprep.mubr.msk.f32.mxu1 %vm2449_vm0, %v2448_v4 }
 0x538   :  { %2259 = vmatpush1.bf16.msra.mxu0 %v2517_v15  ;;  %2289 = vmatpush3.bf16.msra.mxu1 %v2573_v34 }
 0x539   :  { %2261 = vmatprep.subr.bf16.mxu0 %v2520_v16  ;;  %2290 = vmatprep.subr.bf16.mxu1 %v2447_v3 }
 0x53c   :  { %2263 = vmatpush1.bf16.msra.mxu0 %v2535_v21  ;;  %2292 = vmatpush3.bf16.msra.mxu1 %v2601_v43 }
 0x53d   :  { %2265 = vmatprep.subr.bf16.mxu0 %v2541_v23  ;;  %2293 = vmatprep.subr.bf16.mxu1 %v2447_v3 }
 0x540   :  { %2267 = vmatpush1.bf16.msra.mxu0 %v2567_v32  ;;  %2295 = vmatpush3.bf16.msra.mxu1 %v2629_v52 }
 0x541   :  { %2269 = vmatprep.subr.bf16.mxu0 %v2576_v35  ;;  %2296 = vmatprep.subr.bf16.mxu1 %v2447_v3 }
 0x544   :  { %2271 = vmatpush1.bf16.msra.mxu0 %v2595_v41  ;;  %2298 = vmatpush3.bf16.msra.mxu1 %v2657_v61 }
 0x545   :  { %2273 = vmatprep.subr.bf16.mxu0 %v2604_v44  ;;  %2299 = vmatprep.subr.bf16.mxu1 %v2447_v3 }
 0x548   :  { %2275 = vmatpush1.bf16.msra.mxu0 %v2623_v50  ;;  %2301 = vmatpush3.bf16.msra.mxu1 %v2676_v6 }
 0x549   :  { %2277 = vmatprep.subr.bf16.mxu0 %v2632_v53  ;;  %2302 = vmatprep.subr.bf16.mxu1 %v2447_v3 }
 0x54c   :  { %2279 = vmatpush1.bf16.msra.mxu0 %v2651_v59  ;;  %2304 = vmatpush3.bf16.msra.mxu1 %v2688_v11 }
 0x54d   :  { %2281 = vmatprep.subr.bf16.mxu0 %v2660_v62  ;;  %2305 = vmatprep.subr.bf16.mxu1 %v2447_v3 }
 0x550   :  { %2283 = vmatpush1.bf16.msra.mxu0 %v2673_v2  ;;  %2307 = vmatpush3.bf16.msra.mxu1 %v2700_v14 }
 0x551   :  { %2309 = vmatprep.subr.bf16.mxu0 %v2486_v5  ;;  %2340 = vmatprep.subr.bf16.mxu1 %v2447_v3 }
 0x606   :  { %v1000_v39 = vpop.f32.mrb[10].mxu0  ;;  %v1071_v40 = vpop.f32.mrb[10].mxu1 }
 0x607   :  { %v1075_v42 = vadd.f32 %v1482_v38, %v1000_v39  ;;  %v1002_v46 = vpop.f32.mrb[11].mxu0  ;;  %v1845_v47 = vpop.f32.mrb[11].mxu1  ;;  %v1089_v57 = vadd.f32 %v2750_v36, %v1071_v40 }
 0x608   :  { %v1082_v49 = vadd.f32 %v1483_v45, %v1002_v46 }
 0x609   :  { %v1485_v48 = vmul.f32 -1.442695, %v1075_v42  ;;  %v1496_v42 = vld [vmem:[%s3098_s0 + $0xb8] sm:$0xff] }
 0x60a   :  { %v1486_v51 = vmul.f32 -1.442695, %v1082_v49 }
 0x60b   :  { %2417 = vpow2.f32 %v1485_v48 }
 0x60c   :  { %2419 = vpow2.f32 %v1486_v51 }
 0x615   :  { %v2418_v5 = vpop.eup %2417 }
 0x616   :  { %v1079_v54 = vadd.f32 1.0, %v2418_v5  ;;  %v2420_v55 = vpop.eup %2419 }
 0x617   :  { %v1086_v56 = vadd.f32 1.0, %v2420_v55 }
 0x618   :  { %2421 = vrcp.f32 %v1079_v54 }
 0x619   :  { %2423 = vrcp.f32 %v1086_v56 }
 0x622   :  { %v2422_v58 = vpop.eup %2421 }
 0x623   :  { %v1090_v63 = vmul.f32 %v2422_v58, %v1089_v57  ;;  %v2424_v1 = vpop.eup %2423 }
 0x624   :  { %v1093_v7 = vsub.f32 1.0, %v2424_v1  ;;  %v1095_v13 = vmul.f32 %v2424_v1, %v2972_v37 }
 0x625   :  { %v1091_v0 = vadd.f32 %v1484_v60, %v1090_v63 }
 0x627   :  { %2425 = vtanh.f32 %v1091_v0 }
 0x631   :  { %v2426_v8 = vpop.eup %2425 }
 0x632   :  { %v1094_v12 = vmul.f32 %v2426_v8, %v1093_v7 }
 0x634   :  { %v3026_v17 = vadd.f32 %v1095_v13, %v1094_v12 }
 0x636   :  { %1487 = vst [vmem:[%s3100_s3 + $0x28] sm:$0xff] %v3026_v17  ;;  %1170 = vmatmul.mubr.f32.vlgmr.msra.gmra.mrb[12].mxu0 %v3026_v17  ;;  %1879 = vmatmul.mubr.f32.vlgmr.msra.gmra.mrb[12].mxu1 %v3026_v17 }
 0x637   :  { %2311 = vmatpush1.bf16.msra.mxu0 %v2499_v9  ;;  %2342 = vmatpush3.bf16.msra.mxu1 %v2558_v29 }
 0x638   :  { %2313 = vmatprep.subr.bf16.mxu0 %v2501_v10  ;;  %2343 = vmatprep.subr.bf16.mxu1 %v2447_v3 }
 0x639   :  { %1340 = vmatprep.mubr.f32.mxu0 %v2448_v4  ;;  %1913 = vmatprep.mubr.msk.f32.mxu1 %vm2449_vm0, %v2448_v4  ;;  %v1488_v4 = vld [vmem:[%s3098_s0 + $0x90] sm:$0xff] }
 0x63b   :  { %2315 = vmatpush1.bf16.msra.mxu0 %v2517_v15  ;;  %2345 = vmatpush3.bf16.msra.mxu1 %v2573_v34 }
 0x63c   :  { %2317 = vmatprep.subr.bf16.mxu0 %v2520_v16  ;;  %2346 = vmatprep.subr.bf16.mxu1 %v2447_v3  ;;  %v1489_v16 = vld [vmem:[%s3098_s0 + $0x98] sm:$0xff] }
 0x63f   :  { %2319 = vmatpush1.bf16.msra.mxu0 %v2535_v21  ;;  %2348 = vmatpush3.bf16.msra.mxu1 %v2601_v43 }
 0x640   :  { %2321 = vmatprep.subr.bf16.mxu0 %v2541_v23  ;;  %2349 = vmatprep.subr.bf16.mxu1 %v2447_v3 }
 0x643   :  { %2323 = vmatpush1.bf16.msra.mxu0 %v2567_v32  ;;  %2351 = vmatpush3.bf16.msra.mxu1 %v2629_v52  ;;  %v1490_v52 = vld [vmem:[%s3098_s0 + $0xa0] sm:$0xff] }
 0x644   :  { %2325 = vmatprep.subr.bf16.mxu0 %v2576_v35  ;;  %2352 = vmatprep.subr.bf16.mxu1 %v2447_v3 }
 0x647   :  { %2327 = vmatpush1.bf16.msra.mxu0 %v2595_v41  ;;  %2354 = vmatpush3.bf16.msra.mxu1 %v2657_v61 }
 0x648   :  { %2329 = vmatprep.subr.bf16.mxu0 %v2604_v44  ;;  %2355 = vmatprep.subr.bf16.mxu1 %v2447_v3 }
 0x64b   :  { %2331 = vmatpush1.bf16.msra.mxu0 %v2623_v50  ;;  %2357 = vmatpush3.bf16.msra.mxu1 %v2676_v6 }
 0x64c   :  { %2333 = vmatprep.subr.bf16.mxu0 %v2632_v53  ;;  %2358 = vmatprep.subr.bf16.mxu1 %v2447_v3 }
 0x64f   :  { %2335 = vmatpush1.bf16.msra.mxu0 %v2651_v59  ;;  %2360 = vmatpush3.bf16.msra.mxu1 %v2688_v11 }
 0x650   :  { %2337 = vmatprep.subr.bf16.mxu0 %v2660_v62  ;;  %2361 = vmatprep.subr.bf16.mxu1 %v2447_v3 }
 0x653   :  { %2339 = vmatpush1.bf16.msra.mxu0 %v2673_v2  ;;  %2363 = vmatpush3.bf16.msra.mxu1 %v2700_v14 }
 0x709   :  { %v1171_v9 = vpop.f32.mrb[12].mxu0  ;;  %v1242_v10 = vpop.f32.mrb[12].mxu1 }
 0x70a   :  { %v1246_v15 = vadd.f32 %v1488_v4, %v1171_v9  ;;  %v1173_v21 = vpop.f32.mrb[13].mxu0  ;;  %v1880_v23 = vpop.f32.mrb[13].mxu1  ;;  %v1260_v44 = vadd.f32 %v2750_v36, %v1242_v10 }
 0x70b   :  { %v1253_v32 = vadd.f32 %v1489_v16, %v1173_v21 }
 0x70c   :  { %v1491_v29 = vmul.f32 -1.442695, %v1246_v15 }
 0x70d   :  { %v1492_v3 = vmul.f32 -1.442695, %v1253_v32 }
 0x70e   :  { %2427 = vpow2.f32 %v1491_v29 }
 0x70f   :  { %2429 = vpow2.f32 %v1492_v3 }
 0x718   :  { %v2428_v34 = vpop.eup %2427 }
 0x719   :  { %v1250_v35 = vadd.f32 1.0, %v2428_v34  ;;  %v2430_v41 = vpop.eup %2429 }
 0x71a   :  { %v1257_v43 = vadd.f32 1.0, %v2430_v41 }
 0x71b   :  { %2431 = vrcp.f32 %v1250_v35 }
 0x71c   :  { %2433 = vrcp.f32 %v1257_v43 }
 0x725   :  { %v2432_v50 = vpop.eup %2431 }
 0x726   :  { %v1261_v53 = vmul.f32 %v2432_v50, %v1260_v44  ;;  %v2434_v61 = vpop.eup %2433 }
 0x727   :  { %v1264_v62 = vsub.f32 1.0, %v2434_v61  ;;  %v1266_v11 = vmul.f32 %v2434_v61, %v3026_v17 }
 0x728   :  { %v1262_v59 = vadd.f32 %v1490_v52, %v1261_v53 }
 0x72a   :  { %2435 = vtanh.f32 %v1262_v59 }
 0x734   :  { %v2436_v2 = vpop.eup %2435 }
 0x735   :  { %v1265_v6 = vmul.f32 %v2436_v2, %v1264_v62 }
 0x737   :  { %v1267_v14 = vadd.f32 %v1266_v11, %v1265_v6 }
 0x739   :  { %1493 = vst [vmem:[%s3100_s3 + $0x30] sm:$0xff] %v1267_v14  ;;  %1341 = vmatmul.mubr.f32.vlgmr.msra.gmra.mrb[14].mxu0 %v1267_v14  ;;  %1914 = vmatmul.mubr.f32.vlgmr.msra.gmra.mrb[14].mxu1 %v1267_v14 }
 0x80c   :  { %v1342_v19 = vpop.f32.mrb[14].mxu0  ;;  %v1413_v20 = vpop.f32.mrb[14].mxu1 }
 0x80d   :  { %v1417_v22 = vadd.f32 %v1494_v18, %v1342_v19  ;;  %v1344_v25 = vpop.f32.mrb[15].mxu0  ;;  %v1915_v26 = vpop.f32.mrb[15].mxu1  ;;  %v1431_v39 = vadd.f32 %v2750_v36, %v1413_v20 }
 0x80e   :  { %v1424_v28 = vadd.f32 %v1495_v24, %v1344_v25 }
 0x80f   :  { %v1497_v27 = vmul.f32 -1.442695, %v1417_v22 }
 0x810   :  { %v1498_v30 = vmul.f32 -1.442695, %v1424_v28 }
 0x811   :  { %2437 = vpow2.f32 %v1497_v27 }
 0x812   :  { %2439 = vpow2.f32 %v1498_v30 }
 0x81b   :  { %v2438_v31 = vpop.eup %2437 }
 0x81c   :  { %v1421_v33 = vadd.f32 1.0, %v2438_v31  ;;  %v2440_v37 = vpop.eup %2439 }
 0x81d   :  { %v1428_v38 = vadd.f32 1.0, %v2440_v37 }
 0x81e   :  { %2441 = vrcp.f32 %v1421_v33 }
 0x81f   :  { %2443 = vrcp.f32 %v1428_v38 }
 0x828   :  { %v2442_v40 = vpop.eup %2441 }
 0x829   :  { %v1432_v45 = vmul.f32 %v2442_v40, %v1431_v39  ;;  %v2444_v47 = vpop.eup %2443 }
 0x82a   :  { %v1435_v48 = vsub.f32 1.0, %v2444_v47  ;;  %v1437_v5 = vmul.f32 %v2444_v47, %v1267_v14 }
 0x82b   :  { %v1433_v46 = vadd.f32 %v1496_v42, %v1432_v45 }
 0x82d   :  { %2445 = vtanh.f32 %v1433_v46 }
 0x837   :  { %v2446_v49 = vpop.eup %2445 }
 0x838   :  { %v1436_v51 = vmul.f32 %v2446_v49, %v1435_v48 }
 0x83a   :  { %v1438_v54 = vadd.f32 %v1437_v5, %v1436_v51 }
 0x83c   :  { %1499 = vst [vmem:[%s3100_s3 + $0x38] sm:$0xff] %v1438_v54  ;;  %1446 = vst [vmem:[%s3101_s4] sm:$0xff] %v1438_v54 }

// kernel: gru_language_model_forward.6
= control target key start
LH: loop header
LB: loop body
LE: loop exit
PB: predicated region body
PF: predicated region fallthrough
CT: control target
= control target key end

     0   :  { %v659_v3 = vmov 0.0   ;;  %s1067_s1 = inlined_call_operand.vmem [shape: f32[128,512], index: 1, kind: input, shape index: {}]   ;;  %s1068_s0 = inlined_call_operand.vmem [shape: f32[64,128], index: 0, kind: input, shape index: {}]   ;;  %s1069_s2 = inlined_call_operand.vmem [shape: f32[1,512], index: 2, kind: input, shape index: {}]   ;;  %s1070_s3 = inlined_call_operand.vmem [shape: f32[64,128], index: 3, kind: output, shape index: {}]  }
   0x1   :  { %v23_v0 = vld [vmem:[%s1067_s1 + $0x8] sm:$0xff]  ;;  %v22_v2 = vld [vmem:[%s1067_s1] sm:$0xff]  ;;  %172 = vmatprep.mubr.f32.mxu0 %v659_v3  ;;  %285 = vmatprep.mubr.f32.mxu1 %v659_v3  ;;  %v25_v22 = vld [vmem:[%s1067_s1 + $0x18] sm:$0xff] }
   0x2   :  { %v27_v1 = vld [vmem:[%s1067_s1 + $0x28] sm:$0xff]  ;;  %v26_v5 = vld [vmem:[%s1067_s1 + $0x20] sm:$0xff]  ;;  %v29_v26 = vld [vmem:[%s1067_s1 + $0x38] sm:$0xff] }
   0x3   :  { %v514_v4 = vpack.c.bf16 %v27_v1, %v23_v0  ;;  %v31_v6 = vld [vmem:[%s1067_s1 + $0x48] sm:$0xff]  ;;  %v516_v8 = vpack.c.bf16 %v26_v5, %v22_v2  ;;  %v30_v10 = vld [vmem:[%s1067_s1 + $0x40] sm:$0xff]  ;;  %v546_v28 = vpack.c.bf16 %v29_v26, %v25_v22  ;;  %v24_v29 = vld [vmem:[%s1067_s1 + $0x10] sm:$0xff] }
   0x4   :  { %v35_v7 = vld [vmem:[%s1067_s1 + $0x68] sm:$0xff]  ;;  %v34_v11 = vld [vmem:[%s1067_s1 + $0x60] sm:$0xff]  ;;  %v28_v30 = vld [vmem:[%s1067_s1 + $0x30] sm:$0xff] }
   0x5   :  { %v518_v9 = vpack.c.bf16 %v35_v7, %v31_v6  ;;  %v39_v12 = vld [vmem:[%s1067_s1 + $0x88] sm:$0xff]  ;;  %515 = vmatprep.subr.bf16.mxu0 %v514_v4  ;;  %v520_v14 = vpack.c.bf16 %v34_v11, %v30_v10  ;;  %v38_v16 = vld [vmem:[%s1067_s1 + $0x80] sm:$0xff]  ;;  %v548_v32 = vpack.c.bf16 %v28_v30, %v24_v29  ;;  %v33_v33 = vld [vmem:[%s1067_s1 + $0x58] sm:$0xff]  ;;  %547 = vmatprep.subr.bf16.mxu1 %v546_v28 }
   0x6   :  { %v43_v13 = vld [vmem:[%s1067_s1 + $0xa8] sm:$0xff]  ;;  %517 = vmatpush1.bf16.msra.mxu0 %v516_v8  ;;  %v42_v17 = vld [vmem:[%s1067_s1 + $0xa0] sm:$0xff]  ;;  %v37_v34 = vld [vmem:[%s1067_s1 + $0x78] sm:$0xff] }
   0x7   :  { %519 = vmatprep.subr.bf16.mxu0 %v518_v9  ;;  %v522_v15 = vpack.c.bf16 %v43_v13, %v39_v12  ;;  %v47_v18 = vld [vmem:[%s1067_s1 + $0xc8] sm:$0xff]  ;;  %v524_v20 = vpack.c.bf16 %v42_v17, %v38_v16  ;;  %v46_v21 = vld [vmem:[%s1067_s1 + $0xc0] sm:$0xff]  ;;  %v550_v38 = vpack.c.bf16 %v37_v34, %v33_v33  ;;  %v32_v39 = vld [vmem:[%s1067_s1 + $0x50] sm:$0xff]  ;;  %549 = vmatpush1.bf16.msra.mxu1 %v548_v32 }
   0x8   :  { %v51_v19 = vld [vmem:[%s1067_s1 + $0xe8] sm:$0xff]  ;;  %v50_v24 = vld [vmem:[%s1067_s1 + $0xe0] sm:$0xff]  ;;  %v36_v42 = vld [vmem:[%s1067_s1 + $0x70] sm:$0xff] }
   0x9   :  { %v526_v23 = vpack.c.bf16 %v51_v19, %v47_v18  ;;  %v55_v25 = vld [vmem:[%s1067_s1 + $0x108] sm:$0xff]  ;;  %v54_v31 = vld [vmem:[%s1067_s1 + $0x100] sm:$0xff]  ;;  %v528_v35 = vpack.c.bf16 %v50_v24, %v46_v21  ;;  %v41_v43 = vld [vmem:[%s1067_s1 + $0x98] sm:$0xff]  ;;  %551 = vmatprep.subr.bf16.mxu1 %v550_v38  ;;  %v552_v44 = vpack.c.bf16 %v36_v42, %v32_v39  ;;  %v88_v42 = vlaneseq }
   0xa   :  { %521 = vmatpush1.bf16.msra.mxu0 %v520_v14  ;;  %v59_v27 = vld [vmem:[%s1067_s1 + $0x128] sm:$0xff]  ;;  %v58_v36 = vld [vmem:[%s1067_s1 + $0x120] sm:$0xff]  ;;  %v45_v45 = vld [vmem:[%s1067_s1 + $0xb8] sm:$0xff] }
   0xb   :  { %523 = vmatprep.subr.bf16.mxu0 %v522_v15  ;;  %v63_v37 = vld [vmem:[%s1067_s1 + $0x148] sm:$0xff]  ;;  %v530_v40 = vpack.c.bf16 %v59_v27, %v55_v25  ;;  %v40_v46 = vld [vmem:[%s1067_s1 + $0x90] sm:$0xff]  ;;  %v554_v48 = vpack.c.bf16 %v45_v45, %v41_v43  ;;  %v49_v49 = vld [vmem:[%s1067_s1 + $0xd8] sm:$0xff]  ;;  %v532_v51 = vpack.c.bf16 %v58_v36, %v54_v31  ;;  %553 = vmatpush1.bf16.msra.mxu1 %v552_v44  ;;  %v944_v43 = vshrl.u32 %v88_v42, 7 }
   0xc   :  { %v67_v41 = vld [vmem:[%s1067_s1 + $0x168] sm:$0xff]  ;;  %v44_v47 = vld [vmem:[%s1067_s1 + $0xb0] sm:$0xff]  ;;  %v53_v50 = vld [vmem:[%s1067_s1 + $0xf8] sm:$0xff] }
   0xd   :  { %v534_v52 = vpack.c.bf16 %v67_v41, %v63_v37  ;;  %v62_v53 = vld [vmem:[%s1067_s1 + $0x140] sm:$0xff]  ;;  %v71_v55 = vld [vmem:[%s1067_s1 + $0x188] sm:$0xff]  ;;  %v556_v56 = vpack.c.bf16 %v44_v47, %v40_v46  ;;  %555 = vmatprep.subr.bf16.mxu1 %v554_v48  ;;  %v558_v58 = vpack.c.bf16 %v53_v50, %v49_v49  ;;  %v48_v59 = vld [vmem:[%s1067_s1 + $0xd0] sm:$0xff]  ;;  %v90_v44 = vsub.s32 0, %v944_v43 }
   0xe   :  { %525 = vmatpush1.bf16.msra.mxu0 %v524_v20  ;;  %v66_v54 = vld [vmem:[%s1067_s1 + $0x160] sm:$0xff]  ;;  %v75_v57 = vld [vmem:[%s1067_s1 + $0x1a8] sm:$0xff]  ;;  %v52_v60 = vld [vmem:[%s1067_s1 + $0xf0] sm:$0xff]  ;;  %v94_v46 = vsub.s32 1, %v944_v43 }
   0xf   :  { %527 = vmatprep.subr.bf16.mxu0 %v526_v23  ;;  %v57_v61 = vld [vmem:[%s1067_s1 + $0x118] sm:$0xff]  ;;  %v536_v63 = vpack.c.bf16 %v66_v54, %v62_v53  ;;  %v538_v0 = vpack.c.bf16 %v75_v57, %v71_v55  ;;  %v70_v1 = vld [vmem:[%s1067_s1 + $0x180] sm:$0xff]  ;;  %v79_v4 = vld [vmem:[%s1067_s1 + $0x1c8] sm:$0xff]  ;;  %557 = vmatpush1.bf16.msra.mxu1 %v556_v56  ;;  %v560_v5 = vpack.c.bf16 %v52_v60, %v48_v59 }
  0x10   :  { %v61_v62 = vld [vmem:[%s1067_s1 + $0x138] sm:$0xff]  ;;  %v74_v2 = vld [vmem:[%s1067_s1 + $0x1a0] sm:$0xff]  ;;  %v83_v6 = vld [vmem:[%s1067_s1 + $0x1e8] sm:$0xff]  ;;  %559 = vmatprep.subr.bf16.mxu1 %v558_v58 }
  0x11   :  { %v562_v7 = vpack.c.bf16 %v61_v62, %v57_v61  ;;  %v56_v8 = vld [vmem:[%s1067_s1 + $0x110] sm:$0xff]  ;;  %v65_v10 = vld [vmem:[%s1067_s1 + $0x158] sm:$0xff]  ;;  %v540_v12 = vpack.c.bf16 %v74_v2, %v70_v1  ;;  %v542_v13 = vpack.c.bf16 %v83_v6, %v79_v4  ;;  %v78_v14 = vld [vmem:[%s1067_s1 + $0x1c0] sm:$0xff] }
  0x12   :  { %529 = vmatpush1.bf16.msra.mxu0 %v528_v35  ;;  %v60_v9 = vld [vmem:[%s1067_s1 + $0x130] sm:$0xff]  ;;  %v69_v11 = vld [vmem:[%s1067_s1 + $0x178] sm:$0xff]  ;;  %v82_v15 = vld [vmem:[%s1067_s1 + $0x1e0] sm:$0xff] }
  0x13   :  { %531 = vmatprep.subr.bf16.mxu0 %v530_v40  ;;  %561 = vmatpush1.bf16.msra.mxu1 %v560_v5  ;;  %v564_v16 = vpack.c.bf16 %v60_v9, %v56_v8  ;;  %v566_v17 = vpack.c.bf16 %v69_v11, %v65_v10  ;;  %v64_v18 = vld [vmem:[%s1067_s1 + $0x150] sm:$0xff]  ;;  %v73_v20 = vld [vmem:[%s1067_s1 + $0x198] sm:$0xff]  ;;  %v544_v22 = vpack.c.bf16 %v82_v15, %v78_v14  ;;  %v871_v29 = vld [vmem:[%s1068_s0] sm:$0xff] }
  0x14   :  { %563 = vmatprep.subr.bf16.mxu1 %v562_v7  ;;  %v68_v19 = vld [vmem:[%s1067_s1 + $0x170] sm:$0xff]  ;;  %v77_v21 = vld [vmem:[%s1067_s1 + $0x1b8] sm:$0xff]  ;;  %v884_v34 = vld [vmem:[%s1068_s0 + $0x8] sm:$0xff] }
  0x15   :  { %v568_v23 = vpack.c.bf16 %v68_v19, %v64_v18  ;;  %v570_v24 = vpack.c.bf16 %v77_v21, %v73_v20  ;;  %v72_v25 = vld [vmem:[%s1067_s1 + $0x190] sm:$0xff]  ;;  %v81_v27 = vld [vmem:[%s1067_s1 + $0x1d8] sm:$0xff]  ;;  %v907_v38 = vld [vmem:[%s1068_s0 + $0x20] sm:$0xff]  ;;  %v102_v18 = vsub.s32 3, %v944_v43 }
  0x16   :  { %533 = vmatpush1.bf16.msra.mxu0 %v532_v51  ;;  %v76_v26 = vld [vmem:[%s1067_s1 + $0x1b0] sm:$0xff]  ;;  %v85_v28 = vld [vmem:[%s1067_s1 + $0x1f8] sm:$0xff]  ;;  %v916_v39 = vld [vmem:[%s1068_s0 + $0x28] sm:$0xff] }
  0x17   :  { %535 = vmatprep.subr.bf16.mxu0 %v534_v52  ;;  %565 = vmatpush1.bf16.msra.mxu1 %v564_v16  ;;  %v572_v30 = vpack.c.bf16 %v76_v26, %v72_v25  ;;  %v574_v31 = vpack.c.bf16 %v85_v28, %v81_v27  ;;  %v80_v32 = vld [vmem:[%s1067_s1 + $0x1d0] sm:$0xff]  ;;  %v898_v37 = vld [vmem:[%s1068_s0 + $0x18] sm:$0xff]  ;;  %v950_v45 = vld [vmem:[%s1069_s2] sm:$0xf] }
  0x18   :  { %567 = vmatprep.subr.bf16.mxu1 %v566_v17  ;;  %v84_v33 = vld [vmem:[%s1067_s1 + $0x1f0] sm:$0xff]  ;;  %v934_v41 = vld [vmem:[%s1068_s0 + $0x38] sm:$0xff]  ;;  %v954_v47 = vrot.slane %v950_v45, %v90_v44  ;;  %v957_v48 = vrot.slane %v950_v45, %v94_v46 }
  0x19   :  { %v576_v35 = vpack.c.bf16 %v84_v33, %v80_v32  ;;  %v891_v36 = vld [vmem:[%s1068_s0 + $0x10] sm:$0xff] }
  0x1a   :  { %537 = vmatpush1.bf16.msra.mxu0 %v536_v63  ;;  %v925_v40 = vld [vmem:[%s1068_s0 + $0x30] sm:$0xff] }
  0x1b   :  { %539 = vmatprep.subr.bf16.mxu0 %v538_v0  ;;  %569 = vmatpush1.bf16.msra.mxu1 %v568_v23  ;;  %v98_v23 = vsub.s32 2, %v944_v43 }
  0x1c   :  { %571 = vmatprep.subr.bf16.mxu1 %v570_v24 }
  0x1d   :  { %v989_v46 = vrot.slane %v950_v45, %v98_v23 }
  0x1e   :  { %541 = vmatpush1.bf16.msra.mxu0 %v540_v12 }
  0x1f   :  { %543 = vmatprep.subr.bf16.mxu0 %v542_v13  ;;  %573 = vmatpush1.bf16.msra.mxu1 %v572_v30 }
  0x20   :  { %575 = vmatprep.subr.bf16.mxu1 %v574_v31  ;;  %v981_v31 = vrot.slane %v950_v45, %v102_v18 }
  0x22   :  { %545 = vmatpush1.bf16.msra.mxu0 %v544_v22 }
  0x23   :  { %577 = vmatpush1.bf16.msra.mxu1 %v576_v35 }
  0x25   :  { %173 = vmatmul.mubr.f32.vlgmr.msra.gmra.mrb[0].mxu0 %v871_v29 }
  0x26   :  { %178 = vmatprep.mubr.f32.mxu0 %v659_v3  ;;  %286 = vmatmul.mubr.f32.vlgmr.msra.gmra.mrb[0].mxu1 %v871_v29 }
  0x27   :  { %291 = vmatprep.mubr.f32.mxu1 %v659_v3 }
  0x29   :  { %179 = vmatmul.mubr.f32.gmra.mrb[2].mxu0 %v884_v34 }
  0x2a   :  { %184 = vmatprep.mubr.f32.mxu0 %v659_v3  ;;  %292 = vmatmul.mubr.f32.gmra.mrb[2].mxu1 %v884_v34 }
  0x2b   :  { %297 = vmatprep.mubr.f32.mxu1 %v659_v3 }
  0x2d   :  { %185 = vmatmul.mubr.f32.gmra.mrb[4].mxu0 %v891_v36 }
  0x2e   :  { %190 = vmatprep.mubr.f32.mxu0 %v659_v3  ;;  %298 = vmatmul.mubr.f32.gmra.mrb[4].mxu1 %v891_v36 }
  0x2f   :  { %303 = vmatprep.mubr.f32.mxu1 %v659_v3 }
  0x31   :  { %191 = vmatmul.mubr.f32.gmra.mrb[6].mxu0 %v898_v37 }
  0x32   :  { %196 = vmatprep.mubr.f32.mxu0 %v659_v3  ;;  %304 = vmatmul.mubr.f32.gmra.mrb[6].mxu1 %v898_v37 }
  0x33   :  { %309 = vmatprep.mubr.f32.mxu1 %v659_v3 }
  0x35   :  { %197 = vmatmul.mubr.f32.gmra.mrb[8].mxu0 %v907_v38 }
  0x36   :  { %202 = vmatprep.mubr.f32.mxu0 %v659_v3  ;;  %310 = vmatmul.mubr.f32.gmra.mrb[8].mxu1 %v907_v38 }
  0x37   :  { %315 = vmatprep.mubr.f32.mxu1 %v659_v3 }
  0x39   :  { %203 = vmatmul.mubr.f32.gmra.mrb[10].mxu0 %v916_v39 }
  0x3a   :  { %208 = vmatprep.mubr.f32.mxu0 %v659_v3  ;;  %316 = vmatmul.mubr.f32.gmra.mrb[10].mxu1 %v916_v39 }
  0x3b   :  { %321 = vmatprep.mubr.f32.mxu1 %v659_v3 }
  0x3d   :  { %209 = vmatmul.mubr.f32.gmra.mrb[12].mxu0 %v925_v40 }
  0x3e   :  { %214 = vmatprep.mubr.f32.mxu0 %v659_v3  ;;  %322 = vmatmul.mubr.f32.gmra.mrb[12].mxu1 %v925_v40 }
  0x3f   :  { %327 = vmatprep.mubr.f32.mxu1 %v659_v3 }
  0x41   :  { %215 = vmatmul.mubr.f32.gmra.mrb[14].mxu0 %v934_v41 }
  0x42   :  { %328 = vmatmul.mubr.f32.gmra.mrb[14].mxu1 %v934_v41 }
  0xf8   :  { %v174_v3 = vpop.f32.mrb[0].mxu0 }
  0xf9   :  { %v175_v49 = vadd.f32 %v174_v3, %v954_v47  ;;  %v176_v50 = vpop.f32.mrb[1].mxu0  ;;  %v964_v62 = vpop.f32.mrb[0].mxu1 }
  0xfa   :  { %v177_v51 = vadd.f32 %v176_v50, %v957_v48  ;;  %v289_v63 = vpop.f32.mrb[1].mxu1 }
  0xfb   :  { %v498_v52 = vmul.f32 -1.442695, %v175_v49 }
  0xfc   :  { %v180_v53 = vpop.f32.mrb[2].mxu0  ;;  %v506_v56 = vmul.f32 -1.442695, %v177_v51 }
  0xfd   :  { %579 = vpow2.f32 %v498_v52  ;;  %v181_v54 = vadd.f32 %v180_v53, %v954_v47  ;;  %v182_v55 = vpop.f32.mrb[3].mxu0  ;;  %v968_v7 = vpop.f32.mrb[2].mxu1 }
  0xfe   :  { %v183_v58 = vadd.f32 %v182_v55, %v957_v48  ;;  %v295_v9 = vpop.f32.mrb[3].mxu1 }
  0xff   :  { %v499_v57 = vmul.f32 -1.442695, %v181_v54  ;;  %v290_v54 = vadd.f32 %v289_v63, %v981_v31  ;;  %v296_v63 = vadd.f32 %v295_v9, %v981_v31 }
 0x100   :  { %v186_v59 = vpop.f32.mrb[4].mxu0  ;;  %v507_v0 = vmul.f32 -1.442695, %v183_v58 }
 0x101   :  { %581 = vpow2.f32 %v499_v57  ;;  %v187_v60 = vadd.f32 %v186_v59, %v954_v47  ;;  %v188_v61 = vpop.f32.mrb[5].mxu0  ;;  %v973_v19 = vpop.f32.mrb[4].mxu1 }
 0x102   :  { %583 = vpow2.f32 %v506_v56  ;;  %v189_v2 = vadd.f32 %v188_v61, %v957_v48  ;;  %v975_v20 = vpop.f32.mrb[5].mxu1 }
 0x103   :  { %v500_v1 = vmul.f32 -1.442695, %v187_v60  ;;  %v288_v60 = vadd.f32 %v964_v62, %v989_v46  ;;  %v302_v18 = vadd.f32 %v975_v20, %v981_v31 }
 0x104   :  { %v192_v4 = vpop.f32.mrb[6].mxu0  ;;  %v508_v11 = vmul.f32 -1.442695, %v189_v2 }
 0x105   :  { %585 = vpow2.f32 %v500_v1  ;;  %v193_v5 = vadd.f32 %v192_v4, %v954_v47  ;;  %v194_v6 = vpop.f32.mrb[7].mxu0  ;;  %v983_v32 = vpop.f32.mrb[6].mxu1 }
 0x106   :  { %v195_v8 = vadd.f32 %v194_v6, %v957_v48  ;;  %587 = vpow2.f32 %v507_v0  ;;  %v985_v33 = vpop.f32.mrb[7].mxu1 }
 0x107   :  { %v580_v10 = vpop.eup %579  ;;  %v501_v12 = vmul.f32 -1.442695, %v193_v5 }
 0x108   :  { %v358_v13 = vadd.f32 1.0, %v580_v10  ;;  %v509_v14 = vmul.f32 -1.442695, %v195_v8  ;;  %v198_v15 = vpop.f32.mrb[8].mxu0 }
 0x109   :  { %589 = vpow2.f32 %v501_v12  ;;  %v199_v16 = vadd.f32 %v198_v15, %v954_v47  ;;  %v200_v17 = vpop.f32.mrb[9].mxu0  ;;  %v993_v55 = vpop.f32.mrb[8].mxu1  ;;  %v294_v15 = vadd.f32 %v968_v7, %v989_v46 }
 0x10a   :  { %591 = vrcp.f32 %v358_v13  ;;  %v201_v26 = vadd.f32 %v200_v17, %v957_v48  ;;  %v996_v57 = vpop.f32.mrb[9].mxu1 }
 0x10b   :  { %v582_v21 = vpop.eup %581  ;;  %593 = vpow2.f32 %v508_v11  ;;  %v502_v22 = vmul.f32 -1.442695, %v199_v16 }
 0x10c   :  { %v584_v24 = vpop.eup %583  ;;  %v359_v25 = vadd.f32 1.0, %v582_v21  ;;  %595 = vpow2.f32 %v509_v14  ;;  %v204_v27 = vpop.f32.mrb[10].mxu0  ;;  %v510_v49 = vmul.f32 -1.442695, %v201_v26 }
 0x10d   :  { %597 = vpow2.f32 %v502_v22  ;;  %v205_v28 = vadd.f32 %v204_v27, %v954_v47  ;;  %v206_v30 = vpop.f32.mrb[11].mxu0  ;;  %v406_v42 = vadd.f32 1.0, %v584_v24  ;;  %v1002_v11 = vpop.f32.mrb[10].mxu1 }
 0x10e   :  { %599 = vrcp.f32 %v359_v25  ;;  %v207_v44 = vadd.f32 %v206_v30, %v957_v48  ;;  %v319_v13 = vpop.f32.mrb[11].mxu1  ;;  %v300_v30 = vadd.f32 %v973_v19, %v989_v46 }
 0x10f   :  { %v586_v35 = vpop.eup %585  ;;  %v503_v43 = vmul.f32 -1.442695, %v205_v28 }
 0x110   :  { %v360_v3 = vadd.f32 1.0, %v586_v35  ;;  %v210_v50 = vpop.f32.mrb[12].mxu0  ;;  %v588_v51 = vpop.eup %587  ;;  %v511_v45 = vmul.f32 -1.442695, %v207_v44 }
 0x111   :  { %601 = vpow2.f32 %v503_v43  ;;  %v211_v52 = vadd.f32 %v210_v50, %v954_v47  ;;  %v212_v53 = vpop.f32.mrb[13].mxu0  ;;  %v407_v0 = vadd.f32 1.0, %v588_v51  ;;  %v1009_v23 = vpop.f32.mrb[12].mxu1 }
 0x112   :  { %603 = vrcp.f32 %v360_v3  ;;  %v213_v56 = vadd.f32 %v212_v53, %v957_v48  ;;  %v325_v24 = vpop.f32.mrb[13].mxu1  ;;  %v306_v53 = vadd.f32 %v983_v32, %v989_v46  ;;  %v320_v32 = vadd.f32 %v319_v13, %v981_v31 }
 0x113   :  { %v590_v58 = vpop.eup %589  ;;  %605 = vrcp.f32 %v406_v42  ;;  %v504_v59 = vmul.f32 -1.442695, %v211_v52  ;;  %v326_v13 = vadd.f32 %v325_v24, %v981_v31  ;;  %v324_v24 = vadd.f32 %v1009_v23, %v989_v46 }
 0x114   :  { %v592_v61 = vpop.eup %591  ;;  %v361_v1 = vadd.f32 1.0, %v590_v58  ;;  %607 = vpow2.f32 %v510_v49  ;;  %v216_v2 = vpop.f32.mrb[14].mxu0  ;;  %v512_v5 = vmul.f32 -1.442695, %v213_v56 }
 0x115   :  { %v594_v4 = vpop.eup %593  ;;  %609 = vpow2.f32 %v504_v59  ;;  %v430_v6 = vmul.f32 %v592_v61, %v290_v54  ;;  %v217_v8 = vadd.f32 %v216_v2, %v954_v47  ;;  %v218_v10 = vpop.f32.mrb[15].mxu0  ;;  %v312_v2 = vadd.f32 %v993_v55, %v989_v46 }
 0x116   :  { %v596_v12 = vpop.eup %595  ;;  %611 = vrcp.f32 %v361_v1  ;;  %v408_v47 = vadd.f32 1.0, %v594_v4  ;;  %v219_v21 = vadd.f32 %v218_v10, %v957_v48  ;;  %v308_v48 = vadd.f32 %v985_v33, %v981_v31  ;;  %v1015_v43 = vpop.f32.mrb[14].mxu1 }
 0x117   :  { %v598_v62 = vpop.eup %597  ;;  %613 = vpow2.f32 %v511_v45  ;;  %v438_v14 = vadd.f32 %v430_v6, %v288_v60  ;;  %v505_v17 = vmul.f32 -1.442695, %v217_v8  ;;  %v409_v26 = vadd.f32 1.0, %v596_v12  ;;  %v1017_v3 = vpop.f32.mrb[15].mxu1 }
 0x118   :  { %v600_v16 = vpop.eup %599  ;;  %615 = vrcp.f32 %v407_v0  ;;  %v362_v9 = vadd.f32 1.0, %v598_v62  ;;  %v513_v35 = vmul.f32 -1.442695, %v219_v21  ;;  %v314_v33 = vadd.f32 %v996_v57, %v981_v31 }
 0x119   :  { %617 = vpow2.f32 %v512_v5  ;;  %v431_v22 = vmul.f32 %v600_v16, %v296_v63 }
 0x11a   :  { %619 = vrcp.f32 %v362_v9 }
 0x11b   :  { %v602_v25 = vpop.eup %601  ;;  %621 = vtanh.f32 %v438_v14  ;;  %v439_v7 = vadd.f32 %v431_v22, %v294_v15  ;;  %v318_v15 = vadd.f32 %v1002_v11, %v989_v46 }
 0x11c   :  { %v604_v27 = vpop.eup %603  ;;  %v363_v28 = vadd.f32 1.0, %v602_v25  ;;  %623 = vpow2.f32 %v505_v17 }
 0x11d   :  { %v606_v20 = vpop.eup %605  ;;  %625 = vrcp.f32 %v408_v47  ;;  %v432_v42 = vmul.f32 %v604_v27, %v302_v18 }
 0x11e   :  { %v608_v44 = vpop.eup %607  ;;  %627 = vrcp.f32 %v363_v28  ;;  %v454_v61 = vsub.f32 1.0, %v606_v20  ;;  %v470_v57 = vmul.f32 %v606_v20, %v871_v29 }
 0x11f   :  { %v610_v49 = vpop.eup %609  ;;  %629 = vrcp.f32 %v409_v26  ;;  %v440_v50 = vadd.f32 %v432_v42, %v300_v30  ;;  %v410_v58 = vadd.f32 1.0, %v608_v44 }
 0x120   :  { %v612_v51 = vpop.eup %611  ;;  %v364_v52 = vadd.f32 1.0, %v610_v49  ;;  %631 = vtanh.f32 %v439_v7 }
 0x121   :  { %v614_v19 = vpop.eup %613  ;;  %633 = vpow2.f32 %v513_v35  ;;  %v433_v54 = vmul.f32 %v612_v51, %v308_v48  ;;  %v332_v35 = vadd.f32 %v1017_v3, %v981_v31 }
 0x122   :  { %v616_v56 = vpop.eup %615  ;;  %635 = vrcp.f32 %v364_v52  ;;  %v411_v0 = vadd.f32 1.0, %v614_v19 }
 0x123   :  { %v618_v45 = vpop.eup %617  ;;  %637 = vtanh.f32 %v440_v50  ;;  %v441_v59 = vadd.f32 %v433_v54, %v306_v53  ;;  %v455_v55 = vsub.f32 1.0, %v616_v56  ;;  %v471_v18 = vmul.f32 %v616_v56, %v884_v34 }
 0x124   :  { %v620_v60 = vpop.eup %619  ;;  %v412_v62 = vadd.f32 1.0, %v618_v45 }
 0x125   :  { %v622_v1 = vpop.eup %621  ;;  %639 = vtanh.f32 %v441_v59  ;;  %v434_v63 = vmul.f32 %v620_v60, %v314_v33 }
 0x126   :  { %v624_v4 = vpop.eup %623  ;;  %641 = vrcp.f32 %v410_v58  ;;  %v462_v5 = vmul.f32 %v622_v1, %v454_v61 }
 0x127   :  { %v626_v6 = vpop.eup %625  ;;  %v365_v8 = vadd.f32 1.0, %v624_v4  ;;  %v442_v10 = vadd.f32 %v434_v63, %v312_v2  ;;  %643 = vrcp.f32 %v411_v0 }
 0x128   :  { %v628_v12 = vpop.eup %627  ;;  %v478_v14 = vadd.f32 %v470_v57, %v462_v5  ;;  %v456_v25 = vsub.f32 1.0, %v626_v6  ;;  %v472_v27 = vmul.f32 %v626_v6, %v891_v36 }
 0x129   :  { %v630_v16 = vpop.eup %629  ;;  %645 = vrcp.f32 %v365_v8  ;;  %v435_v9 = vmul.f32 %v628_v12, %v320_v32 }
 0x12a   :  { %v632_v17 = vpop.eup %631  ;;  %486 = vst [vmem:[%s1070_s3] sm:$0xff] %v478_v14  ;;  %647 = vtanh.f32 %v442_v10  ;;  %v457_v28 = vsub.f32 1.0, %v630_v16  ;;  %v473_v48 = vmul.f32 %v630_v16, %v898_v37  ;;  %v330_v37 = vadd.f32 %v1015_v43, %v989_v46 }
 0x12b   :  { %v634_v29 = vpop.eup %633  ;;  %v463_v47 = vmul.f32 %v632_v17, %v455_v55  ;;  %v443_v21 = vadd.f32 %v435_v9, %v318_v15  ;;  %649 = vrcp.f32 %v412_v62 }
 0x12c   :  { %v636_v22 = vpop.eup %635  ;;  %v413_v44 = vadd.f32 1.0, %v634_v29 }
 0x12d   :  { %v638_v11 = vpop.eup %637  ;;  %v479_v26 = vadd.f32 %v471_v18, %v463_v47  ;;  %651 = vtanh.f32 %v443_v21  ;;  %v436_v7 = vmul.f32 %v636_v22, %v326_v13 }
 0x12e   :  { %v464_v30 = vmul.f32 %v638_v11, %v456_v25 }
 0x12f   :  { %v640_v20 = vpop.eup %639  ;;  %487 = vst [vmem:[%s1070_s3 + $0x8] sm:$0xff] %v479_v26  ;;  %v444_v34 = vadd.f32 %v436_v7, %v324_v24 }
 0x130   :  { %v642_v42 = vpop.eup %641  ;;  %v480_v49 = vadd.f32 %v472_v27, %v464_v30  ;;  %v465_v23 = vmul.f32 %v640_v20, %v457_v28 }
 0x131   :  { %653 = vtanh.f32 %v444_v34  ;;  %v644_v50 = vpop.eup %643  ;;  %v458_v52 = vsub.f32 1.0, %v642_v42  ;;  %v474_v3 = vmul.f32 %v642_v42, %v907_v38 }
 0x132   :  { %488 = vst [vmem:[%s1070_s3 + $0x10] sm:$0xff] %v480_v49  ;;  %v481_v36 = vadd.f32 %v473_v48, %v465_v23  ;;  %655 = vrcp.f32 %v413_v44  ;;  %v459_v33 = vsub.f32 1.0, %v644_v50  ;;  %v475_v59 = vmul.f32 %v644_v50, %v916_v39 }
 0x133   :  { %v646_v51 = vpop.eup %645 }
 0x134   :  { %v648_v19 = vpop.eup %647  ;;  %489 = vst [vmem:[%s1070_s3 + $0x18] sm:$0xff] %v481_v36  ;;  %v437_v31 = vmul.f32 %v646_v51, %v332_v35 }
 0x135   :  { %v466_v53 = vmul.f32 %v648_v19, %v458_v52  ;;  %v650_v54 = vpop.eup %649 }
 0x136   :  { %v445_v56 = vadd.f32 %v437_v31, %v330_v37  ;;  %v460_v61 = vsub.f32 1.0, %v650_v54  ;;  %v476_v43 = vmul.f32 %v650_v54, %v925_v40 }
 0x137   :  { %v652_v58 = vpop.eup %651  ;;  %v482_v45 = vadd.f32 %v474_v3, %v466_v53 }
 0x138   :  { %v467_v60 = vmul.f32 %v652_v58, %v459_v33  ;;  %657 = vtanh.f32 %v445_v56 }
 0x139   :  { %490 = vst [vmem:[%s1070_s3 + $0x20] sm:$0xff] %v482_v45 }
 0x13a   :  { %v483_v0 = vadd.f32 %v475_v59, %v467_v60 }
 0x13b   :  { %v654_v46 = vpop.eup %653 }
 0x13c   :  { %491 = vst [vmem:[%s1070_s3 + $0x28] sm:$0xff] %v483_v0  ;;  %v468_v38 = vmul.f32 %v654_v46, %v460_v61  ;;  %v656_v1 = vpop.eup %655 }
 0x13d   :  { %v461_v39 = vsub.f32 1.0, %v656_v1  ;;  %v477_v32 = vmul.f32 %v656_v1, %v934_v41 }
 0x13e   :  { %v484_v2 = vadd.f32 %v476_v43, %v468_v38 }
 0x140   :  { %492 = vst [vmem:[%s1070_s3 + $0x30] sm:$0xff] %v484_v2 }
 0x142   :  { %v658_v63 = vpop.eup %657 }
 0x143   :  { %v469_v4 = vmul.f32 %v658_v63, %v461_v39 }
 0x145   :  { %v485_v57 = vadd.f32 %v477_v32, %v469_v4 }
 0x147   :  { %493 = vst [vmem:[%s1070_s3 + $0x38] sm:$0xff] %v485_v57 }

// kernel: gru_language_model_forward.7
= control target key start
LH: loop header
LB: loop body
LE: loop exit
PB: predicated region body
PF: predicated region fallthrough
CT: control target
= control target key end

     0   :  { %s453_s1 = inlined_call_operand.vmem [shape: f32[128,128], index: 1, kind: input, shape index: {}]   ;;  %s454_s0 = inlined_call_operand.vmem [shape: f32[64,128], index: 0, kind: input, shape index: {}]   ;;  %s455_s2 = inlined_call_operand.vmem [shape: f32[1,128], index: 2, kind: input, shape index: {}]   ;;  %s456_s3 = inlined_call_operand.vmem [shape: f32[64,128], index: 3, kind: output, shape index: {}]  }
   0x1   :  { %v42_v0 = vld [vmem:[%s453_s1] sm:$0xff]  ;;  %v43_v1 = vld [vmem:[%s453_s1 + $0x8] sm:$0xff]  ;;  %v44_v2 = vld [vmem:[%s453_s1 + $0x10] sm:$0xff] }
   0x2   :  { %v286_v3 = vpack.c.bf16 %v43_v1, %v42_v0  ;;  %v45_v4 = vld [vmem:[%s453_s1 + $0x18] sm:$0xff]  ;;  %v46_v6 = vld [vmem:[%s453_s1 + $0x20] sm:$0xff]  ;;  %v47_v7 = vld [vmem:[%s453_s1 + $0x28] sm:$0xff] }
   0x3   :  { %v290_v5 = vpack.c.bf16 %v45_v4, %v44_v2  ;;  %v294_v8 = vpack.c.bf16 %v47_v7, %v46_v6  ;;  %v34_v9 = vld [vmem:[%s454_s0] sm:$0xff]  ;;  %v48_v11 = vld [vmem:[%s453_s1 + $0x30] sm:$0xff]  ;;  %v49_v12 = vld [vmem:[%s453_s1 + $0x38] sm:$0xff] }
   0x4   :  { %287 = vmatprep.subr.bf16.mxu0 %v286_v3  ;;  %318 = vmatprep.subr.bf16.mxu1 %v286_v3  ;;  %v38_v10 = vld [vmem:[%s454_s0 + $0x20] sm:$0xff]  ;;  %v298_v13 = vpack.c.bf16 %v49_v12, %v48_v11  ;;  %v51_v15 = vld [vmem:[%s453_s1 + $0x48] sm:$0xff]  ;;  %v52_v17 = vld [vmem:[%s453_s1 + $0x50] sm:$0xff] }
   0x5   :  { %289 = vmatpush3.bf16.msra.mxu0 %v286_v3  ;;  %326 = vmatpush3.bf16.msra.mxu1 %v286_v3  ;;  %v50_v14 = vld [vmem:[%s453_s1 + $0x40] sm:$0xff]  ;;  %v53_v18 = vld [vmem:[%s453_s1 + $0x58] sm:$0xff]  ;;  %v55_v21 = vld [vmem:[%s453_s1 + $0x68] sm:$0xff] }
   0x6   :  { %291 = vmatprep.subr.bf16.mxu0 %v290_v5  ;;  %319 = vmatprep.subr.bf16.mxu1 %v290_v5  ;;  %v302_v16 = vpack.c.bf16 %v51_v15, %v50_v14  ;;  %v306_v19 = vpack.c.bf16 %v53_v18, %v52_v17  ;;  %v54_v20 = vld [vmem:[%s453_s1 + $0x60] sm:$0xff]  ;;  %v56_v23 = vld [vmem:[%s453_s1 + $0x70] sm:$0xff]  ;;  %v57_v24 = vld [vmem:[%s453_s1 + $0x78] sm:$0xff] }
   0x7   :  { %274 = vmatprep.mubr.f32.mxu0 %v34_v9  ;;  %280 = vmatprep.mubr.f32.mxu1 %v38_v10  ;;  %v310_v22 = vpack.c.bf16 %v55_v21, %v54_v20  ;;  %v314_v25 = vpack.c.bf16 %v57_v24, %v56_v23  ;;  %v35_v26 = vld [vmem:[%s454_s0 + $0x8] sm:$0xff]  ;;  %v36_v28 = vld [vmem:[%s454_s0 + $0x10] sm:$0xff]  ;;  %v37_v30 = vld [vmem:[%s454_s0 + $0x18] sm:$0xff] }
   0x8   :  { %v39_v27 = vld [vmem:[%s454_s0 + $0x28] sm:$0xff]  ;;  %v40_v29 = vld [vmem:[%s454_s0 + $0x30] sm:$0xff]  ;;  %v41_v31 = vld [vmem:[%s454_s0 + $0x38] sm:$0xff] }
   0x9   :  { %293 = vmatpush3.bf16.msra.mxu0 %v290_v5  ;;  %327 = vmatpush3.bf16.msra.mxu1 %v290_v5  ;;  %v217_v32 = vld [vmem:[%s455_s2] ss:$0 sm:$0xff] }
   0xa   :  { %295 = vmatprep.subr.bf16.mxu0 %v294_v8  ;;  %320 = vmatprep.subr.bf16.mxu1 %v294_v8 }
   0xd   :  { %297 = vmatpush3.bf16.msra.mxu0 %v294_v8  ;;  %328 = vmatpush3.bf16.msra.mxu1 %v294_v8 }
   0xe   :  { %299 = vmatprep.subr.bf16.mxu0 %v298_v13  ;;  %321 = vmatprep.subr.bf16.mxu1 %v298_v13 }
  0x11   :  { %301 = vmatpush3.bf16.msra.mxu0 %v298_v13  ;;  %329 = vmatpush3.bf16.msra.mxu1 %v298_v13 }
  0x12   :  { %303 = vmatprep.subr.bf16.mxu0 %v302_v16  ;;  %322 = vmatprep.subr.bf16.mxu1 %v302_v16 }
  0x15   :  { %305 = vmatpush3.bf16.msra.mxu0 %v302_v16  ;;  %330 = vmatpush3.bf16.msra.mxu1 %v302_v16 }
  0x16   :  { %307 = vmatprep.subr.bf16.mxu0 %v306_v19  ;;  %323 = vmatprep.subr.bf16.mxu1 %v306_v19 }
  0x19   :  { %309 = vmatpush3.bf16.msra.mxu0 %v306_v19  ;;  %331 = vmatpush3.bf16.msra.mxu1 %v306_v19 }
  0x1a   :  { %311 = vmatprep.subr.bf16.mxu0 %v310_v22  ;;  %324 = vmatprep.subr.bf16.mxu1 %v310_v22 }
  0x1d   :  { %313 = vmatpush3.bf16.msra.mxu0 %v310_v22  ;;  %332 = vmatpush3.bf16.msra.mxu1 %v310_v22 }
  0x1e   :  { %315 = vmatprep.subr.bf16.mxu0 %v314_v25  ;;  %325 = vmatprep.subr.bf16.mxu1 %v314_v25 }
  0x21   :  { %317 = vmatpush3.bf16.msra.mxu0 %v314_v25  ;;  %333 = vmatpush3.bf16.msra.mxu1 %v314_v25 }
  0x24   :  { %275 = vmatmul.mubr.f32.vlgmr.msra.gmra.mrb[0].mxu0 %v35_v26  ;;  %281 = vmatmul.mubr.f32.vlgmr.msra.gmra.mrb[0].mxu1 %v39_v27 }
  0x25   :  { %277 = vmatprep.mubr.f32.mxu0 %v36_v28  ;;  %283 = vmatprep.mubr.f32.mxu1 %v40_v29 }
  0x28   :  { %278 = vmatmul.mubr.f32.gmra.mrb[2].mxu0 %v37_v30  ;;  %284 = vmatmul.mubr.f32.gmra.mrb[2].mxu1 %v41_v31 }
  0xf7   :  { %v276_v33 = vpop.f32.mrb[0].mxu0  ;;  %v282_v34 = vpop.f32.mrb[0].mxu1 }
  0xf8   :  { %v198_v35 = vadd.f32 %v276_v33, %v217_v32  ;;  %v202_v36 = vadd.f32 %v282_v34, %v217_v32  ;;  %v124_v37 = vpop.f32.mrb[1].mxu0  ;;  %v144_v38 = vpop.f32.mrb[1].mxu1 }
  0xf9   :  { %v197_v39 = vadd.f32 %v217_v32, %v124_v37  ;;  %v201_v40 = vadd.f32 %v217_v32, %v144_v38 }
  0xfa   :  { %206 = vst [vmem:[%s456_s3 + $0x8] sm:$0xff] %v198_v35  ;;  %210 = vst [vmem:[%s456_s3 + $0x28] sm:$0xff] %v202_v36 }
  0xfb   :  { %205 = vst [vmem:[%s456_s3] sm:$0xff] %v197_v39  ;;  %209 = vst [vmem:[%s456_s3 + $0x20] sm:$0xff] %v201_v40  ;;  %v279_v41 = vpop.f32.mrb[2].mxu0  ;;  %v285_v42 = vpop.f32.mrb[2].mxu1 }
  0xfc   :  { %v200_v43 = vadd.f32 %v279_v41, %v217_v32  ;;  %v204_v44 = vadd.f32 %v285_v42, %v217_v32  ;;  %v134_v45 = vpop.f32.mrb[3].mxu0  ;;  %v154_v46 = vpop.f32.mrb[3].mxu1 }
  0xfd   :  { %v199_v47 = vadd.f32 %v217_v32, %v134_v45  ;;  %v203_v48 = vadd.f32 %v217_v32, %v154_v46 }
  0xfe   :  { %208 = vst [vmem:[%s456_s3 + $0x18] sm:$0xff] %v200_v43  ;;  %212 = vst [vmem:[%s456_s3 + $0x38] sm:$0xff] %v204_v44 }
  0xff   :  { %207 = vst [vmem:[%s456_s3 + $0x10] sm:$0xff] %v199_v47  ;;  %211 = vst [vmem:[%s456_s3 + $0x30] sm:$0xff] %v203_v48 }

</bundles_post_ra>
